<compile_context>
chip_gen: v7x
topology: tpu7x:2x2x1
jax: 0.10.0
libtpu: 0.0.40
codegen_flags: <defaults>
</compile_context>

<pallas_src>
import functools

import numpy as np
import jax
import jax.numpy as jnp
from jax.experimental import pallas as pl
from jax.experimental.pallas import tpu as pltpu

RATE = 4                    # BDCN default rate
_FOLD_K_MAX = 1280          # fold all taps into one matmul when kh*kw*Cin <= this


def _tpu_vmem_capacity():
    try:
        return int(pltpu.get_tpu_info().vmem_capacity_bytes)
    except Exception:
        return 64 * 1024 * 1024          # conservative (v7x per-TC) fallback


_VMEM_CAP = _tpu_vmem_capacity()
# Scoped VMEM limit: ~48 MiB on v7x (64 MiB/TC), ~96 MiB on v5e/v6e (128 MiB).
_VMEM_LIMIT = max(32 << 20, min(int(0.75 * _VMEM_CAP), _VMEM_CAP - (16 << 20)))
# Per-band working-set target; est() below covers double-buffered input/output,
# f32 accumulator, folded patch matrix and (double-buffered) weights.
_DEFAULT_BAND_BUDGET = min(int(0.60 * _VMEM_LIMIT), 32 << 20)
_BAND_BUDGET_OVERRIDE = None             # set by the self-test to force nb > 1


def _band_budget():
    return _BAND_BUDGET_OVERRIDE or _DEFAULT_BAND_BUDGET


# ----------------------------------------------------------------------------
# Kernel bodies (shared by the BlockSpec and the manual-DMA harness).
#   get(off, rows) -> bf16 (rows, Cin) window of the flattened (H*Wp, Cin) band
# ----------------------------------------------------------------------------
def _conv_body(get, w_ref, b_ref, rows_out, *, kh, kw, dil, wp, cin, fold, relu):
    if fold:
        # Fold every tap into K: one (rows_out, kh*kw*Cin) @ (kh*kw*Cin, Cout)
        # matmul -> K >= 256 for Cin >= 32 (full MXU depth on v6e/v7x).
        patches = [get(i * dil * wp + j * dil, rows_out)
                   for i in range(kh) for j in range(kw)]
        pm = patches[0] if len(patches) == 1 else jnp.concatenate(patches, axis=-1)
        acc = jnp.dot(pm, w_ref[...], preferred_element_type=jnp.float32)
    else:
        # Large Cin (256/512): per-tap matmuls, K already a multiple of 256.
        acc = None
        for i in range(kh):
            for j in range(kw):
                t = i * kw + j
                part = jnp.dot(get(i * dil * wp + j * dil, rows_out),
                               w_ref[t * cin:(t + 1) * cin, :],
                               preferred_element_type=jnp.float32)
                acc = part if acc is None else acc + part
    r = acc + b_ref[0:1, :]
    if relu:
        r = jnp.maximum(r, 0.0)
    return r


def _msfuse_body(get, w_ref, b_ref, rows_out, *, wp, dils, pad):
    """Fused MSBlock tail: o + sum_d relu(conv3x3_dilation_d(o) + b_d)."""
    cin = 32
    acc = get(pad * wp + pad, rows_out).astype(jnp.float32)      # center term `o`
    for n_d, d in enumerate(dils):
        base = (pad - d) * wp + (pad - d)
        patches = [get(base + i * d * wp + j * d, rows_out)
                   for i in range(3) for j in range(3)]
        pm = jnp.concatenate(patches, axis=-1)                   # (rows_out, 288)
        r = jnp.dot(pm, w_ref[n_d * 9 * cin:(n_d + 1) * 9 * cin, :],
                    preferred_element_type=jnp.float32)
        acc = acc + jnp.maximum(r + b_ref[n_d:n_d + 1, :], 0.0)
    return acc


# ----------------------------------------------------------------------------
# Pallas kernels.
# ----------------------------------------------------------------------------
def _kernel_blockspec(x_ref, w_ref, b_ref, o_ref, *, body, rows_out):
    # nb == 1: the whole (padded) image band is one auto-pipelined VMEM block.
    def get(off, rows):
        return x_ref[0, off:off + rows, :]

    o_ref[0, 0] = body(get, w_ref, b_ref, rows_out).astype(o_ref.dtype)


def _kernel_manual(x_hbm, w_ref, b_ref, o_ref, buf, sem, *,
                   body, rows_out, rows_in, step_rows):
    # nb > 1: overlapping band windows are DMA'd from HBM with manual double
    # buffering (no halo-duplicated copy of the activation in HBM).
    batch = pl.program_id(0)
    band = pl.program_id(1)
    nb = pl.num_programs(1)
    slot = band % 2

    def start(bd, sl):
        pltpu.make_async_copy(
            x_hbm.at[batch, pl.ds(bd * step_rows, rows_in), :],
            buf.at[sl], sem.at[sl]).start()

    @pl.when(band == 0)                      # prime the first band of this batch
    def _():
        start(0, 0)

    pltpu.make_async_copy(
        x_hbm.at[batch, pl.ds(band * step_rows, rows_in), :],
        buf.at[slot], sem.at[slot]).wait()

    @pl.when(band + 1 < nb)                  # prefetch next band (same batch only)
    def _():
        start(band + 1, 1 - slot)

    def get(off, rows):
        return buf[slot, off:off + rows, :]

    o_ref[0, 0] = body(get, w_ref, b_ref, rows_out).astype(o_ref.dtype)


# ----------------------------------------------------------------------------
# Banded harness: pick the band size from the VMEM budget, run the kernel.
# ----------------------------------------------------------------------------
def _band_plan(ho, wp, cin, cout, halo, kw_extra, out_bytes, patch_cols, w_bytes):
    budget = _band_budget()
    per_row = wp * (2 * cin * 2            # double-buffered bf16 input rows
                    + 2 * cout * out_bytes  # double-buffered output rows
                    + cout * 4              # f32 accumulator
                    + patch_cols * 2)       # folded patch matrix (bf16)
    fixed = 2 * (halo + kw_extra) * wp * cin * 2 + 2 * w_bytes
    th = (budget - fixed) // per_row if budget > fixed else 1
    th = max(1, min(int(th), ho))
    nb = -(-ho // th)
    th = -(-ho // nb)                        # rebalance bands
    return th, nb


def _run_banded(xpad, body, *, halo, kw_extra, cout, w_mat, b_mat, out_dtype,
                patch_cols, wo, k_for_cost):
    n, hp, wp, cin = xpad.shape
    ho = hp - halo
    assert ho >= 1 and 1 <= wo <= wp
    out_bytes = jnp.dtype(out_dtype).itemsize
    th, nb = _band_plan(ho, wp, cin, cout, halo, kw_extra, out_bytes,
                        patch_cols, int(w_mat.size) * 2)
    ho_pad = nb * th
    rows_in = (th + halo + kw_extra) * wp
    rows_out = th * wp

    xb = jnp.pad(xpad.astype(jnp.bfloat16),
                 ((0, 0), (0, (ho_pad - ho) + kw_extra), (0, 0), (0, 0)))
    total_rows = (ho_pad + halo + kw_extra) * wp
    xb = xb.reshape(n, total_rows, cin)
    w_mat = w_mat.astype(jnp.bfloat16)
    b_mat = b_mat.astype(jnp.float32)

    cost = pl.CostEstimate(
        flops=2 * n * ho_pad * wp * k_for_cost * cout,
        transcendentals=0,
        bytes_accessed=(n * total_rows * cin * 2 + int(w_mat.size) * 2
                        + n * nb * rows_out * cout * out_bytes))
    out_shape = jax.ShapeDtypeStruct((n, nb, rows_out, cout), out_dtype)

    if nb == 1:
        kernel = functools.partial(_kernel_blockspec, body=body, rows_out=rows_out)
        out = pl.pallas_call(
            kernel,
            out_shape=out_shape,
            grid=(n,),
            in_specs=[pl.BlockSpec((1, rows_in, cin), lambda i: (i, 0, 0)),
                      pl.BlockSpec(w_mat.shape, lambda i: (0, 0)),
                      pl.BlockSpec(b_mat.shape, lambda i: (0, 0))],
            out_specs=pl.BlockSpec((1, 1, rows_out, cout), lambda i: (i, 0, 0, 0)),
            compiler_params=pltpu.CompilerParams(
                dimension_semantics=("parallel",),
                vmem_limit_bytes=_VMEM_LIMIT),
            cost_estimate=cost,
        )(xb, w_mat, b_mat)
    else:
        # TODO(synk): when n == 1 only one "parallel" step exists (v7x second
        # core idle); splitting the band axis across cores would need per-core
        # DMA priming and is left out for robustness.
        kernel = functools.partial(_kernel_manual, body=body, rows_out=rows_out,
                                   rows_in=rows_in, step_rows=rows_out)
        out = pl.pallas_call(
            kernel,
            out_shape=out_shape,
            grid=(n, nb),
            in_specs=[pl.BlockSpec(memory_space=pl.ANY),
                      pl.BlockSpec(w_mat.shape, lambda i, j: (0, 0)),
                      pl.BlockSpec(b_mat.shape, lambda i, j: (0, 0))],
            out_specs=pl.BlockSpec((1, 1, rows_out, cout),
                                   lambda i, j: (i, j, 0, 0)),
            scratch_shapes=[pltpu.VMEM((2, rows_in, cin), jnp.bfloat16),
                            pltpu.SemaphoreType.DMA((2,))],
            compiler_params=pltpu.CompilerParams(
                dimension_semantics=("parallel", "arbitrary"),
                vmem_limit_bytes=_VMEM_LIMIT),
            cost_estimate=cost,
        )(xb, w_mat, b_mat)

    out = out.reshape(n, ho_pad, wp, cout)
    return out[:, :ho, :wo, :]


# ----------------------------------------------------------------------------
# Conv2d and fused MSBlock wrappers.
# ----------------------------------------------------------------------------
def conv2d(x, w, b, *, padding=0, dilation=1, relu=False, out_dtype=jnp.bfloat16):
    """NHWC stride-1 Conv2d via the banded Pallas kernel.
    x: (N,H,W,Cin); w: (Cout,Cin,kh,kw) PyTorch layout; b: (Cout,)."""
    n, h, wdt, cin = x.shape
    cout, cin_w, kh, kw = w.shape
    assert cin_w == cin
    d = dilation

    if kh * kw > 1 and cin < 8:
        # Lane-sparse Cin (first VGG conv, Cin=3): im2col pre-pack in XLA to a
        # lane-dense K = kh*kw*Cin 1x1 conv; the duplicated 3-channel copy is tiny.
        xp = jnp.pad(x.astype(jnp.bfloat16),
                     ((0, 0), (padding, padding), (padding, padding), (0, 0)))
        ho = h + 2 * padding - d * (kh - 1)
        wo = wdt + 2 * padding - d * (kw - 1)
        patches = jnp.concatenate(
            [xp[:, i * d:i * d + ho, j * d:j * d + wo, :]
             for i in range(kh) for j in range(kw)], axis=-1)
        w2 = jnp.transpose(w, (0, 2, 3, 1)).reshape(cout, kh * kw * cin, 1, 1)
        return conv2d(patches, w2, b, padding=0, dilation=1, relu=relu,
                      out_dtype=out_dtype)

    hp, wp = h + 2 * padding, wdt + 2 * padding
    halo = d * (kh - 1)
    wo = wp - d * (kw - 1)
    # Flattened-shift safety: the last tap's shift must stay within one extra
    # padded row so wrap-around garbage lands only in the cropped right margin.
    assert (kw - 1) * d <= wp and hp > halo

    fold = kh * kw * cin <= _FOLD_K_MAX
    w_mat = jnp.transpose(w, (2, 3, 1, 0)).reshape(kh * kw * cin, cout)
    b_mat = b.reshape(1, cout)
    body = functools.partial(_conv_body, kh=kh, kw=kw, dil=d, wp=wp, cin=cin,
                             fold=fold, relu=relu)
    xpad = jnp.pad(x.astype(jnp.bfloat16),
                   ((0, 0), (padding, padding), (padding, padding), (0, 0)))
    return _run_banded(xpad, body, halo=halo, kw_extra=1 if kw > 1 else 0,
                       cout=cout, w_mat=w_mat, b_mat=b_mat, out_dtype=out_dtype,
                       patch_cols=(kh * kw * cin) if fold else cin,
                       wo=wo, k_for_cost=kh * kw * cin)


def msblock(x, pms):
    """MSBlock: o = relu(conv3x3(x)+b); out = o + sum_d relu(conv3x3_d(o)+b_d).
    The three dilated convs + residual sum are ONE fused Pallas kernel."""
    o = conv2d(x, *pms['conv'], padding=1, relu=True)            # (N,H,W,32) bf16
    dils = (RATE, 2 * RATE, 3 * RATE)
    pad = max(dils)
    w_mat = jnp.concatenate(
        [jnp.transpose(pms['conv%d' % k][0], (2, 3, 1, 0)).reshape(9 * 32, 32)
         for k in (1, 2, 3)], axis=0)                            # (864, 32)
    b_mat = jnp.stack([pms['conv%d' % k][1] for k in (1, 2, 3)], axis=0)  # (3, 32)
    opad = jnp.pad(o, ((0, 0), (pad, pad), (pad, pad), (0, 0)))
    wp = o.shape[2] + 2 * pad
    assert 2 * pad <= wp
    body = functools.partial(_msfuse_body, wp=wp, dils=dils, pad=pad)
    return _run_banded(opad, body, halo=2 * pad, kw_extra=1, cout=32,
                       w_mat=w_mat, b_mat=b_mat, out_dtype=jnp.bfloat16,
                       patch_cols=2 * 9 * 32, wo=o.shape[2],
                       k_for_cost=27 * 32 + 1)


# ----------------------------------------------------------------------------
# Bilinear upsampling (exact, separable replacement of ConvTranspose2d).
# ----------------------------------------------------------------------------
def _upsample_matrix(n_in, k, stride):
    n_out = (n_in - 1) * stride + k
    factor = (k + 1) // 2
    center = factor - 1 if k % 2 == 1 else factor - 0.5
    f = 1.0 - np.abs(np.arange(k) - center) / factor
    u = np.zeros((n_out, n_in), np.float32)
    for h in range(n_in):
        u[h * stride:h * stride + k, h] = f
    return jnp.asarray(u)


def upsample_bilinear(x, k, stride):
    uh = _upsample_matrix(x.shape[1], k, stride)
    uw = _upsample_matrix(x.shape[2], k, stride)
    return jnp.einsum('ph,nhwc,qw->npqc', uh, x, uw)


# ----------------------------------------------------------------------------
# Small JAX glue: pools, crop, VGG16_C wiring, head folding, BDCN forward.
# ----------------------------------------------------------------------------
def _maxpool2_ceil(x):                  # MaxPool2d(2, stride=2, ceil_mode=True)
    n, h, w, c = x.shape
    ph, pw = h % 2, w % 2
    if ph or pw:
        x = jnp.pad(x, ((0, 0), (0, ph), (0, pw), (0, 0)),
                    constant_values=-jnp.inf)
        h, w = h + ph, w + pw
    return x.reshape(n, h // 2, 2, w // 2, 2, c).max(axis=(2, 4))


def _maxpool_k2s1(x):                   # MaxPool2d(2, stride=1, ceil_mode=True)
    x = jnp.maximum(x[:, :-1], x[:, 1:])
    return jnp.maximum(x[:, :, :-1], x[:, :, 1:])


def crop(data, like, crop_h, crop_w):   # NHWC version of reference crop()
    h2, w2 = like.shape[1], like.shape[2]
    return data[:, crop_h:crop_h + h2, crop_w:crop_w + w2, :]


def vgg16_c(x, ws):
    # TODO(synk): VGG16_C source was not provided; this follows the standard
    # BDCN backbone (pool4 k=2 stride=1 ceil, conv5_* dilation=2), pretrain=None.
    feats = []

    def c(h, i, pad=1, dil=1):
        return conv2d(h, *ws[i], padding=pad, dilation=dil, relu=True)

    h = c(x, 0); feats.append(h)
    h = c(h, 1); feats.append(h)
    h = _maxpool2_ceil(h)
    h = c(h, 2); feats.append(h)
    h = c(h, 3); feats.append(h)
    h = _maxpool2_ceil(h)
    h = c(h, 4); feats.append(h)
    h = c(h, 5); feats.append(h)
    h = c(h, 6); feats.append(h)
    h = _maxpool2_ceil(h)
    h = c(h, 7); feats.append(h)
    h = c(h, 8); feats.append(h)
    h = c(h, 9); feats.append(h)
    h = _maxpool_k2s1(h)
    h = c(h, 10, pad=2, dil=2); feats.append(h)
    h = c(h, 11, pad=2, dil=2); feats.append(h)
    h = c(h, 12, pad=2, dil=2); feats.append(h)
    return feats


def _fold_head(p, down_names, s_name, s1_name):
    # down(32->21), branch sum and both 1x1 score heads (21->1) are linear with
    # no nonlinearity between: fold into one (32*branches -> 2) matrix.
    ws = jnp.stack([p[s_name][0].reshape(21), p[s1_name][0].reshape(21)], 0)
    bs = jnp.stack([p[s_name][1][0], p[s1_name][1][0]], 0)
    wf = jnp.concatenate([ws @ p[dn][0].reshape(21, 32) for dn in down_names],
                         axis=1)
    bf = ws @ sum(p[dn][1] for dn in down_names) + bs
    return wf, bf


def bdcn_forward(x_nchw, p):
    x = jnp.transpose(x_nchw, (0, 2, 3, 1))                      # NCHW -> NHWC
    f = vgg16_c(x, p['vgg'])

    def head(feat_ids, ms_names, down_names, s_name, s1_name):
        m = jnp.concatenate([msblock(f[i], p[mn])
                             for i, mn in zip(feat_ids, ms_names)], axis=-1)
        wf, bf = _fold_head(p, down_names, s_name, s1_name)
        # Cout=2 1x1 head: lane-sparse and tiny -> XLA einsum, not Pallas.
        out = jnp.einsum('nhwc,dc->nhwd', m.astype(jnp.float32), wf) + bf
        return out[..., 0:1], out[..., 1:2]

    s1, s11 = head([0, 1], ['msblock1_1', 'msblock1_2'],
                   ['conv1_1_down', 'conv1_2_down'], 'score_dsn1', 'score_dsn1_1')

    s2, s21 = head([2, 3], ['msblock2_1', 'msblock2_2'],
                   ['conv2_1_down', 'conv2_2_down'], 'score_dsn2', 'score_dsn2_1')
    s2 = crop(upsample_bilinear(s2, 4, 2), x, 1, 1)
    s21 = crop(upsample_bilinear(s21, 4, 2), x, 1, 1)

    s3, s31 = head([4, 5, 6], ['msblock3_1', 'msblock3_2', 'msblock3_3'],
                   ['conv3_1_down', 'conv3_2_down', 'conv3_3_down'],
                   'score_dsn3', 'score_dsn3_1')
    s3 = crop(upsample_bilinear(s3, 8, 4), x, 2, 2)
    s31 = crop(upsample_bilinear(s31, 8, 4), x, 2, 2)

    s4, s41 = head([7, 8, 9], ['msblock4_1', 'msblock4_2', 'msblock4_3'],
                   ['conv4_1_down', 'conv4_2_down', 'conv4_3_down'],
                   'score_dsn4', 'score_dsn4_1')
    s4 = crop(upsample_bilinear(s4, 16, 8), x, 4, 4)
    s41 = crop(upsample_bilinear(s41, 16, 8), x, 4, 4)

    s5, s51 = head([10, 11, 12], ['msblock5_1', 'msblock5_2', 'msblock5_3'],
                   ['conv5_1_down', 'conv5_2_down', 'conv5_3_down'],
                   'score_dsn5', 'score_dsn5_1')
    s5 = crop(upsample_bilinear(s5, 16, 8), x, 0, 0)
    s51 = crop(upsample_bilinear(s51, 16, 8), x, 0, 0)

    # .detach() only affects gradients; forward values are identical.
    p1_1 = s1
    p2_1 = s2 + s1
    p3_1 = s3 + s2 + s1
    p4_1 = s4 + s3 + s2 + s1
    p5_1 = s5 + s4 + s3 + s2 + s1
    p1_2 = s11 + s21 + s31 + s41 + s51
    p2_2 = s21 + s31 + s41 + s51
    p3_2 = s31 + s41 + s51
    p4_2 = s41 + s51
    p5_2 = s51
    cat = jnp.concatenate([p1_1, p2_1, p3_1, p4_1, p5_1,
                           p1_2, p2_2, p3_2, p4_2, p5_2], axis=-1)
    # Cout=1 fuse 1x1 conv: tiny -> XLA.
    fuse = (jnp.einsum('nhwc,dc->nhwd', cat, p['fuse'][0].reshape(1, 10))
            + p['fuse'][1])
    outs = [p1_1, p2_1, p3_1, p4_1, p5_1, p1_2, p2_2, p3_2, p4_2, p5_2, fuse]
    return [jnp.transpose(o, (0, 3, 1, 2)) for o in outs]        # back to NCHW


# ----------------------------------------------------------------------------
# Deterministic parameter initialization (matches BDCN._initialize_weights:
# conv weights ~ N(0, 0.01), biases 0, upsample = bilinear, fuse = const 0.08).
# ----------------------------------------------------------------------------
def _conv_param(key, cout, cin, k):
    w = jax.random.normal(key, (cout, cin, k, k), jnp.float32) * 0.01
    b = jnp.zeros((cout,), jnp.float32)
    return w, b


def bilinear_upsampling_weight(k):
    factor = (k + 1) // 2
    center = factor - 1 if k % 2 == 1 else factor - 0.5
    og = np.ogrid[:k, :k]
    filt = (1 - abs(og[0] - center) / factor) * (1 - abs(og[1] - center) / factor)
    return jnp.asarray(filt, jnp.float32).reshape(1, 1, k, k)


def init_params(key):
    keys = iter(jax.random.split(key, 256))
    p = {}
    vgg_ch = [(64, 3), (64, 64), (128, 64), (128, 128), (256, 128), (256, 256),
              (256, 256), (512, 256), (512, 512), (512, 512), (512, 512),
              (512, 512), (512, 512)]
    p['vgg'] = [_conv_param(next(keys), co, ci, 3) for co, ci in vgg_ch]
    ms_cin = {'msblock1_1': 64, 'msblock1_2': 64,
              'msblock2_1': 128, 'msblock2_2': 128,
              'msblock3_1': 256, 'msblock3_2': 256, 'msblock3_3': 256,
              'msblock4_1': 512, 'msblock4_2': 512, 'msblock4_3': 512,
              'msblock5_1': 512, 'msblock5_2': 512, 'msblock5_3': 512}
    for name, cin in ms_cin.items():
        p[name] = {'conv': _conv_param(next(keys), 32, cin, 3),
                   'conv1': _conv_param(next(keys), 32, 32, 3),
                   'conv2': _conv_param(next(keys), 32, 32, 3),
                   'conv3': _conv_param(next(keys), 32, 32, 3)}
    for name in ['conv1_1_down', 'conv1_2_down', 'conv2_1_down', 'conv2_2_down',
                 'conv3_1_down', 'conv3_2_down', 'conv3_3_down',
                 'conv4_1_down', 'conv4_2_down', 'conv4_3_down',
                 'conv5_1_down', 'conv5_2_down', 'conv5_3_down']:
        p[name] = _conv_param(next(keys), 21, 32, 1)
    for name in ['score_dsn1', 'score_dsn1_1', 'score_dsn2', 'score_dsn2_1',
                 'score_dsn3', 'score_dsn3_1', 'score_dsn4', 'score_dsn4_1',
                 'score_dsn5', 'score_dsn5_1']:
        p[name] = _conv_param(next(keys), 1, 21, 1)
    # Fixed bilinear upsample weights; the forward reproduces them exactly via
    # the separable 1-D filters in upsample_bilinear().
    p['upsample_2'] = bilinear_upsampling_weight(4)
    p['upsample_4'] = bilinear_upsampling_weight(8)
    p['upsample_8'] = bilinear_upsampling_weight(16)
    p['upsample_8_5'] = bilinear_upsampling_weight(16)
    p['fuse'] = (jnp.full((1, 10, 1, 1), 0.08, jnp.float32),
                 jnp.zeros((1,), jnp.float32))
    return p


if __name__ == "__main__":
    key = jax.random.PRNGKey(0)
    k_in, k_param, k_t1, k_t2 = jax.random.split(key, 4)
    params = init_params(k_param)

    # --- self-test 1: multi-band manual-DMA path vs single-band path --------
    xt = jax.random.normal(k_t1, (1, 24, 20, 16), jnp.float32)
    wt, bt = _conv_param(k_t2, 32, 16, 3)
    ref = conv2d(xt, wt, bt, padding=1, relu=True).astype(jnp.float32)
    _BAND_BUDGET_OVERRIDE = 256 * 1024           # force nb > 1 (manual DMA path)
    forced = conv2d(xt, wt, bt, padding=1, relu=True).astype(jnp.float32)
    _BAND_BUDGET_OVERRIDE = None
    np.testing.assert_allclose(np.asarray(ref), np.asarray(forced),
                               atol=1e-2, rtol=1e-2)

    # --- self-test 2: fused MSBlock kernel vs unfused composition -----------
    xm = jax.random.normal(k_t1, (1, 10, 12, 64), jnp.float32)
    pm = params['msblock1_1']
    fused = msblock(xm, pm).astype(jnp.float32)
    o = conv2d(xm, *pm['conv'], padding=1, relu=True)
    unfused = (o.astype(jnp.float32)
               + conv2d(o, *pm['conv1'], padding=RATE, dilation=RATE,
                        relu=True, out_dtype=jnp.float32)
               + conv2d(o, *pm['conv2'], padding=2 * RATE, dilation=2 * RATE,
                        relu=True, out_dtype=jnp.float32)
               + conv2d(o, *pm['conv3'], padding=3 * RATE, dilation=3 * RATE,
                        relu=True, out_dtype=jnp.float32))
    np.testing.assert_allclose(np.asarray(fused), np.asarray(unfused),
                               atol=2e-2, rtol=2e-2)

    # --- full BDCN forward (NCHW in / list of 11 NCHW outs) -----------------
    x = jax.random.normal(k_in, (2, 3, 16, 16), jnp.float32)
    outs = jax.jit(bdcn_forward)(x, params)
    outs = jax.block_until_ready(outs)

    assert len(outs) == 11
    for o in outs:
        assert o.shape == (2, 1, 16, 16), o.shape
        assert bool(jnp.all(jnp.isfinite(o)))
    print("KERNEL_OK")
</pallas_src>

<mosaic_0001>
module attributes {stable_mosaic.version = 11 : i64} {
  func.func @_kernel_blockspec(%arg0: i32, %arg1: memref<1x594x16xbf16, #tpu.memory_space<vmem>>, %arg2: memref<144x32xbf16, #tpu.memory_space<vmem>>, %arg3: memref<1x32xf32, #tpu.memory_space<vmem>>, %arg4: memref<1x1x528x32xbf16, #tpu.memory_space<vmem>>) attributes {dimension_semantics = [#tpu.dimension_semantics<parallel>], iteration_bounds = array<i64: 1>, scalar_prefetch = 0 : i64, scratch_operands = 0 : i64, tpu.core_type = #tpu.core_type<tc>, window_params = [{transform_indices = @transform_0, window_bounds = array<i64: 1, 594, 16>}, {pipeline_mode = #tpu.pipeline_mode<synchronous>, transform_indices = @transform_1, window_bounds = array<i64: 144, 32>}, {pipeline_mode = #tpu.pipeline_mode<synchronous>, transform_indices = @transform_2, window_bounds = array<i64: 1, 32>}, {transform_indices = @transform_3, window_bounds = array<i64: 1, 1, 528, 32>}]} {
    %c0 = arith.constant 0 : index
    %c0_0 = arith.constant 0 : index
    %c0_1 = arith.constant 0 : index
    %0 = vector.load %arg1[%c0, %c0_0, %c0_1] : memref<1x594x16xbf16, #tpu.memory_space<vmem>>, vector<1x528x16xbf16>
    %1 = vector.shape_cast %0 : vector<1x528x16xbf16> to vector<528x16xbf16>
    %c0_2 = arith.constant 0 : index
    %c1 = arith.constant 1 : index
    %c0_3 = arith.constant 0 : index
    %2 = vector.load %arg1[%c0_2, %c1, %c0_3] : memref<1x594x16xbf16, #tpu.memory_space<vmem>>, vector<1x528x16xbf16>
    %3 = vector.shape_cast %2 : vector<1x528x16xbf16> to vector<528x16xbf16>
    %c0_4 = arith.constant 0 : index
    %c2 = arith.constant 2 : index
    %c0_5 = arith.constant 0 : index
    %4 = vector.load %arg1[%c0_4, %c2, %c0_5] : memref<1x594x16xbf16, #tpu.memory_space<vmem>>, vector<1x528x16xbf16>
    %5 = vector.shape_cast %4 : vector<1x528x16xbf16> to vector<528x16xbf16>
    %c0_6 = arith.constant 0 : index
    %c22 = arith.constant 22 : index
    %c0_7 = arith.constant 0 : index
    %6 = vector.load %arg1[%c0_6, %c22, %c0_7] : memref<1x594x16xbf16, #tpu.memory_space<vmem>>, vector<1x528x16xbf16>
    %7 = vector.shape_cast %6 : vector<1x528x16xbf16> to vector<528x16xbf16>
    %c0_8 = arith.constant 0 : index
    %c23 = arith.constant 23 : index
    %c0_9 = arith.constant 0 : index
    %8 = vector.load %arg1[%c0_8, %c23, %c0_9] : memref<1x594x16xbf16, #tpu.memory_space<vmem>>, vector<1x528x16xbf16>
    %9 = vector.shape_cast %8 : vector<1x528x16xbf16> to vector<528x16xbf16>
    %c0_10 = arith.constant 0 : index
    %c24 = arith.constant 24 : index
    %c0_11 = arith.constant 0 : index
    %10 = vector.load %arg1[%c0_10, %c24, %c0_11] : memref<1x594x16xbf16, #tpu.memory_space<vmem>>, vector<1x528x16xbf16>
    %11 = vector.shape_cast %10 : vector<1x528x16xbf16> to vector<528x16xbf16>
    %c0_12 = arith.constant 0 : index
    %c44 = arith.constant 44 : index
    %c0_13 = arith.constant 0 : index
    %12 = vector.load %arg1[%c0_12, %c44, %c0_13] : memref<1x594x16xbf16, #tpu.memory_space<vmem>>, vector<1x528x16xbf16>
    %13 = vector.shape_cast %12 : vector<1x528x16xbf16> to vector<528x16xbf16>
    %c0_14 = arith.constant 0 : index
    %c45 = arith.constant 45 : index
    %c0_15 = arith.constant 0 : index
    %14 = vector.load %arg1[%c0_14, %c45, %c0_15] : memref<1x594x16xbf16, #tpu.memory_space<vmem>>, vector<1x528x16xbf16>
    %15 = vector.shape_cast %14 : vector<1x528x16xbf16> to vector<528x16xbf16>
    %c0_16 = arith.constant 0 : index
    %c46 = arith.constant 46 : index
    %c0_17 = arith.constant 0 : index
    %16 = vector.load %arg1[%c0_16, %c46, %c0_17] : memref<1x594x16xbf16, #tpu.memory_space<vmem>>, vector<1x528x16xbf16>
    %17 = vector.shape_cast %16 : vector<1x528x16xbf16> to vector<528x16xbf16>
    %18 = tpu.concatenate %1, %3, %5, %7, %9, %11, %13, %15, %17 in 1 : vector<528x16xbf16>, vector<528x16xbf16>, vector<528x16xbf16>, vector<528x16xbf16>, vector<528x16xbf16>, vector<528x16xbf16>, vector<528x16xbf16>, vector<528x16xbf16>, vector<528x16xbf16> -> vector<528x144xbf16>
    %c0_18 = arith.constant 0 : index
    %c0_19 = arith.constant 0 : index
    %19 = vector.load %arg2[%c0_18, %c0_19] : memref<144x32xbf16, #tpu.memory_space<vmem>>, vector<144x32xbf16>
    %cst = arith.constant dense<0.000000e+00> : vector<528x32xf32>
    %20 = tpu.matmul %18, %19, %cst {dimension_numbers = #tpu.dot_dimension_numbers<[1], [0], [0], [1], [0, 0, 1, 1], [], []>} : vector<528x144xbf16>, vector<144x32xbf16>, vector<528x32xf32> -> vector<528x32xf32>
    %c0_20 = arith.constant 0 : index
    %c0_21 = arith.constant 0 : index
    %21 = vector.load %arg3[%c0_20, %c0_21] : memref<1x32xf32, #tpu.memory_space<vmem>>, vector<1x32xf32>
    %22 = vector.broadcast %21 : vector<1x32xf32> to vector<528x32xf32>
    %23 = arith.addf %20, %22 : vector<528x32xf32>
    %cst_22 = arith.constant 0.000000e+00 : f32
    %24 = vector.broadcast %cst_22 : f32 to vector<528x32xf32>
    %25 = arith.maximumf %23, %24 : vector<528x32xf32>
    %26 = arith.truncf %25 : vector<528x32xf32> to vector<528x32xbf16>
    %c0_23 = arith.constant 0 : index
    %c0_24 = arith.constant 0 : index
    %c0_25 = arith.constant 0 : index
    %c0_26 = arith.constant 0 : index
    %27 = vector.load %arg4[%c0_23, %c0_24, %c0_25, %c0_26] : memref<1x1x528x32xbf16, #tpu.memory_space<vmem>>, vector<1x1x528x32xbf16>
    %28 = vector.shape_cast %27 : vector<1x1x528x32xbf16> to vector<528x32xbf16>
    %29 = vector.shape_cast %26 : vector<528x32xbf16> to vector<1x1x528x32xbf16>
    tpu.vector_store %arg4[%c0_23, %c0_24, %c0_25, %c0_26], %29 {strides = array<i32>} : memref<1x1x528x32xbf16, #tpu.memory_space<vmem>>, vector<1x1x528x32xbf16>,
    return
  }
  func.func @transform_0(%arg0: i32) -> (i32, i32, i32) {
    %c0_i32 = arith.constant 0 : i32
    %c0_i32_0 = arith.constant 0 : i32
    %c0_i32_1 = arith.constant 0 : i32
    return %arg0, %c0_i32, %c0_i32_0 : i32, i32, i32
  }
  func.func @transform_1(%arg0: i32) -> (i32, i32) {
    %c0_i32 = arith.constant 0 : i32
    %c0_i32_0 = arith.constant 0 : i32
    %c0_i32_1 = arith.constant 0 : i32
    return %c0_i32, %c0_i32_0 : i32, i32
  }
  func.func @transform_2(%arg0: i32) -> (i32, i32) {
    %c0_i32 = arith.constant 0 : i32
    %c0_i32_0 = arith.constant 0 : i32
    %c0_i32_1 = arith.constant 0 : i32
    return %c0_i32, %c0_i32_0 : i32, i32
  }
  func.func @transform_3(%arg0: i32) -> (i32, i32, i32, i32) {
    %c0_i32 = arith.constant 0 : i32
    %c0_i32_0 = arith.constant 0 : i32
    %c0_i32_1 = arith.constant 0 : i32
    %c0_i32_2 = arith.constant 0 : i32
    return %arg0, %c0_i32, %c0_i32_0, %c0_i32_1 : i32, i32, i32, i32
  }
}

</mosaic_0001>

<bundles_post_ra>
// kernel: tpu_custom_call.1
= control target key start
LH: loop header
LB: loop body
LE: loop exit
PB: predicated region body
PF: predicated region fallthrough
CT: control target
= control target key end

     0   :  { %vm262_vm0 = vsmask.f32 7424  ;;  %s3548_s25 = smov 16   ;;  %vm600_vm1 = vcmask 1046528   ;;  %vm882_vm2 = vsmask.f32 4352  ;;  %s6692_s0 = inlined_call_operand.vmem [shape: bf16[1,594,16], index: 0, kind: input, shape index: {}]   ;;  %s6693_s1 = inlined_call_operand.vmem [shape: bf16[144,32], index: 1, kind: input, shape index: {}]   ;;  %s6694_s2 = inlined_call_operand.vmem [shape: f32[1,32], index: 2, kind: input, shape index: {}]   ;;  %s6695_s3 = inlined_call_operand.vmem [shape: bf16[1,1,528,32], index: 3, kind: output, shape index: {}]  }
   0x1   :  { %v3579_v0 = vld [vmem:[%s6692_s0 + $0x10] sm:$0xf]  ;;  %v3584_v1 = vld [vmem:[%s6692_s0 + $0x14] sm:$0xf]  ;;  %v3589_v2 = vld [vmem:[%s6692_s0 + $0x18] sm:$0xf] }
   0x2   :  { %v3594_v3 = vld [vmem:[%s6692_s0 + $0x1c] sm:$0xf]  ;;  %v3598_v4 = vcombine.low %v3579_v0, %v3584_v1  ;;  %v15_v5 = vld [vmem:[%s6692_s0] sm:$0xf]  ;;  %v3606_v6 = vld [vmem:[%s6692_s0 + $0x4] sm:$0xf] }
   0x3   :  { %v3610_v7 = vcombine.low %v3589_v2, %v3594_v3  ;;  %v17_v8 = vld [vmem:[%s6692_s0 + $0x8] sm:$0xf]  ;;  %v3618_v9 = vld [vmem:[%s6692_s0 + $0xc] sm:$0xf]  ;;  %v3621_v10 = vcombine.low %v15_v5, %v3606_v6  ;;  %v3626_v11 = vld [vmem:[%s6692_s0 + $0x20] sm:$0xf] }
   0x4   :  { %v6722_v12 = vshll.u32 %v3598_v4, 16  ;;  %v6723_v13 = vshrl.u32 %v3598_v4, 16  ;;  %v3631_v14 = vcombine.low %v17_v8, %v3618_v9  ;;  %v3636_v15 = vld [vmem:[%s6692_s0 + $0x24] sm:$0xf]  ;;  %v3641_v16 = vld [vmem:[%s6692_s0 + $0x28] sm:$0xf] }
   0x5   :  { %6842 = vst [vmem:[#allocation2_spill] sm:$0xff] %v3621_v10  ;;  %v6720_v17 = vshll.u32 %v3610_v7, 16  ;;  %v264_v18 = vshrl.u32 %v3621_v10, 16  ;;  %v266_v19 = vshll.u32 %v3621_v10, 16  ;;  %v3648_v20 = vcombine.low %v3626_v11, %v3636_v15  ;;  %v3653_v21 = vld [vmem:[%s6692_s0 + $0x2c] sm:$0xf] }
   0x6   :  { %v281_v22 = vrot.slane %v6722_v12, 1  ;;  %v271_v23 = vshll.u32 %v3631_v14, 16  ;;  %v6721_v24 = vshrl.u32 %v3610_v7, 16  ;;  %v275_v25 = vshrl.u32 %v3631_v14, 16  ;;  %v3663_v26 = vld [vmem:[%s6692_s0 + $0x30] sm:$0xf] }
   0x7   :  { %v289_v27 = vrot.slane %v6720_v17, 1  ;;  %v268_v28 = vrot.slane %v266_v19, 1  ;;  %v6717_v29 = vshll.u32 %v3648_v20, 16  ;;  %v3671_v30 = vld [vmem:[%s6692_s0 + $0x34] sm:$0xf]  ;;  %v3675_v31 = vcombine.low %v3641_v16, %v3653_v21  ;;  %s3549_s17 = smov 32  }
   0x8   :  { %v285_v32 = vor.u32 %v6723_v13, %v281_v22  ;;  %v273_v33 = vrot.slane %v271_v23, 1  ;;  %v3681_v34 = vcombine.low %v3663_v26, %v3671_v30  ;;  %v6719_v35 = vshrl.u32 %v3648_v20, 16  ;;  %v3687_v36 = vld [vmem:[%s6692_s0 + $0x38] sm:$0xf]  ;;  %v30_v37 = vld [vmem:[%s6692_s0 + $0x3c] sm:$0xf] }
   0x9   :  { %v269_v38 = vor.u32 %v268_v28, %v264_v18  ;;  %v293_v39 = vor.u32 %v6721_v24, %v289_v27  ;;  %v297_v40 = vrot.slane %v6717_v29, 1  ;;  %v6714_v41 = vshll.u32 %v3675_v31, 16  ;;  %v3700_v42 = vld [vmem:[%s6692_s0 + $0x40] sm:$0xf]  ;;  %v32_v43 = vld [vmem:[%s6692_s0 + $0x44] sm:$0xf] }
   0xa   :  { %6843 = vst [vmem:[#allocation3_spill] sm:$0xff] %v3681_v34  ;;  %v290_v44 = vsel %vm262_vm0, %v285_v32, %v289_v27  ;;  %v277_v45 = vor.u32 %v275_v25, %v273_v33  ;;  %v6716_v46 = vshrl.u32 %v3675_v31, 16  ;;  %v6711_v47 = vshll.u32 %v3681_v34, 16  ;;  %v33_v48 = vld [vmem:[%s6692_s0 + $0x48] sm:$0xf]  ;;  %s3550_s18 = smov 64  }
   0xb   :  { %v34_v49 = vld [vmem:[%s6692_s0 + $0x4c] sm:$0xf]  ;;  %535 = vrot.lane.b32.xlu1 %v290_v44, %s3548_s25  ;;  %v274_v50 = vsel %vm262_vm0, %v269_v38, %v273_v33  ;;  %v305_v51 = vrot.slane %v6714_v41, 1  ;;  %v301_v52 = vor.u32 %v6719_v35, %v297_v40  ;;  %v35_v53 = vld [vmem:[%s6692_s0 + $0x50] sm:$0xf]  ;;  %v298_v55 = vsel %vm262_vm0, %v293_v39, %v297_v40  ;;  %s3551_s19 = smov 48  }
   0xc   :  { %v36_v54 = vld [vmem:[%s6692_s0 + $0x54] sm:$0xf]  ;;  %531 = vrot.lane.b32.xlu0 %v274_v50, %s3548_s25  ;;  %v313_v56 = vrot.slane %v6711_v47, 1  ;;  %v3731_v57 = vcombine.low %v3687_v36, %v30_v37  ;;  %v3734_v58 = vcombine.low %v3700_v42, %v32_v43  ;;  %v37_v59 = vld [vmem:[%s6692_s0 + $0x58] sm:$0xf]  ;;  %v282_v60 = vsel %vm262_vm0, %v277_v45, %v281_v22  ;;  %s3552_s20 = smov 96  }
   0xd   :  { %v309_v61 = vor.u32 %v6716_v46, %v305_v51  ;;  %v6712_v62 = vshrl.u32 %v3681_v34, 16  ;;  %v3743_v63 = vcombine.low %v33_v48, %v34_v49  ;;  %v38_v5 = vld [vmem:[%s6692_s0 + $0x5c] sm:$0xf]  ;;  %v39_v8 = vld [vmem:[%s6692_s0 + $0x60] sm:$0xf]  ;;  %v3754_v23 = vcombine.low %v35_v53, %v36_v54  ;;  %s3553_s21 = smov 80  }
   0xe   :  { %6844 = vst [vmem:[#allocation4_spill] sm:$0xff] %v3734_v58  ;;  %v6700_v18 = vshll.u32 %v3731_v57, 16  ;;  %v6701_v19 = vshrl.u32 %v3731_v57, 16  ;;  %v6699_v22 = vshll.u32 %v3734_v58, 16  ;;  %v40_v25 = vld [vmem:[%s6692_s0 + $0x64] sm:$0xf]  ;;  %v306_v28 = vsel %vm262_vm0, %v301_v52, %v305_v51 }
   0xf   :  { %6845 = vst [vmem:[#allocation5_spill] sm:$0xff] %v3743_v63  ;;  %6846 = vst [vmem:[#allocation6_spill] sm:$0xff] %v3754_v23  ;;  %537 = vrot.lane.b32.xlu1 %v298_v55, %s3548_s25  ;;  %v314_v27 = vsel %vm262_vm0, %v309_v61, %v313_v56  ;;  %v6697_v32 = vshll.u32 %v3743_v63, 16  ;;  %v6698_v33 = vshrl.u32 %v3743_v63, 16  ;;  %v317_v39 = vor.u32 %v6712_v62, %v313_v56  ;;  %v41_v43 = vld [vmem:[%s6692_s0 + $0x68] sm:$0xf] }
  0x10   :  { %533 = vrot.lane.b32.xlu0 %v282_v60, %s3548_s25  ;;  %v321_v37 = vrot.slane %v6700_v18, 1  ;;  %v329_v38 = vrot.slane %v6699_v22, 1  ;;  %v6696_v40 = vshll.u32 %v3754_v23, 16  ;;  %v6707_v45 = vshrl.u32 %v3734_v58, 16  ;;  %v42_v50 = vld [vmem:[%s6692_s0 + $0x6c] sm:$0xf] }
  0x11   :  { %v337_v44 = vrot.slane %v6697_v32, 1  ;;  %v3778_v48 = vcombine.low %v37_v59, %v38_v5  ;;  %v3780_v49 = vcombine.low %v39_v8, %v40_v25  ;;  %v43_v51 = vld [vmem:[%s6692_s0 + $0x70] sm:$0xf]  ;;  %v44_v54 = vld [vmem:[%s6692_s0 + $0x74] sm:$0xf]  ;;  %v6706_v25 = vshrl.u32 %v3754_v23, 16 }
  0x12   :  { %v325_v52 = vor.u32 %v6701_v19, %v321_v37  ;;  %v345_v53 = vrot.slane %v6696_v40, 1  ;;  %v45_v55 = vld [vmem:[%s6692_s0 + $0x78] sm:$0xf]  ;;  %v46_v5 = vld [vmem:[%s6692_s0 + $0x7c] sm:$0xf]  ;;  %v333_v22 = vor.u32 %v6707_v45, %v329_v38  ;;  %vm745_vm3 = vcmask 1044480  }
  0x13   :  { %6847 = vst [vmem:[#allocation7_spill] sm:$0xff] %v3778_v48  ;;  %6848 = vst [vmem:[#allocation8_spill] sm:$0xff] %v3780_v49  ;;  %541 = vrot.lane.b32.xlu1 %v314_v27, %s3548_s25  ;;  %v341_v56 = vor.u32 %v6698_v33, %v337_v44  ;;  %v6704_v59 = vshll.u32 %v3778_v48, 16  ;;  %v6705_v60 = vshrl.u32 %v3778_v48, 16  ;;  %v6703_v61 = vshll.u32 %v3780_v49, 16  ;;  %s3554_s22 = smov 112  }
  0x14   :  { %539 = vrot.lane.b32.xlu0 %v306_v28, %s3548_s25  ;;  %v330_v8 = vsel %vm262_vm0, %v325_v52, %v329_v38  ;;  %v3810_v27 = vcombine.low %v41_v43, %v42_v50  ;;  %v47_v40 = vld [vmem:[%s6692_s0 + $0x80] sm:$0xf]  ;;  %v48_v32 = vld [vmem:[%s6692_s0 + $0x84] sm:$0xf]  ;;  %v322_v33 = vsel %vm262_vm0, %v317_v39, %v321_v37  ;;  %v3823_v52 = vcombine.low %v43_v51, %v44_v54  ;;  %v49_v39 = vld [vmem:[%s6692_s0 + $0x88] sm:$0xf] }
  0x15   :  { %v353_v28 = vrot.slane %v6704_v59, 1  ;;  %v3826_v50 = vcombine.low %v45_v55, %v46_v5  ;;  %v346_v18 = vsel %vm262_vm0, %v341_v56, %v345_v53  ;;  %v361_v37 = vrot.slane %v6703_v61, 1  ;;  %v50_v51 = vld [vmem:[%s6692_s0 + $0x8c] sm:$0xf]  ;;  %v3908_v47 = vld [vmem:[%s6692_s0 + $0xa8] sm:$0xf] }
  0x16   :  { %6849 = vst [vmem:[#allocation9_spill] sm:$0xff] %v3810_v27  ;;  %6850 = vst [vmem:[#allocation10_spill] sm:$0xff] %v3823_v52  ;;  %v6702_v43 = vshll.u32 %v3810_v27, 16  ;;  %v3834_v38 = vcombine.low %v47_v40, %v48_v32  ;;  %v6710_v55 = vshrl.u32 %v3810_v27, 16  ;;  %v6709_v56 = vshll.u32 %v3823_v52, 16 }
  0x17   :  { %6851 = vst [vmem:[#allocation11_spill] sm:$0xff] %v3826_v50  ;;  %545 = vrot.lane.b32.xlu1 %v330_v8, %s3548_s25  ;;  %v357_v19 = vor.u32 %v6705_v60, %v353_v28  ;;  %v6708_v32 = vshll.u32 %v3826_v50, 16  ;;  %v338_v40 = vsel %vm262_vm0, %v333_v22, %v337_v44  ;;  %v349_v5 = vor.u32 %v6706_v25, %v345_v53  ;;  %v3866_v22 = vld [vmem:[%s6692_s0 + $0x98] sm:$0xf]  ;;  %v3871_v44 = vld [vmem:[%s6692_s0 + $0x9c] sm:$0xf] }
  0x18   :  { %6852 = vst [vmem:[#allocation12_spill] sm:$0xff] %v3834_v38  ;;  %543 = vrot.lane.b32.xlu0 %v322_v33, %s3548_s25  ;;  %v369_v54 = vrot.slane %v6702_v43, 1  ;;  %v6713_v8 = vshrl.u32 %v3780_v49, 16  ;;  %v51_v33 = vld [vmem:[%s6692_s0 + $0x90] sm:$0xf]  ;;  %v6715_v61 = vshll.u32 %v3834_v38, 16  ;;  %v3861_v59 = vcombine.low %v49_v39, %v50_v51 }
  0x19   :  { %v3858_v43 = vld [vmem:[%s6692_s0 + $0x94] sm:$0xf]  ;;  %v362_v53 = vsel %vm262_vm0, %v357_v19, %v361_v37  ;;  %v385_v60 = vrot.slane %v6708_v32, 1  ;;  %v6718_v39 = vshrl.u32 %v3826_v50, 16  ;;  %v377_v25 = vrot.slane %v6709_v56, 1 }
  0x1a   :  { %v373_v51 = vor.u32 %v6710_v55, %v369_v54  ;;  %v3884_v45 = vcombine.low %v51_v33, %v3858_v43  ;;  %v3890_v19 = vld [vmem:[%s6692_s0 + $0xa0] sm:$0xf]  ;;  %v354_v32 = vsel %vm262_vm0, %v349_v5, %v353_v28  ;;  %v365_v56 = vor.u32 %v6713_v8, %v361_v37  ;;  %v3913_v62 = vld [vmem:[%s6692_s0 + $0xac] sm:$0xf]  ;;  %v3920_v37 = vld [vmem:[%s6692_s0 + $0xb0] sm:$0xf] }
  0x1b   :  { %549 = vrot.lane.b32.xlu1 %v346_v18, %s3548_s25  ;;  %v6724_v18 = vshll.u32 %v3861_v59, 16  ;;  %v6725_v33 = vshrl.u32 %v3823_v52, 16  ;;  %v3903_v55 = vcombine.low %v3866_v22, %v3871_v44  ;;  %v393_v28 = vrot.slane %v6715_v61, 1  ;;  %v3925_v5 = vld [vmem:[%s6692_s0 + $0xb4] sm:$0xf] }
  0x1c   :  { %547 = vrot.lane.b32.xlu0 %v338_v40, %s3548_s25  ;;  %v3895_v40 = vld [vmem:[%s6692_s0 + $0xa4] sm:$0xf]  ;;  %v389_v8 = vor.u32 %v6718_v39, %v385_v60  ;;  %v6733_v41 = vshrl.u32 %v3861_v59, 16  ;;  %v3939_v29 = vld [vmem:[%s6692_s0 + $0xb8] sm:$0xf]  ;;  %v3948_v17 = vcombine.low %v3908_v47, %v3913_v62  ;;  %v370_v24 = vsel %vm262_vm0, %v365_v56, %v369_v54 }
  0x1d   :  { %v3933_v61 = vcombine.low %v3890_v19, %v3895_v40  ;;  %v6726_v46 = vshll.u32 %v3903_v55, 16  ;;  %v401_v39 = vrot.slane %v6724_v18, 1  ;;  %v381_v12 = vor.u32 %v6725_v33, %v377_v25  ;;  %v3972_v56 = vld [vmem:[%s6692_s0 + $0xc0] sm:$0xf] }
  0x1e   :  { %6853 = vst [vmem:[#allocation13_spill] sm:$0xff] %v3948_v17  ;;  %v394_v18 = vsel %vm262_vm0, %v389_v8, %v393_v28  ;;  %v6855_v33 = vshll.u32 %v3884_v45, 16  ;;  %v6856_v50 = vshrl.u32 %v3834_v38, 16  ;;  %v6738_v27 = vshrl.u32 %v3884_v45, 16 }
  0x1f   :  { %553 = vrot.lane.b32.xlu1 %v362_v53, %s3548_s25  ;;  %v378_v53 = vsel %vm262_vm0, %v373_v51, %v377_v25  ;;  %v417_v35 = vrot.slane %v6726_v46, 1  ;;  %v3967_v25 = vcombine.low %v3920_v37, %v3925_v5  ;;  %v405_v8 = vor.u32 %v6733_v41, %v401_v39 }
  0x20   :  { %551 = vrot.lane.b32.xlu0 %v354_v32, %s3548_s25  ;;  %v3957_v32 = vld [vmem:[%s6692_s0 + $0xbc] sm:$0xf]  ;;  %v409_v46 = vrot.slane %v6855_v33, 1  ;;  %v386_v13 = vsel %vm262_vm0, %v381_v12, %v385_v60  ;;  %v397_v52 = vor.u32 %v6856_v50, %v393_v28  ;;  %v6858_v33 = vshll.u32 %v3933_v61, 16  ;;  %v4024_v28 = vld [vmem:[%s6692_s0 + $0xcc] sm:$0xf] }
  0x21   :  { %6854 = vst [vmem:[#allocation14_spill] sm:$0xff] %v3967_v25  ;;  %v3987_v51 = vcombine.low %v3939_v29, %v3957_v32  ;;  %v6743_v48 = vshll.u32 %v3967_v25, 16  ;;  %v6859_v60 = vshll.u32 %v3948_v17, 16  ;;  %6860 = vst [vmem:[#allocation15_spill] sm:$0xff] %v4024_v28  ;;  %v6863_v63 = vshrl.u32 %v3933_v61, 16 }
  0x22   :  { %v425_v49 = vrot.slane %v6858_v33, 1  ;;  %v410_v12 = vsel %vm262_vm0, %v405_v8, %v409_v46  ;;  %v402_v33 = vsel %vm262_vm0, %v397_v52, %v401_v39  ;;  %vm1209_vm4 = vcmask 1045504  }
  0x23   :  { %557 = vrot.lane.b32.xlu1 %v378_v53, %s3548_s25  ;;  %v3977_v53 = vld [vmem:[%s6692_s0 + $0xc4] sm:$0xf]  ;;  %v433_v50 = vrot.slane %v6859_v60, 1  ;;  %v4019_v60 = vld [vmem:[%s6692_s0 + $0xc8] sm:$0xf]  ;;  %v441_v52 = vrot.slane %v6743_v48, 1 }
  0x24   :  { %555 = vrot.lane.b32.xlu0 %v370_v24, %s3548_s25  ;;  %v6857_v24 = vshrl.u32 %v3903_v55, 16  ;;  %v6862_v38 = vshll.u32 %v3987_v51, 16  ;;  %v429_v58 = vor.u32 %v6863_v63, %v425_v49  ;;  %v6864_v63 = vshrl.u32 %v3987_v51, 16 }
  0x25   :  { %vm1346_vm5 = vsmask.f32 5376  ;;  %vm1788_vm6 = vcmask 130048   ;;  %vm1855_vm7 = vcmask 261120   ;;  %vm1922_vm8 = vcmask 392192  }
  0x26   :  { %v421_v41 = vor.u32 %v6857_v24, %v417_v35  ;;  %v83_v24 = vld [vmem:[%s6692_s0 + $0x8] sm:$0x8]  ;;  %vm1989_vm9 = vcmask 523264   ;;  %vm2056_vm10 = vcmask 654336   ;;  %vm2123_vm11 = vcmask 785408  }
  0x27   :  { %561 = vrot.lane.b32.xlu1 %v394_v18, %s3548_s25  ;;  %v4006_v18 = vcombine.low %v3972_v56, %v3977_v53  ;;  %v4034_v39 = vcombine.low %v83_v24, %v3618_v9  ;;  %v434_v24 = vsel %vm262_vm0, %v429_v58, %v433_v50  ;;  %v6866_v58 = vshrl.u32 %v3598_v4, 16 }
  0x28   :  { %559 = vrot.lane.b32.xlu0 %v386_v13, %s3548_s25  ;;  %v413_v13 = vor.u32 %v6738_v27, %v409_v46  ;;  %v426_v54 = vsel %vm262_vm0, %v421_v41, %v425_v49  ;;  %v82_v46 = vld [vmem:[%s6692_s0] sm:$0xe]  ;;  %v6861_v27 = vshrl.u32 %v3948_v17, 16  ;;  %vm2190_vm12 = vcmask 916480  }
  0x29   :  { %v6750_v23 = vshll.u32 %v4006_v18, 16  ;;  %v887_v41 = vshll.u32 %v4034_v39, 16  ;;  %vm3095_vm13 = vcmask 257024  }
  0x2a   :  { %v437_v8 = vor.u32 %v6861_v27, %v433_v50  ;;  %v418_v48 = vsel %vm262_vm0, %v413_v13, %v417_v35  ;;  %v3200_v27 = vcombine.low %v82_v46, %v3606_v6  ;;  %v6865_v6 = vshrl.u32 %v3967_v25, 16 }
  0x2b   :  { %565 = vrot.lane.b32.xlu1 %v410_v12, %s3548_s25  ;;  %v449_v12 = vrot.slane %v6862_v38, 1  ;;  %v884_v38 = vshrl.u32 %v4034_v39, 16  ;;  %v457_v13 = vrot.slane %v6750_v23, 1  ;;  %v889_v23 = vrot.slane %v887_v41, 4 }
  0x2c   :  { %563 = vrot.lane.b32.xlu0 %v402_v33, %s3548_s25  ;;  %v4049_v33 = vcombine.low %v4019_v60, %v4024_v28  ;;  %v442_v35 = vsel %vm262_vm0, %v437_v8, %v441_v52  ;;  %v445_v46 = vor.u32 %v6865_v6, %v441_v52  ;;  %v601_v8 = vrot.slane %v3200_v27, 1 }
  0x2d   :  { %v453_v49 = vor.u32 %v6864_v63, %v449_v12  ;;  %v886_v63 = vrot.slane %v884_v38, 3  ;;  %v891_v50 = vrot.slane %v6866_v58, 3  ;;  %v6867_v52 = vshll.u32 %v3598_v4, 16 }
  0x2e   :  { %v4079_v27 = vcombine.low %v3594_v3, %v3626_v11  ;;  %v450_v38 = vsel %vm262_vm0, %v445_v46, %v449_v12  ;;  %v4097_v12 = vcombine.low %v3636_v15, %v3641_v16 }
  0x2f   :  { %569 = vrot.lane.b32.xlu1 %v426_v54, %s3548_s25  ;;  %v6751_v54 = vshrl.u32 %v4006_v18, 16  ;;  %v892_v6 = vrot.slane %v6867_v52, 4  ;;  %v458_v28 = vsel %vm262_vm0, %v453_v49, %v457_v13  ;;  %v890_v3 = vor.u32 %v889_v23, %v886_v63 }
  0x30   :  { %567 = vrot.lane.b32.xlu0 %v418_v48, %s3548_s25  ;;  %v88_v48 = vld [vmem:[%s6692_s0 + $0x14] sm:$0xc]  ;;  %v1359_v52 = vshll.u32 %v4079_v27, 16  ;;  %v747_v23 = vrot.slane %v3598_v4, 3  ;;  %v1211_v63 = vrot.slane %v4079_v27, 2 }
  0x31   :  { %v3238_v10 = vcombine.low %v88_v48, %v3589_v2  ;;  %v461_v41 = vor.u32 %v6751_v54, %v457_v13  ;;  %v4093_v11 = vor.u32 %v892_v6, %v891_v50  ;;  %v1356_v48 = vshrl.u32 %v4079_v27, 16 }
  0x33   :  { %573 = vrot.lane.b32.xlu1 %v442_v35, %s3548_s25  ;;  %v6868_v35 = vshll.u32 %v4049_v33, 16  ;;  %v1348_v13 = vshrl.u32 %v3238_v10, 16  ;;  %v1351_v46 = vshll.u32 %v3238_v10, 16  ;;  %v894_v15 = vsel %vm882_vm2, %v890_v3, %v4093_v11 }
  0x34   :  { %571 = vrot.lane.b32.xlu0 %v434_v24, %s3548_s25  ;;  %v6869_v24 = vrot.slane %v3631_v14, 1  ;;  %v1210_v16 = vrot.slane %v3238_v10, 2  ;;  %v6872_v3 = vshrl.u32 %v3648_v20, 16 }
  0x35   :  { %v4087_v58 = vrot.slane %v6868_v35, 1  ;;  %v1350_v50 = vrot.slane %v1348_v13, 2  ;;  %v1353_v6 = vrot.slane %v1351_v46, 3  ;;  %v6870_v35 = vshrl.u32 %v3610_v7, 16 }
  0x36   :  { %v603_v49 = vsel %vm600_vm1, %v601_v8, %v6869_v24  ;;  %v746_v8 = vrot.slane %v4034_v39, 3  ;;  %v899_v10 = vrot.slane %v6872_v3, 3  ;;  %v3205_v13 = vcombine.low %v3618_v9, %v3579_v0 }
  0x37   :  { %577 = vrot.lane.b32.xlu1 %v458_v28, %s3548_s25  ;;  %v466_v28 = vsel %vm262_vm0, %v461_v41, %v4087_v58  ;;  %v1361_v41 = vrot.slane %v1359_v52, 3  ;;  %v895_v24 = vrot.slane %v6870_v35, 3  ;;  %v6873_v46 = vshll.u32 %v3648_v20, 16 }
  0x38   :  { %575 = vrot.lane.b32.xlu0 %v450_v38, %s3548_s25  ;;  %v1358_v38 = vrot.slane %v1356_v48, 2  ;;  %v748_v39 = vsel %vm745_vm3, %v746_v8, %v747_v23  ;;  %v1212_v52 = vsel %vm1209_vm4, %v1210_v16, %v1211_v63  ;;  %v1354_v8 = vor.u32 %v1353_v6, %v1350_v50 }
  0x39   :  { %v900_v48 = vrot.slane %v6873_v46, 4  ;;  %v4132_v0 = vcombine.low %v3653_v21, %v3663_v26  ;;  %v4136_v9 = vcombine.low %v3913_v62, %v3920_v37  ;;  %v6752_v26 = vrot.slane %v3610_v7, 3 }
  0x3a   :  { %v4128_v35 = vor.u32 %v1361_v41, %v1358_v38  ;;  %v6753_v37 = vrot.slane %v3861_v59, 1  ;;  %v6754_v50 = vrot.slane %v3884_v45, 1  ;;  %v6875_v6 = vshrl.u32 %v3884_v45, 16 }
  0x3b   :  { %668 = vrot.lane.b32.xlu1 %v603_v49, %s3549_s17  ;;  %v6871_v49 = vshll.u32 %v3610_v7, 16  ;;  %v6876_v41 = vshll.u32 %v3884_v45, 16  ;;  %v6879_v46 = vshrl.u32 %v3675_v31, 16 }
  0x3c   :  { %579 = vrot.lane.b32.xlu0 %v466_v28, %s3548_s25  ;;  %v6757_v28 = vrot.slane %v3598_v4, 1  ;;  %v1363_v62 = vsel %vm1346_vm5, %v1354_v8, %v4128_v35  ;;  %v955_v38 = vrot.slane %v6875_v6, 3  ;;  %v6880_v8 = vshll.u32 %v3675_v31, 16 }
  0x3d   :  { %v896_v54 = vrot.slane %v6871_v49, 4 }
  0x3f   :  { %1033 = vrot.lane.b32.xlu1 %v894_v15, %s3550_s18  ;;  %v897_v49 = vor.u32 %v896_v54, %v895_v24  ;;  %v901_v15 = vor.u32 %v900_v48, %v899_v10  ;;  %v6874_v54 = vrot.slane %v3631_v14, 1  ;;  %v6877_v24 = vshrl.u32 %v3903_v55, 16 }
  0x40   :  { %813 = vrot.lane.b32.xlu0 %v748_v39, %s3551_s19  ;;  %v956_v39 = vrot.slane %v6876_v41, 4  ;;  %v6878_v10 = vshll.u32 %v3903_v55, 16  ;;  %v903_v48 = vrot.slane %v6879_v46, 3  ;;  %v637_v41 = vsel %vm600_vm1, %v6753_v37, %v6754_v50 }
  0x41   :  { %v4140_v16 = vsel %vm882_vm2, %v897_v49, %v901_v15  ;;  %v605_v21 = vsel %vm600_vm1, %v6874_v54, %v6757_v28  ;;  %v959_v3 = vrot.slane %v6877_v24, 3  ;;  %v904_v54 = vrot.slane %v6880_v8, 4 }
  0x42   :  { %v6755_v24 = vrot.slane %v3884_v45, 3  ;;  %v4183_v8 = vcombine.low %v3925_v5, %v3939_v29  ;;  %v1365_v37 = vshrl.u32 %v4097_v12, 16  ;;  %v4199_v29 = vcombine.low %v3871_v44, %v3890_v19 }
  0x43   :  { %1277 = vrot.lane.b32.xlu1 %v1212_v52, %s3552_s20  ;;  %v750_v52 = vsel %vm745_vm3, %v747_v23, %v6752_v26  ;;  %v905_v23 = vor.u32 %v904_v54, %v903_v48  ;;  %v1368_v48 = vshll.u32 %v4097_v12, 16  ;;  %v3206_v44 = vcombine.low %v3584_v1, %v3589_v2 }
  0x44   :  { %1132 = vrot.lane.b32.xlu0 %v3205_v13, %s3553_s21  ;;  %v960_v13 = vrot.slane %v6878_v10, 4  ;;  %v6882_v10 = vshll.u32 %v3948_v17, 16  ;;  %6884 = vst [vmem:[#allocation17_spill] sm:$0xff] %v4199_v29  ;;  %v1213_v19 = vrot.slane %v4097_v12, 2  ;;  %v3555_v1 = vmov 0  }
  0x45   :  { %v4202_v5 = vsel %vm882_vm2, %v901_v15, %v905_v23  ;;  %v1367_v15 = vrot.slane %v1365_v37, 2  ;;  %2468 = vmatprep.subr.bf16.mxu0 %v3555_v1  ;;  %v6886_v54 = vshll.u32 %v3681_v34, 16  ;;  %3418 = vmatprep.subr.bf16.mxu1 %v3555_v1  ;;  %v4253_v28 = vcombine.low %v3957_v32, %v3972_v56 }
  0x46   :  { %v968_v46 = vrot.slane %v6882_v10, 4  ;;  %v4188_v26 = vor.u32 %v960_v13, %v959_v3  ;;  %v898_v10 = vsel %vm882_vm2, %v4093_v11, %v897_v49  ;;  %v3484_v11 = vld [vmem:[%s6693_s1] sm:$0xff]   ;;  %v6885_v3 = vshrl.u32 %v3681_v34, 16 }
  0x47   :  { %670 = vrot.lane.b32.xlu1 %v605_v21, %s3549_s17  ;;  %v6881_v21 = vshrl.u32 %v3948_v17, 16  ;;  %v1500_v13 = vshrl.u32 %v4199_v29, 16  ;;  %2469 = vmatpush1.bf16.msra.mxu0 %v3484_v11 }
  0x48   :  { %1652 = vrot.lane.b32.xlu0 %v1363_v62, %s3554_s22  ;;  %v6756_v62 = vrot.slane %v3903_v55, 3  ;;  %2470 = vmatprep.subr.bf16.mxu0 %v3555_v1 }
  0x49   :  { %v967_v6 = vrot.slane %v6881_v21, 3  ;;  %v4186_v21 = vor.u32 %v956_v39, %v955_v38  ;;  %v4211_v39 = vcombine.low %v3895_v40, %v3908_v47  ;;  %v907_v47 = vrot.slane %v6885_v3, 3  ;;  %v3485_v3 = vld [vmem:[%s6693_s1 + $0x8] sm:$0xff]   ;;  %3427 = vmatpush1.bf16.msra.mxu1 %v3484_v11 }
  0x4a   :  { %v782_v38 = vsel %vm745_vm3, %v6755_v24, %v6756_v62  ;;  %v1370_v40 = vrot.slane %v1368_v48, 3  ;;  %v6888_v48 = vshll.u32 %v3967_v25, 16  ;;  %3419 = vmatprep.subr.bf16.mxu1 %v3555_v1 }
  0x4b   :  { %815 = vrot.lane.b32.xlu1 %v750_v52, %s3551_s19  ;;  %6883 = vst [vmem:[#allocation16_spill] sm:$0xff] %v4186_v21  ;;  %v4191_v50 = vor.u32 %v968_v46, %v967_v6  ;;  %v962_v49 = vsel %vm882_vm2, %v4186_v21, %v4188_v26  ;;  %v1503_v52 = vshll.u32 %v4199_v29, 16  ;;  %v908_v6 = vrot.slane %v6886_v54, 4  ;;  %2471 = vmatpush1.bf16.msra.mxu0 %v3485_v3 }
  0x4c   :  { %702 = vrot.lane.b32.xlu0 %v637_v41, %s3549_s17  ;;  %v1509_v41 = vshrl.u32 %v4211_v39, 16  ;;  %v1512_v37 = vshll.u32 %v4211_v39, 16  ;;  %v6887_v46 = vshrl.u32 %v3967_v25, 16  ;;  %v4243_v54 = vcombine.low %v3858_v43, %v3866_v22  ;;  %2472 = vmatprep.subr.bf16.mxu0 %v3555_v1 }
  0x4d   :  { %v4245_v24 = vor.u32 %v908_v6, %v907_v47  ;;  %v1214_v43 = vsel %vm1209_vm4, %v1211_v63, %v1213_v19  ;;  %v4261_v22 = vor.u32 %v1370_v40, %v1367_v15  ;;  %v1505_v32 = vrot.slane %v1503_v52, 3  ;;  %v3487_v63 = vld [vmem:[%s6693_s1 + $0x10] sm:$0xff]   ;;  %3428 = vmatpush1.bf16.msra.mxu1 %v3485_v3  ;;  %v3489_v6 = vld [vmem:[%s6693_s1 + $0x18] sm:$0xff]  }
  0x4e   :  { %6889 = vst [vmem:[#allocation18_spill] sm:$0xff] %v4243_v54  ;;  %v1511_v56 = vrot.slane %v1509_v41, 2  ;;  %v1514_v11 = vrot.slane %v1512_v37, 3  ;;  %v606_v15 = vrot.slane %v3610_v7, 1  ;;  %3420 = vmatprep.subr.bf16.mxu1 %v3555_v1  ;;  %v93_v37 = vld [vmem:[%s6692_s0 + $0x14] sm:$0x8] }
  0x4f   :  { %1035 = vrot.lane.b32.xlu1 %v898_v10, %s3550_s18  ;;  %v971_v10 = vrot.slane %v6887_v46, 3  ;;  %v6758_v46 = vrot.slane %v4199_v29, 2  ;;  %v4265_v47 = vsel %vm882_vm2, %v905_v23, %v4245_v24  ;;  %v1372_v23 = vsel %vm1346_vm5, %v4128_v35, %v4261_v22  ;;  %2473 = vmatpush1.bf16.msra.mxu0 %v3487_v63 }
  0x50   :  { %847 = vrot.lane.b32.xlu0 %v782_v38, %s3551_s19  ;;  %v972_v38 = vrot.slane %v6888_v48, 4  ;;  %v1245_v48 = vrot.slane %v4211_v39, 2  ;;  %v4291_v52 = vor.u32 %v1514_v11, %v1511_v56  ;;  %2474 = vmatprep.subr.bf16.mxu0 %v3555_v1  ;;  %v6891_v35 = vshrl.u32 %v3987_v51, 16  ;;  %v3490_v11 = vld [vmem:[%s6693_s1 + $0x20] sm:$0xff]  }
  0x51   :  { %3429 = vmatpush1.bf16.msra.mxu1 %v3487_v63  ;;  %v6893_v3 = vrot.slane %v3598_v4, 1  ;;  %v1536_v21 = vshrl.u32 %v4253_v28, 16 }
  0x52   :  { %v973_v62 = vor.u32 %v972_v38, %v971_v10  ;;  %v1246_v40 = vsel %vm1209_vm4, %v6758_v46, %v1245_v48  ;;  %v975_v41 = vrot.slane %v6891_v35, 3  ;;  %v6892_v10 = vshll.u32 %v3987_v51, 16  ;;  %3421 = vmatprep.subr.bf16.mxu1 %v3555_v1 }
  0x53   :  { %1134 = vrot.lane.b32.xlu1 %v3206_v44, %s3553_s21  ;;  %v1502_v44 = vrot.slane %v1500_v13, 2  ;;  %2475 = vmatpush1.bf16.msra.mxu0 %v3489_v6  ;;  %v4325_v35 = vcombine.low %v3977_v53, %v4019_v60  ;;  %v6896_v53 = vshll.u32 %v3933_v61, 16  ;;  %v6763_v46 = vrot.slane %v4211_v39, 3 }
  0x54   :  { %1067 = vrot.lane.b32.xlu0 %v962_v49, %s3550_s18  ;;  %v4270_v49 = vsel %vm882_vm2, %v4191_v50, %v973_v62  ;;  %v976_v38 = vrot.slane %v6892_v10, 4  ;;  %2476 = vmatprep.subr.bf16.mxu0 %v3555_v1 }
  0x55   :  { %v4289_v13 = vor.u32 %v1505_v32, %v1502_v44  ;;  %v751_v44 = vrot.slane %v3648_v20, 3  ;;  %v6761_v32 = vrot.slane %v3903_v55, 1  ;;  %3430 = vmatpush1.bf16.msra.mxu1 %v3489_v6  ;;  %v964_v60 = vrot.slane %v6896_v53, 4 }
  0x56   :  { %v977_v63 = vor.u32 %v976_v38, %v975_v41  ;;  %3422 = vmatprep.subr.bf16.mxu1 %v3555_v1  ;;  %v1377_v53 = vshll.u32 %v4132_v0, 16 }
  0x57   :  { %1279 = vrot.lane.b32.xlu1 %v1214_v43, %s3552_s20  ;;  %6890 = vst [vmem:[#allocation19_spill] sm:$0xff] %v4289_v13  ;;  %v607_v43 = vsel %vm600_vm1, %v6893_v3, %v606_v15  ;;  %v1516_v56 = vsel %vm1346_vm5, %v4289_v13, %v4291_v52  ;;  %2477 = vmatpush1.bf16.msra.mxu0 %v3490_v11  ;;  %v6767_v13 = vrot.slane %v3948_v17, 1 }
  0x58   :  { %1166 = vrot.lane.b32.xlu0 %v4243_v54, %s3553_s21  ;;  %v4329_v10 = vsel %vm882_vm2, %v973_v62, %v977_v63  ;;  %v6897_v62 = vrot.slane %v3884_v45, 1  ;;  %2478 = vmatprep.subr.bf16.mxu0 %v3555_v1  ;;  %v6921_v54 = vld [vmem:[#allocation2_spill] sm:$0xff] }
  0x59   :  { %3431 = vmatpush1.bf16.msra.mxu1 %v3490_v11  ;;  %v3492_v11 = vld [vmem:[%s6693_s1 + $0x30] sm:$0xff]  }
  0x5a   :  { %v639_v6 = vsel %vm600_vm1, %v6897_v62, %v6761_v32  ;;  %3423 = vmatprep.subr.bf16.mxu1 %v3555_v1  ;;  %v1518_v32 = vshrl.u32 %v4136_v9, 16 }
  0x5b   :  { %1654 = vrot.lane.b32.xlu1 %v1372_v23, %s3554_s22  ;;  %v3242_v23 = vcombine.low %v93_v37, %v3589_v2  ;;  %v6894_v2 = vrot.slane %v3610_v7, 3  ;;  %v6895_v37 = vshrl.u32 %v3933_v61, 16 }
  0x5c   :  { %1311 = vrot.lane.b32.xlu0 %v1246_v40, %s3552_s20  ;;  %v6759_v40 = vrot.slane %v4079_v27, 3 }
  0x5d   :  { %v1721_v3 = vrot.slane %v3242_v23, 3  ;;  %v752_v41 = vsel %vm745_vm3, %v6894_v2, %v751_v44  ;;  %v963_v38 = vrot.slane %v6895_v37, 3  ;;  %v1374_v37 = vshrl.u32 %v4132_v0, 16 }
  0x5f   :  { %672 = vrot.lane.b32.xlu1 %v607_v43, %s3549_s17  ;;  %v6760_v43 = vrot.slane %v3933_v61, 3  ;;  %v1723_v23 = vsel %vm745_vm3, %v1721_v3, %v6759_v40  ;;  %v4358_v2 = vor.u32 %v964_v60, %v963_v38  ;;  %v6898_v3 = vrot.slane %v3903_v55, 3 }
  0x60   :  { %1686 = vrot.lane.b32.xlu0 %v1516_v56, %s3554_s22  ;;  %v3491_v56 = vld [vmem:[%s6693_s1 + $0x28] sm:$0xff]   ;;  %3253 = vmatprep.mubr.msk.bf16.mxu0 %vm1788_vm6, %v1723_v23  ;;  %v6900_v60 = vshll.u32 %v4006_v18, 16  ;;  %v6762_v23 = vrot.slane %v4199_v29, 3  ;;  %v1376_v40 = vrot.slane %v1374_v37, 2 }
  0x61   :  { %v784_v62 = vsel %vm745_vm3, %v6898_v3, %v6760_v43  ;;  %2479 = vmatpush1.bf16.msra.mxu0 %v3491_v56  ;;  %3432 = vmatpush1.bf16.msra.mxu1 %v3491_v56  ;;  %v1379_v43 = vrot.slane %v1377_v53, 3  ;;  %v3493_v56 = vld [vmem:[%s6693_s1 + $0x38] sm:$0xff]   ;;  %v1247_v53 = vrot.slane %v4136_v9, 2 }
  0x62   :  { %2480 = vmatprep.subr.bf16.mxu0 %v3555_v1  ;;  %3424 = vmatprep.subr.bf16.mxu1 %v3555_v1 }
  0x63   :  { %817 = vrot.lane.b32.xlu1 %v752_v41, %s3551_s19  ;;  %v6899_v41 = vshrl.u32 %v4006_v18, 16  ;;  %v1380_v37 = vor.u32 %v1379_v43, %v1376_v40  ;;  %v608_v40 = vrot.slane %v3648_v20, 1 }
  0x64   :  { %704 = vrot.lane.b32.xlu0 %v639_v6, %s3549_s17  ;;  %v980_v6 = vrot.slane %v6900_v60, 4  ;;  %v1215_v60 = vrot.slane %v4132_v0, 2 }
  0x65   :  { %v979_v38 = vrot.slane %v6899_v41, 3  ;;  %v966_v41 = vsel %vm882_vm2, %v4188_v26, %v4358_v2  ;;  %2481 = vmatpush1.bf16.msra.mxu0 %v3492_v11  ;;  %v1757_v26 = vsel %vm745_vm3, %v6762_v23, %v6763_v46  ;;  %3433 = vmatpush1.bf16.msra.mxu1 %v3492_v11  ;;  %v3495_v11 = vld [vmem:[%s6693_s1 + $0x40] sm:$0xff]   ;;  %v610_v23 = vrot.slane %v3675_v31, 1 }
  0x66   :  { %2482 = vmatprep.subr.bf16.mxu0 %v3555_v1  ;;  %3270 = vmatprep.mubr.msk.bf16.mxu1 %vm1788_vm6, %v1757_v26 }
  0x67   :  { %1037 = vrot.lane.b32.xlu1 %v4140_v16, %s3550_s18  ;;  %v4379_v3 = vor.u32 %v980_v6, %v979_v38  ;;  %v1521_v16 = vshll.u32 %v4136_v9, 16  ;;  %3425 = vmatprep.subr.bf16.mxu1 %v3555_v1  ;;  %v1520_v38 = vrot.slane %v1518_v32, 2  ;;  %v1248_v32 = vsel %vm1209_vm4, %v1245_v48, %v1247_v53 }
  0x68   :  { %849 = vrot.lane.b32.xlu0 %v784_v62, %s3551_s19 }
  0x69   :  { %v4395_v62 = vsel %vm882_vm2, %v977_v63, %v4379_v3  ;;  %v1216_v63 = vsel %vm1209_vm4, %v1213_v19, %v1215_v60  ;;  %v1523_v6 = vrot.slane %v1521_v16, 3  ;;  %2483 = vmatpush1.bf16.msra.mxu0 %v3493_v56  ;;  %3434 = vmatpush1.bf16.msra.mxu1 %v3493_v56  ;;  %v1381_v19 = vsel %vm1346_vm5, %v4261_v22, %v1380_v37 }
  0x6a   :  { %2484 = vmatprep.subr.bf16.mxu0 %v3555_v1  ;;  %3426 = vmatprep.subr.bf16.mxu1 %v3555_v1  ;;  %v753_v22 = vrot.slane %v3675_v31, 3  ;;  %v640_v16 = vrot.slane %v3933_v61, 1  ;;  %v4444_v56 = vcombine.low %v3671_v30, %v3687_v36 }
  0x6b   :  { %1136 = vrot.lane.b32.xlu1 %v4079_v27, %s3553_s21  ;;  %v1524_v43 = vor.u32 %v1523_v6, %v1520_v38 }
  0x6c   :  { %1069 = vrot.lane.b32.xlu0 %v966_v41, %s3550_s18  ;;  %v609_v41 = vsel %vm600_vm1, %v606_v15, %v608_v40  ;;  %v754_v48 = vsel %vm745_vm3, %v751_v44, %v753_v22  ;;  %v6901_v15 = vrot.slane %v3903_v55, 1  ;;  %v1386_v38 = vshll.u32 %v4444_v56, 16 }
  0x6d   :  { %2485 = vmatpush1.bf16.msra.mxu0 %v3495_v11  ;;  %3435 = vmatpush1.bf16.msra.mxu1 %v3495_v11  ;;  %v1525_v1 = vsel %vm1346_vm5, %v4291_v52, %v1524_v43  ;;  %v785_v52 = vrot.slane %v3948_v17, 3  ;;  %v6902_v44 = vrot.slane %v3933_v61, 3  ;;  %v1217_v11 = vrot.slane %v4444_v56, 2 }
  0x6e   :  { %v641_v26 = vsel %vm600_vm1, %v6901_v15, %v640_v16  ;;  %v1530_v15 = vshll.u32 %v4183_v8, 16 }
  0x6f   :  { %1281 = vrot.lane.b32.xlu1 %v1216_v63, %s3552_s20  ;;  %v1383_v63 = vshrl.u32 %v4444_v56, 16  ;;  %v786_v30 = vsel %vm745_vm3, %v6902_v44, %v785_v52 }
  0x70   :  { %1168 = vrot.lane.b32.xlu0 %v4199_v29, %s3553_s21  ;;  %v1532_v44 = vrot.slane %v1530_v15, 3  ;;  %v755_v15 = vrot.slane %v3681_v34, 3 }
  0x73   :  { %1656 = vrot.lane.b32.xlu1 %v1381_v19, %s3554_s22  ;;  %v1385_v19 = vrot.slane %v1383_v63, 2 }
  0x74   :  { %1313 = vrot.lane.b32.xlu0 %v1248_v32, %s3552_s20  ;;  %v1388_v32 = vrot.slane %v1386_v38, 3 }
  0x76   :  { %v1389_v63 = vor.u32 %v1388_v32, %v1385_v19 }
  0x77   :  { %674 = vrot.lane.b32.xlu1 %v609_v41, %s3549_s17 }
  0x78   :  { %1688 = vrot.lane.b32.xlu0 %v1525_v1, %s3554_s22  ;;  %v970_v1 = vsel %vm882_vm2, %v4358_v2, %v4191_v50  ;;  %v1249_v50 = vrot.slane %v4183_v8, 2 }
  0x7b   :  { %819 = vrot.lane.b32.xlu1 %v754_v48, %s3551_s19  ;;  %v1527_v48 = vshrl.u32 %v4183_v8, 16 }
  0x7c   :  { %706 = vrot.lane.b32.xlu0 %v641_v26, %s3549_s17 }
  0x7d   :  { %v4454_v6 = vpop.permute.xlu1 %535  ;;  %v1529_v2 = vrot.slane %v1527_v48, 2  ;;  %v611_v48 = vsel %vm600_vm1, %v608_v40, %v610_v23  ;;  %v3526_v40 = vld [vmem:[%s6692_s0 + $0x3c] sm:$0xf] }
  0x7e   :  { %v4459_v36 = vpop.permute.xlu0 %531 }
  0x7f   :  { %1039 = vrot.lane.b32.xlu1 %v4202_v5, %s3550_s18  ;;  %v1218_v5 = vsel %vm1209_vm4, %v1215_v60, %v1217_v11  ;;  %v1250_v60 = vsel %vm1209_vm4, %v1247_v53, %v1249_v50  ;;  %v1533_v19 = vor.u32 %v1532_v44, %v1529_v2  ;;  %v756_v53 = vsel %vm745_vm3, %v753_v22, %v755_v15 }
  0x80   :  { %851 = vrot.lane.b32.xlu0 %v786_v30, %s3551_s19  ;;  %v4512_v2 = vcombine.low %v3526_v40, %v3700_v42 }
  0x81   :  { %v4465_v41 = vpop.permute.xlu1 %537 }
  0x82   :  { %v4472_v26 = vpop.permute.xlu0 %533  ;;  %v1392_v22 = vshrl.u32 %v4512_v2, 16 }
  0x83   :  { %1138 = vrot.lane.b32.xlu1 %v4097_v12, %s3553_s21 }
  0x84   :  { %1071 = vrot.lane.b32.xlu0 %v970_v1, %s3550_s18  ;;  %v1390_v1 = vsel %vm1346_vm5, %v1380_v37, %v1389_v63  ;;  %v1534_v37 = vsel %vm1346_vm5, %v1524_v43, %v1533_v19  ;;  %v643_v43 = vsel %vm600_vm1, %v640_v16, %v6767_v13  ;;  %v6770_v16 = vrot.slane %v4512_v2, 2 }
  0x85   :  { %v4480_v38 = vpop.permute.xlu1 %541 }
  0x86   :  { %v4483_v30 = vpop.permute.xlu0 %539 }
  0x87   :  { %1283 = vrot.lane.b32.xlu1 %v1218_v5, %s3552_s20 }
  0x88   :  { %1170 = vrot.lane.b32.xlu0 %v4211_v39, %s3553_s21 }
  0x89   :  { %v4490_v46 = vpop.permute.xlu1 %545 }
  0x8a   :  { %6903 = vst [vmem:[#allocation20_spill] sm:$0xff] %v4490_v46  ;;  %v4493_v32 = vpop.permute.xlu0 %543  ;;  %v1792_v46 = vsel %vm1788_vm6, %v3631_v14, %v4472_v26 }
  0x8b   :  { %6904 = vst [vmem:[#allocation21_spill] sm:$0xff] %v4493_v32  ;;  %1658 = vrot.lane.b32.xlu1 %v1390_v1, %s3554_s22  ;;  %v6769_v1 = vrot.slane %v3967_v25, 3 }
  0x8c   :  { %1315 = vrot.lane.b32.xlu0 %v1250_v60, %s3552_s20 }
  0x8d   :  { %v4499_v5 = vpop.permute.xlu1 %549 }
  0x8e   :  { %6905 = vst [vmem:[#allocation22_spill] sm:$0xff] %v4499_v5  ;;  %v4503_v29 = vpop.permute.xlu0 %547 }
  0x8f   :  { %6906 = vst [vmem:[#allocation23_spill] sm:$0xff] %v4503_v29  ;;  %676 = vrot.lane.b32.xlu1 %v611_v48, %s3549_s17  ;;  %v1395_v48 = vshll.u32 %v4512_v2, 16  ;;  %v1545_v29 = vshrl.u32 %v4325_v35, 16 }
  0x90   :  { %1690 = vrot.lane.b32.xlu0 %v1534_v37, %s3554_s22  ;;  %v788_v37 = vsel %vm745_vm3, %v785_v52, %v6769_v1 }
  0x91   :  { %v4514_v44 = vpop.permute.xlu1 %553 }
  0x92   :  { %6907 = vst [vmem:[#allocation24_spill] sm:$0xff] %v4514_v44  ;;  %v4520_v60 = vpop.permute.xlu0 %551 }
  0x93   :  { %6908 = vst [vmem:[#allocation25_spill] sm:$0xff] %v4520_v60  ;;  %821 = vrot.lane.b32.xlu1 %v756_v53, %s3551_s19  ;;  %v1394_v53 = vrot.slane %v1392_v22, 2  ;;  %v1790_v60 = vsel %vm1788_vm6, %v6921_v54, %v4459_v36  ;;  %v6922_v54 = vrot.slane %v4512_v2, 2 }
  0x94   :  { %708 = vrot.lane.b32.xlu0 %v643_v43, %s3549_s17  ;;  %v1397_v43 = vrot.slane %v1395_v48, 3  ;;  %v6772_v48 = vrot.slane %v4253_v28, 2 }
  0x95   :  { %v4526_v42 = vpop.permute.xlu1 %557 }
  0x96   :  { %6909 = vst [vmem:[#allocation26_spill] sm:$0xff] %v4526_v42  ;;  %v4531_v40 = vpop.permute.xlu0 %555  ;;  %v1539_v42 = vshll.u32 %v4253_v28, 16  ;;  %v4550_v52 = vor.u32 %v1397_v43, %v1394_v53  ;;  %v1252_v43 = vsel %vm1209_vm4, %v1249_v50, %v6772_v48 }
  0x97   :  { %6910 = vst [vmem:[#allocation27_spill] sm:$0xff] %v4531_v40  ;;  %1041 = vrot.lane.b32.xlu1 %v4265_v47, %s3550_s18  ;;  %v1220_v47 = vsel %vm1209_vm4, %v1217_v11, %v6770_v16  ;;  %v6771_v11 = vrot.slane %v3681_v34, 1  ;;  %v6914_v16 = vshrl.u32 %v3731_v57, 16 }
  0x98   :  { %853 = vrot.lane.b32.xlu0 %v788_v37, %s3551_s19  ;;  %v1538_v37 = vrot.slane %v1536_v21, 2  ;;  %v1541_v1 = vrot.slane %v1539_v42, 3 }
  0x99   :  { %v4537_v13 = vpop.permute.xlu1 %561 }
  0x9a   :  { %6911 = vst [vmem:[#allocation28_spill] sm:$0xff] %v4537_v13  ;;  %v4541_v44 = vpop.permute.xlu0 %559  ;;  %v4568_v21 = vor.u32 %v1541_v1, %v1538_v37 }
  0x9b   :  { %6912 = vst [vmem:[#allocation29_spill] sm:$0xff] %v4541_v44  ;;  %1140 = vrot.lane.b32.xlu1 %v4132_v0, %s3553_s21  ;;  %v6915_v44 = vshll.u32 %v3731_v57, 16 }
  0x9c   :  { %1073 = vrot.lane.b32.xlu0 %v4270_v49, %s3550_s18  ;;  %v1399_v49 = vsel %vm1346_vm5, %v1389_v63, %v4550_v52  ;;  %v613_v63 = vsel %vm600_vm1, %v610_v23, %v6771_v11  ;;  %v1543_v37 = vsel %vm1346_vm5, %v1533_v19, %v4568_v21  ;;  %v3528_v19 = vld [vmem:[%s6692_s0 + $0x48] sm:$0xf] }
  0x9d   :  { %v4552_v22 = vpop.permute.xlu1 %565  ;;  %v912_v50 = vrot.slane %v6915_v44, 4  ;;  %v3527_v44 = vld [vmem:[%s6692_s0 + $0x44] sm:$0xf] }
  0x9e   :  { %v4555_v13 = vpop.permute.xlu0 %563  ;;  %v4602_v11 = vcombine.low %v3527_v44, %v3528_v19 }
  0x9f   :  { %6913 = vst [vmem:[#allocation30_spill] sm:$0xff] %v4555_v13  ;;  %1285 = vrot.lane.b32.xlu1 %v1220_v47, %s3552_s20  ;;  %v6773_v47 = vrot.slane %v3731_v57, 3  ;;  %v911_v13 = vrot.slane %v6914_v16, 3 }
  0xa0   :  { %1172 = vrot.lane.b32.xlu0 %v4136_v9, %s3553_s21  ;;  %v1401_v44 = vshrl.u32 %v4602_v11, 16  ;;  %v1404_v19 = vshll.u32 %v4602_v11, 16  ;;  %v6934_v26 = vrot.slane %v4602_v11, 2 }
  0xa1   :  { %v4563_v53 = vpop.permute.xlu1 %569  ;;  %v758_v23 = vsel %vm745_vm3, %v755_v15, %v6773_v47  ;;  %v4594_v16 = vor.u32 %v912_v50, %v911_v13  ;;  %v6777_v13 = vrot.slane %v3987_v51, 3 }
  0xa2   :  { %v4570_v42 = vpop.permute.xlu0 %567 }
  0xa3   :  { %1660 = vrot.lane.b32.xlu1 %v1399_v49, %s3554_s22  ;;  %v6774_v49 = vrot.slane %v3967_v25, 1 }
  0xa4   :  { %1317 = vrot.lane.b32.xlu0 %v1252_v43, %s3552_s20 }
  0xa5   :  { %v4582_v1 = vpop.permute.xlu1 %573 }
  0xa6   :  { %v4587_v43 = vpop.permute.xlu0 %571 }
  0xa7   :  { %678 = vrot.lane.b32.xlu1 %v613_v63, %s3549_s17  ;;  %v6917_v63 = vrot.slane %v3948_v17, 1 }
  0xa8   :  { %1692 = vrot.lane.b32.xlu0 %v1543_v37, %s3554_s22  ;;  %v914_v37 = vsel %vm882_vm2, %v4245_v24, %v4594_v16  ;;  %v6783_v24 = vrot.slane %v4602_v11, 2 }
  0xa9   :  { %v4604_v48 = vpop.permute.xlu1 %577  ;;  %v645_v15 = vsel %vm600_vm1, %v6917_v63, %v6774_v49  ;;  %v6919_v63 = vrot.slane %v3967_v25, 3 }
  0xaa   :  { %6916 = vst [vmem:[#allocation31_spill] sm:$0xff] %v4604_v48  ;;  %v4612_v50 = vpop.permute.xlu0 %575  ;;  %v1222_v36 = vsel %vm1209_vm4, %v6922_v54, %v6783_v24  ;;  %v6782_v48 = vrot.slane %v4097_v12, 3  ;;  %v6932_v24 = vrot.slane %v3987_v51, 3 }
  0xab   :  { %6918 = vst [vmem:[#allocation32_spill] sm:$0xff] %v4612_v50  ;;  %823 = vrot.lane.b32.xlu1 %v758_v23, %s3551_s19  ;;  %v790_v49 = vsel %vm745_vm3, %v6919_v63, %v6777_v13  ;;  %v1403_v23 = vrot.slane %v1401_v44, 2  ;;  %v1548_v63 = vshll.u32 %v4325_v35, 16 }
  0xac   :  { %710 = vrot.lane.b32.xlu0 %v645_v15, %s3549_s17  ;;  %v1406_v15 = vrot.slane %v1404_v19, 3 }
  0xad   :  { %v669_v47 = vpop.permute.xlu1 %668 }
  0xae   :  { %v4626_v40 = vpop.permute.xlu0 %579  ;;  %v1857_v13 = vsel %vm1855_vm7, %v1790_v60, %v669_v47  ;;  %v6778_v47 = vrot.slane %v4325_v35, 2 }
  0xaf   :  { %6920 = vst [vmem:[#allocation33_spill] sm:$0xff] %v4626_v40  ;;  %1043 = vrot.lane.b32.xlu1 %v914_v37, %s3550_s18 }
  0xb0   :  { %855 = vrot.lane.b32.xlu0 %v790_v49, %s3551_s19  ;;  %v4647_v49 = vor.u32 %v1406_v15, %v1403_v23 }
  0xb1   :  { %v1034_v5 = vpop.permute.xlu1 %1033 }
  0xb2   :  { %v814_v40 = vpop.permute.xlu0 %813  ;;  %v1408_v23 = vsel %vm1346_vm5, %v4550_v52, %v4647_v49 }
  0xb3   :  { %v1924_v37 = vsel %vm1922_vm8, %v1857_v13, %v814_v40  ;;  %1142 = vrot.lane.b32.xlu1 %v4444_v56, %s3553_s21  ;;  %v1547_v40 = vrot.slane %v1545_v29, 2  ;;  %v1550_v13 = vrot.slane %v1548_v63, 3  ;;  %v6779_v29 = vrot.slane %v3731_v57, 1 }
  0xb4   :  { %1075 = vrot.lane.b32.xlu0 %v4329_v10, %s3550_s18  ;;  %v1991_v44 = vsel %vm1989_vm9, %v1924_v37, %v1034_v5  ;;  %v6923_v5 = vrot.slane %v4253_v28, 2 }
  0xb5   :  { %v1278_v60 = vpop.permute.xlu1 %1277  ;;  %v4665_v37 = vor.u32 %v1550_v13, %v1547_v40  ;;  %v6925_v40 = vrot.slane %v3681_v34, 1 }
  0xb6   :  { %v1133_v19 = vpop.permute.xlu0 %1132  ;;  %v1254_v63 = vsel %vm1209_vm4, %v6923_v5, %v6778_v47 }
  0xb7   :  { %v2058_v10 = vsel %vm2056_vm10, %v1991_v44, %v1133_v19  ;;  %1287 = vrot.lane.b32.xlu1 %v1222_v36, %s3552_s20  ;;  %v6924_v44 = vrot.slane %v4079_v27, 3  ;;  %v615_v13 = vsel %vm600_vm1, %v6925_v40, %v6779_v29 }
  0xb8   :  { %1174 = vrot.lane.b32.xlu0 %v4183_v8, %s3553_s21  ;;  %v2125_v36 = vsel %vm2123_vm11, %v2058_v10, %v1278_v60  ;;  %v6926_v60 = vld [vmem:[#allocation4_spill] sm:$0xff] }
  0xb9   :  { %v671_v15 = vpop.permute.xlu1 %670  ;;  %v1725_v52 = vsel %vm745_vm3, %v6924_v44, %v6782_v48  ;;  %v6781_v10 = vrot.slane %v6926_v60, 3  ;;  %v6927_v5 = vshrl.u32 %v6926_v60, 16  ;;  %v6928_v44 = vshll.u32 %v6926_v60, 16 }
  0xba   :  { %v1653_v54 = vpop.permute.xlu0 %1652  ;;  %v1859_v34 = vsel %vm1855_vm7, %v1792_v46, %v671_v15 }
  0xbb   :  { %1662 = vrot.lane.b32.xlu1 %v1408_v23, %s3554_s22  ;;  %v2192_v19 = vsel %vm2190_vm12, %v2125_v36, %v1653_v54  ;;  %v915_v27 = vrot.slane %v6927_v5, 3  ;;  %v916_v47 = vrot.slane %v6928_v44, 4  ;;  %v6780_v54 = vrot.slane %v3987_v51, 1 }
  0xbc   :  { %1319 = vrot.lane.b32.xlu0 %v1254_v63, %s3552_s20  ;;  %2501 = vmatmul.mubr.bf16.vlgmr.msra.gmra.mrb[0].mxu0 %v2192_v19  ;;  %v1552_v63 = vsel %vm1346_vm5, %v4568_v21, %v4665_v37  ;;  %v6929_v19 = vrot.slane %v3731_v57, 3  ;;  %v3529_v21 = vld [vmem:[%s6692_s0 + $0x4c] sm:$0xf] }
  0xbd   :  { %v816_v23 = vpop.permute.xlu1 %815  ;;  %3254 = vmatprep.mubr.msk.bf16.mxu0 %vm1788_vm6, %v1725_v52  ;;  %v4698_v5 = vor.u32 %v916_v47, %v915_v27  ;;  %v3530_v52 = vld [vmem:[%s6692_s0 + $0x50] sm:$0xf]  ;;  %v6786_v47 = vrot.slane %v4006_v18, 3 }
  0xbe   :  { %v703_v36 = vpop.permute.xlu0 %702  ;;  %v760_v40 = vsel %vm745_vm3, %v6929_v19, %v6781_v10  ;;  %v4706_v44 = vcombine.low %v3529_v21, %v3530_v52  ;;  %v4717_v27 = vld [vmem:[%s6692_s0 + $0xd0] sm:$0xf] }
  0xbf   :  { %680 = vrot.lane.b32.xlu1 %v615_v13, %s3549_s17  ;;  %v918_v21 = vsel %vm882_vm2, %v4594_v16, %v4698_v5 }
  0xc0   :  { %1694 = vrot.lane.b32.xlu0 %v1552_v63, %s3554_s22  ;;  %v6930_v63 = vrot.slane %v3967_v25, 1  ;;  %v1410_v52 = vshrl.u32 %v4706_v44, 16  ;;  %v6933_v14 = vrot.slane %v4706_v44, 2 }
  0xc1   :  { %v1036_v13 = vpop.permute.xlu1 %1035 }
  0xc2   :  { %v647_v29 = vsel %vm600_vm1, %v6930_v63, %v6780_v54  ;;  %v848_v19 = vpop.permute.xlu0 %847  ;;  %v1413_v63 = vshll.u32 %v4706_v44, 16  ;;  %v6931_v54 = vld [vmem:[#allocation15_spill] sm:$0xff] }
  0xc3   :  { %825 = vrot.lane.b32.xlu1 %v760_v40, %s3551_s19  ;;  %v4728_v10 = vcombine.low %v6931_v54, %v4717_v27  ;;  %v792_v40 = vsel %vm745_vm3, %v6932_v24, %v6786_v47  ;;  %v1412_v54 = vrot.slane %v1410_v52, 2  ;;  %v6794_v47 = vrot.slane %v4132_v0, 3 }
  0xc4   :  { %712 = vrot.lane.b32.xlu0 %v647_v29, %s3549_s17  ;;  %v1415_v25 = vrot.slane %v1413_v63, 3  ;;  %v1224_v52 = vsel %vm1209_vm4, %v6934_v26, %v6933_v14 }
  0xc5   :  { %v1135_v48 = vpop.permute.xlu1 %1134  ;;  %v1554_v50 = vshrl.u32 %v4728_v10, 16  ;;  %v1557_v24 = vshll.u32 %v4728_v10, 16 }
  0xc6   :  { %v1068_v29 = vpop.permute.xlu0 %1067  ;;  %v4757_v15 = vor.u32 %v1415_v25, %v1412_v54 }
  0xc7   :  { %1045 = vrot.lane.b32.xlu1 %v918_v21, %s3550_s18  ;;  %v1926_v21 = vsel %vm1922_vm8, %v1859_v34, %v816_v23  ;;  %v6793_v34 = vrot.slane %v4728_v10, 2  ;;  %v1556_v23 = vrot.slane %v1554_v50, 2  ;;  %v6792_v50 = vrot.slane %v4136_v9, 3 }
  0xc8   :  { %857 = vrot.lane.b32.xlu0 %v792_v40, %s3551_s19  ;;  %v1993_v17 = vsel %vm1989_vm9, %v1926_v21, %v1036_v13  ;;  %v1824_v13 = vsel %vm1788_vm6, %v3861_v59, %v4552_v22  ;;  %v1559_v21 = vrot.slane %v1557_v24, 3  ;;  %v6791_v22 = vrot.slane %v6926_v60, 1 }
  0xc9   :  { %v1280_v32 = vpop.permute.xlu1 %1279  ;;  %v2060_v46 = vsel %vm2056_vm10, %v1993_v17, %v1135_v48  ;;  %v6935_v17 = vrot.slane %v4097_v12, 3  ;;  %v1891_v25 = vsel %vm1855_vm7, %v1824_v13, %v703_v36  ;;  %v1417_v12 = vsel %vm1346_vm5, %v4647_v49, %v4757_v15 }
  0xca   :  { %v1167_v16 = vpop.permute.xlu0 %1166  ;;  %v2127_v63 = vsel %vm2123_vm11, %v2060_v46, %v1280_v32  ;;  %v1958_v14 = vsel %vm1922_vm8, %v1891_v25, %v848_v19  ;;  %v6936_v19 = vrot.slane %v4325_v35, 2  ;;  %v4788_v26 = vor.u32 %v1559_v21, %v1556_v23 }
  0xcb   :  { %1144 = vrot.lane.b32.xlu1 %v4512_v2, %s3553_s21  ;;  %v1727_v48 = vsel %vm745_vm3, %v6935_v17, %v6794_v47  ;;  %v2025_v32 = vsel %vm1989_vm9, %v1958_v14, %v1068_v29  ;;  %v6937_v49 = vrot.slane %v4211_v39, 3  ;;  %v6938_v23 = vrot.slane %v3731_v57, 1 }
  0xcc   :  { %1077 = vrot.lane.b32.xlu0 %v4395_v62, %s3550_s18  ;;  %v2092_v36 = vsel %vm2056_vm10, %v2025_v32, %v1167_v16  ;;  %v1256_v29 = vsel %vm1209_vm4, %v6936_v19, %v6793_v34  ;;  %v6789_v14 = vrot.slane %v4006_v18, 1  ;;  %v6788_v32 = vshrl.u32 %v4049_v33, 16 }
  0xcd   :  { %v1655_v40 = vpop.permute.xlu1 %1654  ;;  %v1759_v13 = vsel %vm745_vm3, %v6937_v49, %v6792_v50  ;;  %v68_v49 = vld [vmem:[%s6692_s0 + $0xd4] sm:$0xf] }
  0xce   :  { %v1312_v62 = vpop.permute.xlu0 %1311  ;;  %v2195_v54 = vsel %vm2190_vm12, %v2127_v63, %v1655_v40  ;;  %v617_v63 = vsel %vm600_vm1, %v6938_v23, %v6791_v22  ;;  %v6939_v40 = vld [vmem:[#allocation5_spill] sm:$0xff] }
  0xcf   :  { %1289 = vrot.lane.b32.xlu1 %v1224_v52, %s3552_s20  ;;  %2509 = vmatmul.mubr.bf16.gmra.mrb[4].mxu0 %v2195_v54  ;;  %v2159_v52 = vsel %vm2123_vm11, %v2092_v36, %v1312_v62  ;;  %v6790_v21 = vrot.slane %v6939_v40, 3  ;;  %v6940_v17 = vshrl.u32 %v6939_v40, 16  ;;  %v1561_v54 = vsel %vm1346_vm5, %v4665_v37, %v4788_v26  ;;  %v3531_v37 = vld [vmem:[%s6692_s0 + $0x54] sm:$0xf] }
  0xd0   :  { %1176 = vrot.lane.b32.xlu0 %v4253_v28, %s3553_s21  ;;  %3255 = vmatprep.mubr.msk.bf16.mxu0 %vm1788_vm6, %v1727_v48  ;;  %v6941_v48 = vshll.u32 %v6939_v40, 16  ;;  %v6942_v36 = vrot.slane %v6926_v60, 3 }
  0xd1   :  { %v673_v24 = vpop.permute.xlu1 %672  ;;  %v919_v39 = vrot.slane %v6940_v17, 3  ;;  %v983_v17 = vrot.slane %v6788_v32, 3  ;;  %v6945_v32 = vrot.slane %v4006_v18, 3 }
  0xd2   :  { %v1687_v46 = vpop.permute.xlu0 %1686  ;;  %v920_v25 = vrot.slane %v6941_v48, 4  ;;  %v762_v19 = vsel %vm745_vm3, %v6942_v36, %v6790_v21  ;;  %v1794_v21 = vsel %vm1788_vm6, %v3598_v4, %v4454_v6 }
  0xd3   :  { %1664 = vrot.lane.b32.xlu1 %v1417_v12, %s3554_s22  ;;  %v2243_v16 = vsel %vm2190_vm12, %v2159_v52, %v1687_v46  ;;  %v3532_v52 = vld [vmem:[%s6692_s0 + $0x58] sm:$0xf]  ;;  %v1861_v47 = vsel %vm1855_vm7, %v1794_v21, %v673_v24 }
  0xd4   :  { %1321 = vrot.lane.b32.xlu0 %v1256_v29, %s3552_s20  ;;  %2637 = vmatmul.mubr.bf16.vlgmr.msra.gmra.mrb[0].mxu1 %v2243_v16  ;;  %v4822_v29 = vor.u32 %v920_v25, %v919_v39  ;;  %v4830_v46 = vcombine.low %v3531_v37, %v3532_v52  ;;  %v6943_v16 = vrot.slane %v3987_v51, 1  ;;  %v6944_v39 = vshll.u32 %v4049_v33, 16  ;;  %v4848_v25 = vld [vmem:[%s6692_s0 + $0xd8] sm:$0xf] }
  0xd5   :  { %v818_v62 = vpop.permute.xlu1 %817  ;;  %3271 = vmatprep.mubr.msk.bf16.mxu1 %vm1788_vm6, %v1759_v13 }
  0xd6   :  { %v705_v12 = vpop.permute.xlu0 %704  ;;  %v649_v23 = vsel %vm600_vm1, %v6943_v16, %v6789_v14  ;;  %v984_v48 = vrot.slane %v6944_v39, 4  ;;  %v922_v36 = vsel %vm882_vm2, %v4698_v5, %v4822_v29  ;;  %v1419_v37 = vshrl.u32 %v4830_v46, 16 }
  0xd7   :  { %682 = vrot.lane.b32.xlu1 %v617_v63, %s3549_s17  ;;  %v6795_v63 = vrot.slane %v4049_v33, 3  ;;  %v1422_v52 = vshll.u32 %v4830_v46, 16  ;;  %v4858_v16 = vcombine.low %v68_v49, %v4848_v25  ;;  %v1225_v5 = vrot.slane %v4830_v46, 2 }
  0xd8   :  { %1696 = vrot.lane.b32.xlu0 %v1561_v54, %s3554_s22  ;;  %v4865_v14 = vor.u32 %v984_v48, %v983_v17  ;;  %v1421_v22 = vrot.slane %v1419_v37, 2 }
  0xd9   :  { %v1038_v13 = vpop.permute.xlu1 %1037  ;;  %v1424_v50 = vrot.slane %v1422_v52, 3  ;;  %v1563_v34 = vshrl.u32 %v4858_v16, 16  ;;  %v1566_v48 = vshll.u32 %v4858_v16, 16  ;;  %v6801_v37 = vrot.slane %v4858_v16, 2 }
  0xda   :  { %v850_v54 = vpop.permute.xlu0 %849  ;;  %v986_v17 = vsel %vm882_vm2, %v4379_v3, %v4865_v14  ;;  %v6946_v3 = vrot.slane %v4706_v44, 2 }
  0xdb   :  { %827 = vrot.lane.b32.xlu1 %v762_v19, %s3551_s19  ;;  %v794_v19 = vsel %vm745_vm3, %v6945_v32, %v6795_v63  ;;  %v1928_v63 = vsel %vm1922_vm8, %v1861_v47, %v818_v62  ;;  %v4892_v52 = vor.u32 %v1424_v50, %v1421_v22  ;;  %v1565_v47 = vrot.slane %v1563_v34, 2 }
  0xdc   :  { %714 = vrot.lane.b32.xlu0 %v649_v23, %s3549_s17  ;;  %v1995_v6 = vsel %vm1989_vm9, %v1928_v63, %v1038_v13  ;;  %v1226_v21 = vsel %vm1209_vm4, %v6946_v3, %v1225_v5  ;;  %v1826_v62 = vsel %vm1788_vm6, %v3884_v45, %v4570_v42  ;;  %v6800_v34 = vrot.slane %v4183_v8, 3 }
  0xdd   :  { %v1137_v39 = vpop.permute.xlu1 %1136 }
  0xde   :  { %v1070_v23 = vpop.permute.xlu0 %1069  ;;  %v2062_v24 = vsel %vm2056_vm10, %v1995_v6, %v1137_v39  ;;  %v6947_v39 = vrot.slane %v4132_v0, 3  ;;  %v1893_v6 = vsel %vm1855_vm7, %v1826_v62, %v705_v12  ;;  %v1426_v0 = vsel %vm1346_vm5, %v4757_v15, %v4892_v52 }
  0xdf   :  { %1047 = vrot.lane.b32.xlu1 %v922_v36, %s3550_s18  ;;  %v6803_v36 = vrot.slane %v4444_v56, 3  ;;  %v1960_v22 = vsel %vm1922_vm8, %v1893_v6, %v850_v54  ;;  %v6798_v12 = vrot.slane %v6939_v40, 1  ;;  %v6948_v54 = vrot.slane %v4728_v10, 2 }
  0xe0   :  { %859 = vrot.lane.b32.xlu0 %v794_v19, %s3551_s19  ;;  %v1568_v19 = vrot.slane %v1566_v48, 3  ;;  %v2027_v42 = vsel %vm1989_vm9, %v1960_v22, %v1070_v23  ;;  %v6799_v22 = vrot.slane %v4049_v33, 1 }
  0xe1   :  { %v1282_v32 = vpop.permute.xlu1 %1281  ;;  %v1258_v23 = vsel %vm1209_vm4, %v6948_v54, %v6801_v37  ;;  %v3533_v54 = vld [vmem:[%s6692_s0 + $0x5c] sm:$0xf] }
  0xe2   :  { %v1169_v4 = vpop.permute.xlu0 %1168  ;;  %v2129_v13 = vsel %vm2123_vm11, %v2062_v24, %v1282_v32  ;;  %v4922_v24 = vor.u32 %v1568_v19, %v1565_v47  ;;  %v6951_v47 = vld [vmem:[#allocation6_spill] sm:$0xff] }
  0xe3   :  { %1146 = vrot.lane.b32.xlu1 %v4602_v11, %s3553_s21  ;;  %v2094_v32 = vsel %vm2056_vm10, %v2027_v42, %v1169_v4  ;;  %v6797_v19 = vrot.slane %v6951_v47, 3 }
  0xe4   :  { %1079 = vrot.lane.b32.xlu0 %v986_v17, %s3550_s18  ;;  %v1729_v17 = vsel %vm745_vm3, %v6947_v39, %v6803_v36  ;;  %v6952_v39 = vshrl.u32 %v6951_v47, 16 }
  0xe5   :  { %v1657_v63 = vpop.permute.xlu1 %1656 }
  0xe6   :  { %v1314_v3 = vpop.permute.xlu0 %1313  ;;  %v2198_v50 = vsel %vm2190_vm12, %v2129_v13, %v1657_v63  ;;  %v6949_v13 = vrot.slane %v4136_v9, 3  ;;  %v923_v9 = vrot.slane %v6952_v39, 3 }
  0xe7   :  { %1291 = vrot.lane.b32.xlu1 %v1226_v21, %s3552_s20  ;;  %2517 = vmatmul.mubr.bf16.gmra.mrb[8].mxu0 %v2198_v50  ;;  %v4925_v21 = vcombine.low %v4717_v27, %v68_v49  ;;  %v2161_v15 = vsel %vm2123_vm11, %v2094_v32, %v1314_v3  ;;  %v6950_v27 = vrot.slane %v6926_v60, 1  ;;  %v1570_v50 = vsel %vm1346_vm5, %v4788_v26, %v4922_v24 }
  0xe8   :  { %1178 = vrot.lane.b32.xlu0 %v4325_v35, %s3553_s21  ;;  %3256 = vmatprep.mubr.msk.bf16.mxu0 %vm1788_vm6, %v1729_v17  ;;  %v1761_v4 = vsel %vm745_vm3, %v6949_v13, %v6800_v34  ;;  %v6953_v17 = vshll.u32 %v6951_v47, 16 }
  0xe9   :  { %v675_v48 = vpop.permute.xlu1 %674  ;;  %v619_v49 = vsel %vm600_vm1, %v6950_v27, %v6798_v12  ;;  %v6802_v42 = vshll.u32 %v4925_v21, 16  ;;  %v6955_v27 = vrot.slane %v4006_v18, 1 }
  0xea   :  { %v1689_v62 = vpop.permute.xlu0 %1688  ;;  %v924_v6 = vrot.slane %v6953_v17, 4 }
  0xeb   :  { %1666 = vrot.lane.b32.xlu1 %v1426_v0, %s3554_s22  ;;  %v2246_v63 = vsel %vm2190_vm12, %v2161_v15, %v1689_v62  ;;  %v6796_v0 = vshrl.u32 %v4925_v21, 16  ;;  %v6954_v15 = vrot.slane %v6939_v40, 3  ;;  %v988_v17 = vrot.slane %v6802_v42, 4 }
  0xec   :  { %1323 = vrot.lane.b32.xlu0 %v1258_v23, %s3552_s20  ;;  %2645 = vmatmul.mubr.bf16.gmra.mrb[4].mxu1 %v2246_v63  ;;  %v3534_v23 = vld [vmem:[%s6692_s0 + $0x60] sm:$0xf]  ;;  %v4968_v13 = vor.u32 %v924_v6, %v923_v9  ;;  %v70_v9 = vld [vmem:[%s6692_s0 + $0xdc] sm:$0xf] }
  0xed   :  { %v820_v3 = vpop.permute.xlu1 %819  ;;  %3272 = vmatprep.mubr.msk.bf16.mxu1 %vm1788_vm6, %v1761_v4  ;;  %v4960_v26 = vcombine.low %v3533_v54, %v3534_v23  ;;  %v764_v62 = vsel %vm745_vm3, %v6954_v15, %v6797_v19  ;;  %v795_v4 = vrot.slane %v4925_v21, 3  ;;  %v987_v39 = vrot.slane %v6796_v0, 3  ;;  %v4986_v6 = vld [vmem:[%s6692_s0 + $0xe0] sm:$0xf] }
  0xee   :  { %v707_v32 = vpop.permute.xlu0 %706  ;;  %v926_v15 = vsel %vm882_vm2, %v4822_v29, %v4968_v13  ;;  %v6956_v19 = vrot.slane %v4049_v33, 3  ;;  %v1796_v29 = vsel %vm1788_vm6, %v3610_v7, %v4465_v41 }
  0xef   :  { %684 = vrot.lane.b32.xlu1 %v619_v49, %s3549_s17  ;;  %v651_v49 = vsel %vm600_vm1, %v6955_v27, %v6799_v22  ;;  %v1428_v54 = vshrl.u32 %v4960_v26, 16  ;;  %v1431_v23 = vshll.u32 %v4960_v26, 16  ;;  %v4996_v27 = vcombine.low %v70_v9, %v4986_v6 }
  0xf0   :  { %1698 = vrot.lane.b32.xlu0 %v1570_v50, %s3554_s22  ;;  %v5003_v12 = vor.u32 %v988_v17, %v987_v39  ;;  %v1227_v37 = vrot.slane %v4960_v26, 2  ;;  %v1863_v36 = vsel %vm1855_vm7, %v1796_v29, %v675_v48 }
  0xf1   :  { %v1040_v63 = vpop.permute.xlu1 %1039  ;;  %v1433_v34 = vrot.slane %v1431_v23, 3  ;;  %v1572_v42 = vshrl.u32 %v4996_v27, 16  ;;  %v1575_v17 = vshll.u32 %v4996_v27, 16  ;;  %v1930_v23 = vsel %vm1922_vm8, %v1863_v36, %v820_v3 }
  0xf2   :  { %v852_v50 = vpop.permute.xlu0 %851  ;;  %v990_v39 = vsel %vm882_vm2, %v4865_v14, %v5003_v12  ;;  %v1997_v41 = vsel %vm1989_vm9, %v1930_v23, %v1040_v63  ;;  %v1228_v14 = vsel %vm1209_vm4, %v1225_v5, %v1227_v37  ;;  %v1259_v36 = vrot.slane %v4996_v27, 2 }
  0xf3   :  { %829 = vrot.lane.b32.xlu1 %v764_v62, %s3551_s19  ;;  %v796_v62 = vsel %vm745_vm3, %v6956_v19, %v795_v4  ;;  %v1574_v3 = vrot.slane %v1572_v42, 2  ;;  %v1828_v63 = vsel %vm1788_vm6, %v3903_v55, %v4563_v53  ;;  %v6810_v42 = vrot.slane %v4253_v28, 3 }
  0xf4   :  { %716 = vrot.lane.b32.xlu0 %v651_v49, %s3549_s17  ;;  %v1430_v49 = vrot.slane %v1428_v54, 2  ;;  %v1730_v54 = vrot.slane %v4512_v2, 3  ;;  %v6958_v53 = vshrl.u32 %v4049_v33, 16 }
  0xf5   :  { %v1139_v0 = vpop.permute.xlu1 %1138 }
  0xf6   :  { %v1072_v22 = vpop.permute.xlu0 %1071  ;;  %v2064_v48 = vsel %vm2056_vm10, %v1997_v41, %v1139_v0  ;;  %v6957_v0 = vrot.slane %v4444_v56, 3 }
  0xf7   :  { %1049 = vrot.lane.b32.xlu1 %v926_v15, %s3550_s18  ;;  %v5022_v15 = vor.u32 %v1433_v34, %v1430_v49  ;;  %v1577_v49 = vrot.slane %v1575_v17, 3 }
  0xf8   :  { %861 = vrot.lane.b32.xlu0 %v796_v62, %s3551_s19  ;;  %v1731_v29 = vsel %vm745_vm3, %v6957_v0, %v1730_v54 }
  0xf9   :  { %v1284_v19 = vpop.permute.xlu1 %1283  ;;  %v1435_v55 = vsel %vm1346_vm5, %v4892_v52, %v5022_v15 }
  0xfa   :  { %v1171_v7 = vpop.permute.xlu0 %1170  ;;  %v2131_v34 = vsel %vm2123_vm11, %v2064_v48, %v1284_v19  ;;  %v6959_v19 = vshll.u32 %v4925_v21, 16 }
  0xfb   :  { %1148 = vrot.lane.b32.xlu1 %v4706_v44, %s3553_s21 }
  0xfc   :  { %1081 = vrot.lane.b32.xlu0 %v990_v39, %s3550_s18  ;;  %v1895_v39 = vsel %vm1855_vm7, %v1828_v63, %v707_v32  ;;  %v469_v32 = vor.u32 %v6958_v53, %v4087_v58  ;;  %v5057_v17 = vrot.slane %v6959_v19, 1  ;;  %v5069_v63 = vor.u32 %v1577_v49, %v1574_v3 }
  0xfd   :  { %v1659_v62 = vpop.permute.xlu1 %1658  ;;  %v1962_v41 = vsel %vm1922_vm8, %v1895_v39, %v852_v50  ;;  %v5060_v50 = vcombine.low %v4848_v25, %v70_v9  ;;  %v6961_v25 = vrot.slane %v4183_v8, 3  ;;  %v6808_v39 = vrot.slane %v6951_v47, 1 }
  0xfe   :  { %v1316_v5 = vpop.permute.xlu0 %1315  ;;  %v2201_v23 = vsel %vm2190_vm12, %v2131_v34, %v1659_v62  ;;  %v2029_v56 = vsel %vm1989_vm9, %v1962_v41, %v1072_v22  ;;  %v6960_v22 = vrot.slane %v4858_v16, 2  ;;  %v6806_v62 = vrot.slane %v4925_v21, 1 }
  0xff   :  { %1293 = vrot.lane.b32.xlu1 %v1228_v14, %s3552_s20  ;;  %2525 = vmatmul.mubr.bf16.gmra.mrb[12].mxu0 %v2201_v23  ;;  %v2096_v52 = vsel %vm2056_vm10, %v2029_v56, %v1171_v7  ;;  %v1763_v9 = vsel %vm745_vm3, %v6961_v25, %v6810_v42  ;;  %v474_v3 = vsel %vm262_vm0, %v469_v32, %v5057_v17  ;;  %v6809_v49 = vshll.u32 %v5060_v50, 16  ;;  %v6963_v56 = vld [vmem:[#allocation7_spill] sm:$0xff] }
 0x100   :  { %1180 = vrot.lane.b32.xlu0 %v4728_v10, %s3553_s21  ;;  %3257 = vmatprep.mubr.msk.bf16.mxu0 %vm1788_vm6, %v1731_v29  ;;  %v1260_v14 = vsel %vm1209_vm4, %v6960_v22, %v1259_v36  ;;  %v2163_v58 = vsel %vm2123_vm11, %v2096_v52, %v1316_v5  ;;  %v6804_v0 = vshrl.u32 %v5060_v50, 16  ;;  %v1579_v8 = vsel %vm1346_vm5, %v4922_v24, %v5069_v63 }
 0x101   :  { %v677_v48 = vpop.permute.xlu1 %676  ;;  %v6962_v23 = vrot.slane %v4049_v33, 1  ;;  %v6807_v53 = vrot.slane %v6963_v56, 3  ;;  %v992_v32 = vrot.slane %v6809_v49, 4  ;;  %v6964_v52 = vrot.slane %v6939_v40, 1 }
 0x102   :  { %v1691_v34 = vpop.permute.xlu0 %1690  ;;  %v991_v24 = vrot.slane %v6804_v0, 3 }
 0x103   :  { %1668 = vrot.lane.b32.xlu1 %v1435_v55, %s3554_s22  ;;  %v2249_v7 = vsel %vm2190_vm12, %v2163_v58, %v1691_v34  ;;  %v653_v41 = vsel %vm600_vm1, %v6962_v23, %v6806_v62  ;;  %v6805_v55 = vrot.slane %v5060_v50, 3  ;;  %v621_v22 = vsel %vm600_vm1, %v6964_v52, %v6808_v39 }
 0x104   :  { %1325 = vrot.lane.b32.xlu0 %v1260_v14, %s3552_s20  ;;  %2653 = vmatmul.mubr.bf16.gmra.mrb[8].mxu1 %v2249_v7  ;;  %v6965_v14 = vshrl.u32 %v6963_v56, 16  ;;  %v6966_v34 = vshll.u32 %v6963_v56, 16  ;;  %v5120_v7 = vld [vmem:[%s6692_s0 + $0xe8] sm:$0xf]  ;;  %v5129_v23 = vor.u32 %v992_v32, %v991_v24 }
 0x105   :  { %v822_v29 = vpop.permute.xlu1 %821  ;;  %3273 = vmatprep.mubr.msk.bf16.mxu1 %vm1788_vm6, %v1763_v9  ;;  %v5115_v9 = vld [vmem:[%s6692_s0 + $0xe4] sm:$0xf] }
 0x106   :  { %v709_v5 = vpop.permute.xlu0 %708  ;;  %v927_v58 = vrot.slane %v6965_v14, 3  ;;  %v928_v25 = vrot.slane %v6966_v34, 4  ;;  %v5133_v52 = vcombine.low %v5115_v9, %v5120_v7  ;;  %v3535_v14 = vld [vmem:[%s6692_s0 + $0x64] sm:$0xf] }
 0x107   :  { %581 = vrot.lane.b32.xlu1 %v474_v3, %s3548_s25 }
 0x108   :  { %1700 = vrot.lane.b32.xlu0 %v1579_v8, %s3554_s22  ;;  %v798_v8 = vsel %vm745_vm3, %v795_v4, %v6805_v55  ;;  %v6967_v4 = vrot.slane %v6951_v47, 3  ;;  %v5148_v32 = vor.u32 %v928_v25, %v927_v58  ;;  %v1798_v55 = vsel %vm1788_vm6, %v3648_v20, %v4483_v30 }
 0x109   :  { %v1042_v19 = vpop.permute.xlu1 %1041  ;;  %v1584_v62 = vshll.u32 %v5133_v52, 16  ;;  %v1865_v25 = vsel %vm1855_vm7, %v1798_v55, %v677_v48  ;;  %v1261_v39 = vrot.slane %v5133_v52, 2 }
 0x10a   :  { %v854_v3 = vpop.permute.xlu0 %853  ;;  %v766_v24 = vsel %vm745_vm3, %v6967_v4, %v6807_v53  ;;  %v930_v20 = vsel %vm882_vm2, %v4968_v13, %v5148_v32 }
 0x10b   :  { %718 = vrot.lane.b32.xlu1 %v653_v41, %s3549_s17  ;;  %v3536_v41 = vld [vmem:[%s6692_s0 + $0x68] sm:$0xf]  ;;  %v1586_v49 = vrot.slane %v1584_v62, 3  ;;  %v1262_v2 = vsel %vm1209_vm4, %v1259_v36, %v1261_v39  ;;  %v6968_v36 = vrot.slane %v4253_v28, 3 }
 0x10c   :  { %686 = vrot.lane.b32.xlu0 %v621_v22, %s3549_s17  ;;  %v5141_v22 = vcombine.low %v3535_v14, %v3536_v41  ;;  %v994_v14 = vsel %vm882_vm2, %v5003_v12, %v5129_v23  ;;  %v1581_v41 = vshrl.u32 %v5133_v52, 16 }
 0x10d   :  { %v1141_v34 = vpop.permute.xlu1 %1140 }
 0x10e   :  { %v1074_v0 = vpop.permute.xlu0 %1073  ;;  %v1437_v58 = vshrl.u32 %v5141_v22, 16  ;;  %v1440_v30 = vshll.u32 %v5141_v22, 16  ;;  %v1229_v48 = vrot.slane %v5141_v22, 2  ;;  %v1583_v13 = vrot.slane %v1581_v41, 2 }
 0x10f   :  { %863 = vrot.lane.b32.xlu1 %v798_v8, %s3551_s19  ;;  %v1732_v8 = vrot.slane %v4602_v11, 3  ;;  %v1764_v41 = vrot.slane %v4325_v35, 3  ;;  %v6979_v35 = vshrl.u32 %v5060_v50, 16 }
 0x110   :  { %831 = vrot.lane.b32.xlu0 %v766_v24, %s3551_s19  ;;  %v1932_v24 = vsel %vm1922_vm8, %v1865_v25, %v822_v29  ;;  %v1439_v42 = vrot.slane %v1437_v58, 2  ;;  %v1830_v29 = vsel %vm1788_vm6, %v3933_v61, %v4587_v43  ;;  %v5197_v43 = vor.u32 %v1586_v49, %v1583_v13 }
 0x111   :  { %v1286_v4 = vpop.permute.xlu1 %1285  ;;  %v1999_v53 = vsel %vm1989_vm9, %v1932_v24, %v1042_v19  ;;  %v1442_v24 = vrot.slane %v1440_v30, 3  ;;  %v1765_v49 = vsel %vm745_vm3, %v6968_v36, %v1764_v41  ;;  %v6969_v13 = vshrl.u32 %v4925_v21, 16 }
 0x112   :  { %v1173_v12 = vpop.permute.xlu0 %1172  ;;  %v2066_v55 = vsel %vm2056_vm10, %v1999_v53, %v1141_v34  ;;  %v1897_v53 = vsel %vm1855_vm7, %v1830_v29, %v709_v5  ;;  %v6975_v36 = vrot.slane %v6963_v56, 3 }
 0x113   :  { %1083 = vrot.lane.b32.xlu1 %v994_v14, %s3550_s18  ;;  %v2133_v25 = vsel %vm2123_vm11, %v2066_v55, %v1286_v4  ;;  %v1733_v14 = vsel %vm745_vm3, %v1730_v54, %v1732_v8  ;;  %v1964_v58 = vsel %vm1922_vm8, %v1897_v53, %v854_v3  ;;  %v5206_v3 = vor.u32 %v1442_v24, %v1439_v42  ;;  %v6972_v24 = vld [vmem:[#allocation8_spill] sm:$0xff] }
 0x114   :  { %1051 = vrot.lane.b32.xlu0 %v930_v20, %s3550_s18  ;;  %v2031_v61 = vsel %vm1989_vm9, %v1964_v58, %v1074_v0  ;;  %v1230_v0 = vsel %vm1209_vm4, %v1227_v37, %v1229_v48  ;;  %v1588_v37 = vsel %vm1346_vm5, %v5069_v63, %v5197_v43  ;;  %v6814_v42 = vrot.slane %v6963_v56, 1 }
 0x115   :  { %v1661_v19 = vpop.permute.xlu1 %1660  ;;  %v2098_v54 = vsel %vm2056_vm10, %v2031_v61, %v1173_v12  ;;  %v5218_v12 = vcombine.low %v4986_v6, %v5115_v9  ;;  %v1444_v55 = vsel %vm1346_vm5, %v5022_v15, %v5206_v3  ;;  %v477_v29 = vor.u32 %v6969_v13, %v5057_v17 }
 0x116   :  { %v1318_v34 = vpop.permute.xlu0 %1317  ;;  %v2204_v62 = vsel %vm2190_vm12, %v2133_v25, %v1661_v19  ;;  %v6970_v6 = vshll.u32 %v5060_v50, 16  ;;  %v6971_v15 = vrot.slane %v6951_v47, 1  ;;  %v6973_v53 = vshrl.u32 %v6972_v24, 16 }
 0x117   :  { %1182 = vrot.lane.b32.xlu1 %v4858_v16, %s3553_s21  ;;  %2533 = vmatmul.mubr.bf16.gmra.mrb[16].mxu0 %v2204_v62  ;;  %v2165_v4 = vsel %vm2123_vm11, %v2098_v54, %v1318_v34  ;;  %v487_v63 = vshll.u32 %v5218_v12, 16  ;;  %v6811_v19 = vshrl.u32 %v5218_v12, 16  ;;  %v6974_v62 = vshll.u32 %v6972_v24, 16 }
 0x118   :  { %1150 = vrot.lane.b32.xlu0 %v4830_v46, %s3553_s21  ;;  %3258 = vmatprep.mubr.msk.bf16.mxu0 %vm1788_vm6, %v1733_v14  ;;  %v5233_v9 = vrot.slane %v6970_v6, 1  ;;  %v623_v17 = vsel %vm600_vm1, %v6971_v15, %v6814_v42  ;;  %v6812_v14 = vrot.slane %v6972_v24, 3  ;;  %v931_v34 = vrot.slane %v6973_v53, 3 }
 0x119   :  { %v679_v5 = vpop.permute.xlu1 %678  ;;  %v932_v58 = vrot.slane %v6974_v62, 4  ;;  %v6815_v54 = vrot.slane %v5060_v50, 1  ;;  %v6976_v6 = vrot.slane %v4925_v21, 1  ;;  %v5286_v62 = vld [vmem:[%s6692_s0 + $0xf0] sm:$0xf] }
 0x11a   :  { %v1693_v20 = vpop.permute.xlu0 %1692 }
 0x11b   :  { %1327 = vrot.lane.b32.xlu1 %v1262_v2, %s3552_s20  ;;  %v2252_v30 = vsel %vm2190_vm12, %v2165_v4, %v1693_v20  ;;  %v482_v2 = vsel %vm262_vm0, %v477_v29, %v5233_v9  ;;  %v995_v4 = vrot.slane %v6811_v19, 3  ;;  %v996_v20 = vrot.slane %v487_v63, 4 }
 0x11c   :  { %1295 = vrot.lane.b32.xlu0 %v1230_v0, %s3552_s20  ;;  %2661 = vmatmul.mubr.bf16.gmra.mrb[12].mxu1 %v2252_v30  ;;  %v5264_v30 = vor.u32 %v932_v58, %v931_v34  ;;  %v655_v15 = vsel %vm600_vm1, %v6976_v6, %v6815_v54  ;;  %v74_v34 = vld [vmem:[%s6692_s0 + $0xec] sm:$0xf] }
 0x11d   :  { %v824_v28 = vpop.permute.xlu1 %823  ;;  %3274 = vmatprep.mubr.msk.bf16.mxu1 %vm1788_vm6, %v1765_v49  ;;  %v768_v49 = vsel %vm745_vm3, %v6975_v36, %v6812_v14  ;;  %v5289_v58 = vor.u32 %v996_v20, %v995_v4  ;;  %v6977_v4 = vrot.slane %v5060_v50, 3 }
 0x11e   :  { %v711_v25 = vpop.permute.xlu0 %710  ;;  %v934_v36 = vsel %vm882_vm2, %v5148_v32, %v5264_v30 }
 0x11f   :  { %1702 = vrot.lane.b32.xlu1 %v1588_v37, %s3554_s22  ;;  %v3537_v37 = vld [vmem:[%s6692_s0 + $0x6c] sm:$0xf] }
 0x120   :  { %1670 = vrot.lane.b32.xlu0 %v1444_v55, %s3554_s22  ;;  %v3538_v55 = vld [vmem:[%s6692_s0 + $0x70] sm:$0xf] }
 0x121   :  { %v1044_v61 = vpop.permute.xlu1 %1043  ;;  %v5272_v13 = vcombine.low %v3537_v37, %v3538_v55 }
 0x122   :  { %v856_v0 = vpop.permute.xlu0 %855 }
 0x123   :  { %688 = vrot.lane.b32.xlu1 %v623_v17, %s3549_s17  ;;  %v6813_v17 = vrot.slane %v5218_v12, 3  ;;  %v1446_v37 = vshrl.u32 %v5272_v13, 16  ;;  %v1449_v55 = vshll.u32 %v5272_v13, 16 }
 0x124   :  { %583 = vrot.lane.b32.xlu0 %v482_v2, %s3548_s25  ;;  %v1800_v2 = vsel %vm1788_vm6, %v3675_v31, %v4480_v38  ;;  %v5307_v31 = vcombine.low %v74_v34, %v5286_v62  ;;  %v1734_v38 = vrot.slane %v4706_v44, 3 }
 0x125   :  { %v1143_v29 = vpop.permute.xlu1 %1142  ;;  %v1867_v6 = vsel %vm1855_vm7, %v1800_v2, %v679_v5  ;;  %v800_v20 = vsel %vm745_vm3, %v6977_v4, %v6813_v17  ;;  %v998_v2 = vsel %vm882_vm2, %v5129_v23, %v5289_v58  ;;  %v1231_v17 = vrot.slane %v5272_v13, 2 }
 0x126   :  { %v1076_v53 = vpop.permute.xlu0 %1075  ;;  %v1934_v32 = vsel %vm1922_vm8, %v1867_v6, %v824_v28  ;;  %v1448_v28 = vrot.slane %v1446_v37, 2  ;;  %v1451_v6 = vrot.slane %v1449_v55, 3  ;;  %v1735_v23 = vsel %vm745_vm3, %v1732_v8, %v1734_v38 }
 0x127   :  { %833 = vrot.lane.b32.xlu1 %v768_v49, %s3551_s19  ;;  %v2001_v5 = vsel %vm1989_vm9, %v1934_v32, %v1044_v61  ;;  %v1593_v61 = vshll.u32 %v5307_v31, 16  ;;  %v1766_v37 = vrot.slane %v4728_v10, 3  ;;  %v1232_v11 = vsel %vm1209_vm4, %v1229_v48, %v1231_v17 }
 0x128   :  { %720 = vrot.lane.b32.xlu0 %v655_v15, %s3549_s17  ;;  %v6978_v15 = vld [vmem:[#allocation13_spill] sm:$0xff]  ;;  %v2068_v4 = vsel %vm2056_vm10, %v2001_v5, %v1143_v29  ;;  %v5343_v8 = vor.u32 %v1451_v6, %v1448_v28  ;;  %v6818_v6 = vrot.slane %v5218_v12, 1 }
 0x129   :  { %v1288_v19 = vpop.permute.xlu1 %1287  ;;  %v1832_v14 = vsel %vm1788_vm6, %v6978_v15, %v4582_v1  ;;  %v1590_v1 = vshrl.u32 %v5307_v31, 16  ;;  %v1767_v48 = vsel %vm745_vm3, %v1764_v41, %v1766_v37  ;;  %v5369_v41 = vrot.slane %v487_v63, 1 }
 0x12a   :  { %v1175_v49 = vpop.permute.xlu0 %1174  ;;  %v2135_v42 = vsel %vm2123_vm11, %v2068_v4, %v1288_v19  ;;  %v1899_v29 = vsel %vm1855_vm7, %v1832_v14, %v711_v25  ;;  %v1263_v14 = vrot.slane %v5307_v31, 2  ;;  %v1453_v5 = vsel %vm1346_vm5, %v5206_v3, %v5343_v8 }
 0x12b   :  { %1053 = vrot.lane.b32.xlu1 %v934_v36, %s3550_s18  ;;  %v1966_v19 = vsel %vm1922_vm8, %v1899_v29, %v856_v0  ;;  %v1595_v0 = vrot.slane %v1593_v61, 3  ;;  %v624_v61 = vrot.slane %v6972_v24, 1 }
 0x12c   :  { %865 = vrot.lane.b32.xlu0 %v800_v20, %s3551_s19  ;;  %v2033_v55 = vsel %vm1989_vm9, %v1966_v19, %v1076_v53 }
 0x12d   :  { %v1663_v54 = vpop.permute.xlu1 %1662 }
 0x12e   :  { %v1320_v36 = vpop.permute.xlu0 %1319  ;;  %v2207_v20 = vsel %vm2190_vm12, %v2135_v42, %v1663_v54  ;;  %v2100_v42 = vsel %vm2056_vm10, %v2033_v55, %v1175_v49  ;;  %v1592_v54 = vrot.slane %v1590_v1, 2  ;;  %v5357_v49 = vcombine.low %v5120_v7, %v74_v34  ;;  %v6981_v55 = vld [vmem:[#allocation9_spill] sm:$0xff] }
 0x12f   :  { %1152 = vrot.lane.b32.xlu1 %v4960_v26, %s3553_s21  ;;  %2541 = vmatmul.mubr.bf16.gmra.mrb[20].mxu0 %v2207_v20  ;;  %v2167_v53 = vsel %vm2123_vm11, %v2100_v42, %v1320_v36  ;;  %v1264_v7 = vsel %vm1209_vm4, %v1261_v39, %v1263_v14  ;;  %v6980_v20 = vrot.slane %v5060_v50, 1 }
 0x130   :  { %1085 = vrot.lane.b32.xlu0 %v998_v2, %s3550_s18  ;;  %3259 = vmatprep.mubr.msk.bf16.mxu0 %vm1788_vm6, %v1735_v23  ;;  %v485_v2 = vor.u32 %v6979_v35, %v5233_v9  ;;  %v5376_v34 = vor.u32 %v1595_v0, %v1592_v54  ;;  %v495_v9 = vshll.u32 %v5357_v49, 16  ;;  %v6816_v28 = vshrl.u32 %v5357_v49, 16  ;;  %v5420_v35 = vld [vmem:[%s6692_s0 + $0xf8] sm:$0xf] }
 0x131   :  { %v681_v25 = vpop.permute.xlu1 %680  ;;  %v657_v19 = vsel %vm600_vm1, %v6980_v20, %v6818_v6  ;;  %v6983_v54 = vshll.u32 %v6981_v55, 16 }
 0x132   :  { %v1695_v32 = vpop.permute.xlu0 %1694  ;;  %v490_v63 = vsel %vm262_vm0, %v485_v2, %v5369_v41  ;;  %v1597_v39 = vsel %vm1346_vm5, %v5197_v43, %v5376_v34  ;;  %v999_v29 = vrot.slane %v6816_v28, 3  ;;  %v1000_v36 = vrot.slane %v495_v9, 4 }
 0x133   :  { %1297 = vrot.lane.b32.xlu1 %v1232_v11, %s3552_s20  ;;  %v2255_v15 = vsel %vm2190_vm12, %v2167_v53, %v1695_v32  ;;  %v6817_v43 = vrot.slane %v5357_v49, 3  ;;  %v6982_v11 = vshrl.u32 %v6981_v55, 16  ;;  %v936_v0 = vrot.slane %v6983_v54, 4 }
 0x134   :  { %1184 = vrot.lane.b32.xlu0 %v4996_v27, %s3553_s21  ;;  %2669 = vmatmul.mubr.bf16.gmra.mrb[16].mxu1 %v2255_v15  ;;  %v6984_v32 = vrot.slane %v6963_v56, 1  ;;  %v6819_v15 = vrot.slane %v6981_v55, 3 }
 0x135   :  { %v826_v4 = vpop.permute.xlu1 %825  ;;  %3275 = vmatprep.mubr.msk.bf16.mxu1 %vm1788_vm6, %v1767_v48  ;;  %v935_v42 = vrot.slane %v6982_v11, 3  ;;  %v6987_v11 = vrot.slane %v5218_v12, 3 }
 0x136   :  { %v713_v3 = vpop.permute.xlu0 %712  ;;  %v625_v48 = vsel %vm600_vm1, %v6984_v32, %v624_v61 }
 0x137   :  { %1672 = vrot.lane.b32.xlu1 %v1453_v5, %s3554_s22  ;;  %v5415_v5 = vld [vmem:[%s6692_s0 + $0xf4] sm:$0xf]  ;;  %v802_v54 = vsel %vm745_vm3, %v6987_v11, %v6817_v43  ;;  %v5434_v32 = vor.u32 %v936_v0, %v935_v42  ;;  %v3540_v42 = vld [vmem:[%s6692_s0 + $0x78] sm:$0xf]  ;;  %v6990_v43 = vld [vmem:[#allocation14_spill] sm:$0xff] }
 0x138   :  { %1329 = vrot.lane.b32.xlu0 %v1264_v7, %s3552_s20  ;;  %v5423_v7 = vor.u32 %v1000_v36, %v999_v29  ;;  %v5438_v28 = vcombine.low %v5415_v5, %v5420_v35  ;;  %v6989_v11 = vld [vmem:[#allocation32_spill] sm:$0xff] }
 0x139   :  { %v1046_v1 = vpop.permute.xlu1 %1045  ;;  %v1834_v6 = vsel %vm1788_vm6, %v6990_v43, %v6989_v11  ;;  %v1768_v11 = vrot.slane %v4858_v16, 3 }
 0x13a   :  { %v858_v23 = vpop.permute.xlu0 %857  ;;  %v1602_v43 = vshll.u32 %v5438_v28, 16  ;;  %v1265_v44 = vrot.slane %v5438_v28, 2 }
 0x13b   :  { %585 = vrot.lane.b32.xlu1 %v490_v63, %s3548_s25  ;;  %v6985_v63 = vld [vmem:[#allocation21_spill] sm:$0xff] }
 0x13c   :  { %1704 = vrot.lane.b32.xlu0 %v1597_v39, %s3554_s22  ;;  %v6986_v39 = vld [vmem:[#allocation3_spill] sm:$0xff] }
 0x13d   :  { %v1145_v53 = vpop.permute.xlu1 %1144  ;;  %v1802_v20 = vsel %vm1788_vm6, %v6986_v39, %v6985_v63  ;;  %v3539_v63 = vld [vmem:[%s6692_s0 + $0x74] sm:$0xf]  ;;  %v1736_v39 = vrot.slane %v4830_v46, 3 }
 0x13e   :  { %v1078_v2 = vpop.permute.xlu0 %1077  ;;  %v1869_v29 = vsel %vm1855_vm7, %v1802_v20, %v681_v25  ;;  %v5452_v0 = vcombine.low %v3539_v63, %v3540_v42 }
 0x13f   :  { %722 = vrot.lane.b32.xlu1 %v657_v19, %s3549_s17  ;;  %v6988_v19 = vrot.slane %v6972_v24, 3  ;;  %v1936_v25 = vsel %vm1922_vm8, %v1869_v29, %v826_v4  ;;  %v938_v4 = vsel %vm882_vm2, %v5264_v30, %v5434_v32  ;;  %v1599_v29 = vshrl.u32 %v5438_v28, 16 }
 0x140   :  { %690 = vrot.lane.b32.xlu0 %v625_v48, %s3549_s17 }
 0x141   :  { %v1290_v36 = vpop.permute.xlu1 %1289  ;;  %v770_v48 = vsel %vm745_vm3, %v6988_v19, %v6819_v15  ;;  %v2003_v19 = vsel %vm1989_vm9, %v1936_v25, %v1046_v1  ;;  %v1002_v15 = vsel %vm882_vm2, %v5289_v58, %v5423_v7  ;;  %v1458_v25 = vshll.u32 %v5452_v0, 16 }
 0x142   :  { %v1177_v20 = vpop.permute.xlu0 %1176  ;;  %v2070_v63 = vsel %vm2056_vm10, %v2003_v19, %v1145_v53  ;;  %v1737_v58 = vsel %vm745_vm3, %v1734_v38, %v1736_v39  ;;  %v1901_v53 = vsel %vm1855_vm7, %v1834_v6, %v713_v3  ;;  %v1604_v38 = vrot.slane %v1602_v43, 3 }
 0x143   :  { %867 = vrot.lane.b32.xlu1 %v802_v54, %s3551_s19  ;;  %v2137_v1 = vsel %vm2123_vm11, %v2070_v63, %v1290_v36  ;;  %v1455_v54 = vshrl.u32 %v5452_v0, 16  ;;  %v1968_v36 = vsel %vm1922_vm8, %v1901_v53, %v858_v23  ;;  %v1601_v63 = vrot.slane %v1599_v29, 2 }
 0x144   :  { %835 = vrot.lane.b32.xlu0 %v770_v48, %s3551_s19  ;;  %v2035_v19 = vsel %vm1989_vm9, %v1968_v36, %v1078_v2  ;;  %v1460_v23 = vrot.slane %v1458_v25, 3  ;;  %v1769_v2 = vsel %vm745_vm3, %v1766_v37, %v1768_v11  ;;  %v6822_v25 = vrot.slane %v6981_v55, 1 }
 0x145   :  { %v1665_v42 = vpop.permute.xlu1 %1664  ;;  %v2102_v3 = vsel %vm2056_vm10, %v2035_v19, %v1177_v20  ;;  %v1266_v20 = vsel %vm1209_vm4, %v1263_v14, %v1265_v44  ;;  %v5506_v29 = vor.u32 %v1604_v38, %v1601_v63  ;;  %v5530_v36 = vrot.slane %v495_v9, 1  ;;  %v6992_v63 = vld [vmem:[#allocation10_spill] sm:$0xff] }
 0x146   :  { %v1322_v30 = vpop.permute.xlu0 %1321  ;;  %v2210_v48 = vsel %vm2190_vm12, %v2137_v1, %v1665_v42  ;;  %v1233_v1 = vrot.slane %v5452_v0, 2  ;;  %v1457_v42 = vrot.slane %v1455_v54, 2  ;;  %v5534_v19 = vcombine.low %v5286_v62, %v5415_v5 }
 0x147   :  { %1087 = vrot.lane.b32.xlu1 %v1002_v15, %s3550_s18  ;;  %2549 = vmatmul.mubr.bf16.gmra.mrb[24].mxu0 %v2210_v48  ;;  %v2169_v15 = vsel %vm2123_vm11, %v2102_v3, %v1322_v30  ;;  %v1606_v14 = vsel %vm1346_vm5, %v5376_v34, %v5506_v29  ;;  %v6991_v30 = vshrl.u32 %v5218_v12, 16  ;;  %v6993_v38 = vshrl.u32 %v6992_v63, 16 }
 0x148   :  { %1055 = vrot.lane.b32.xlu0 %v938_v4, %s3550_s18  ;;  %3260 = vmatprep.mubr.msk.bf16.mxu0 %vm1788_vm6, %v1737_v58  ;;  %v1234_v37 = vsel %vm1209_vm4, %v1231_v17, %v1233_v1  ;;  %v5513_v43 = vor.u32 %v1460_v23, %v1457_v42  ;;  %v6820_v62 = vrot.slane %v6992_v63, 3  ;;  %v658_v9 = vrot.slane %v5357_v49, 1 }
 0x149   :  { %v683_v6 = vpop.permute.xlu1 %682  ;;  %v493_v48 = vor.u32 %v6991_v30, %v5369_v41  ;;  %v939_v3 = vrot.slane %v6993_v38, 3  ;;  %v627_v41 = vsel %vm600_vm1, %v624_v61, %v6822_v25  ;;  %v3542_v38 = vld [vmem:[%s6692_s0 + $0x80] sm:$0xf] }
 0x14a   :  { %v1697_v53 = vpop.permute.xlu0 %1696  ;;  %v1462_v17 = vsel %vm1346_vm5, %v5343_v8, %v5513_v43  ;;  %v6994_v8 = vshll.u32 %v6992_v63, 16 }
 0x14b   :  { %1186 = vrot.lane.b32.xlu1 %v5133_v52, %s3553_s21  ;;  %v2258_v4 = vsel %vm2190_vm12, %v2169_v15, %v1697_v53  ;;  %v498_v23 = vsel %vm262_vm0, %v493_v48, %v5530_v36  ;;  %v503_v15 = vshll.u32 %v5534_v19, 16  ;;  %v6821_v53 = vshrl.u32 %v5534_v19, 16  ;;  %v3541_v48 = vld [vmem:[%s6692_s0 + $0x7c] sm:$0xf] }
 0x14c   :  { %1154 = vrot.lane.b32.xlu0 %v5141_v22, %s3553_s21  ;;  %2677 = vmatmul.mubr.bf16.gmra.mrb[20].mxu1 %v2258_v4  ;;  %v940_v42 = vrot.slane %v6994_v8, 4  ;;  %v6995_v4 = vld [vmem:[#allocation20_spill] sm:$0xff] }
 0x14d   :  { %v828_v10 = vpop.permute.xlu1 %827  ;;  %3276 = vmatprep.mubr.msk.bf16.mxu1 %vm1788_vm6, %v1769_v2 }
 0x14e   :  { %v715_v54 = vpop.permute.xlu0 %714  ;;  %v5557_v61 = vor.u32 %v940_v42, %v939_v3  ;;  %v5577_v3 = vcombine.low %v3541_v48, %v3542_v38 }
 0x14f   :  { %1331 = vrot.lane.b32.xlu1 %v1266_v20, %s3552_s20  ;;  %v1804_v20 = vsel %vm1788_vm6, %v3731_v57, %v6995_v4  ;;  %v6823_v57 = vrot.slane %v5534_v19, 3  ;;  %v1738_v4 = vrot.slane %v4960_v26, 3 }
 0x150   :  { %1299 = vrot.lane.b32.xlu0 %v1234_v37, %s3552_s20  ;;  %v6996_v37 = vrot.slane %v6981_v55, 3  ;;  %v1871_v8 = vsel %vm1855_vm7, %v1804_v20, %v683_v6  ;;  %v5592_v6 = vld [vmem:[%s6692_s0 + $0x100] sm:$0xf]  ;;  %v6998_v20 = vld [vmem:[#allocation31_spill] sm:$0xff]  ;;  %v1235_v46 = vrot.slane %v5577_v3, 2 }
 0x151   :  { %v1048_v58 = vpop.permute.xlu1 %1047  ;;  %v1836_v48 = vsel %vm1788_vm6, %v3987_v51, %v6998_v20  ;;  %v1464_v51 = vshrl.u32 %v5577_v3, 16 }
 0x152   :  { %v860_v34 = vpop.permute.xlu0 %859 }
 0x153   :  { %1706 = vrot.lane.b32.xlu1 %v1606_v14, %s3554_s22  ;;  %v772_v14 = vsel %vm745_vm3, %v6996_v37, %v6820_v62  ;;  %v1938_v37 = vsel %vm1922_vm8, %v1871_v8, %v828_v10  ;;  %v78_v62 = vld [vmem:[%s6692_s0 + $0xfc] sm:$0xf]  ;;  %v942_v10 = vsel %vm882_vm2, %v5434_v32, %v5557_v61 }
 0x154   :  { %1674 = vrot.lane.b32.xlu0 %v1462_v17, %s3554_s22  ;;  %v6997_v17 = vrot.slane %v5218_v12, 1  ;;  %v2005_v38 = vsel %vm1989_vm9, %v1938_v37, %v1048_v58  ;;  %v1467_v58 = vshll.u32 %v5577_v3, 16  ;;  %v5615_v32 = vcombine.low %v78_v62, %v5592_v6 }
 0x155   :  { %v1147_v5 = vpop.permute.xlu1 %1146 }
 0x156   :  { %v1080_v2 = vpop.permute.xlu0 %1079  ;;  %v659_v30 = vsel %vm600_vm1, %v6997_v17, %v658_v9  ;;  %v2072_v8 = vsel %vm2056_vm10, %v2005_v38, %v1147_v5  ;;  %v1739_v5 = vsel %vm745_vm3, %v1736_v39, %v1738_v4  ;;  %v1469_v39 = vrot.slane %v1467_v58, 3 }
 0x157   :  { %692 = vrot.lane.b32.xlu1 %v627_v41, %s3549_s17  ;;  %v1003_v41 = vrot.slane %v6821_v53, 3  ;;  %v6999_v53 = vrot.slane %v5357_v49, 3  ;;  %v1267_v16 = vrot.slane %v5615_v32, 2 }
 0x158   :  { %587 = vrot.lane.b32.xlu0 %v498_v23, %s3548_s25  ;;  %v1004_v23 = vrot.slane %v503_v15, 4 }
 0x159   :  { %v1292_v42 = vpop.permute.xlu1 %1291  ;;  %v804_v25 = vsel %vm745_vm3, %v6999_v53, %v6823_v57  ;;  %v1903_v53 = vsel %vm1855_vm7, %v1836_v48, %v715_v54  ;;  %v1770_v57 = vrot.slane %v4996_v27, 3 }
 0x15a   :  { %v1179_v17 = vpop.permute.xlu0 %1178  ;;  %v5612_v20 = vor.u32 %v1004_v23, %v1003_v41  ;;  %v1466_v23 = vrot.slane %v1464_v51, 2 }
 0x15b   :  { %837 = vrot.lane.b32.xlu1 %v772_v14, %s3551_s19  ;;  %v2139_v14 = vsel %vm2123_vm11, %v2072_v8, %v1292_v42  ;;  %v1970_v42 = vsel %vm1922_vm8, %v1903_v53, %v860_v34  ;;  %v1611_v8 = vshll.u32 %v5615_v32, 16  ;;  %v1771_v51 = vsel %vm745_vm3, %v1768_v11, %v1770_v57 }
 0x15c   :  { %724 = vrot.lane.b32.xlu0 %v659_v30, %s3549_s17  ;;  %v2037_v41 = vsel %vm1989_vm9, %v1970_v42, %v1080_v2  ;;  %v1006_v34 = vsel %vm882_vm2, %v5423_v7, %v5612_v20  ;;  %v1236_v7 = vsel %vm1209_vm4, %v1233_v1, %v1235_v46  ;;  %v5652_v58 = vor.u32 %v1469_v39, %v1466_v23 }
 0x15d   :  { %v1667_v37 = vpop.permute.xlu1 %1666  ;;  %v2104_v54 = vsel %vm2056_vm10, %v2037_v41, %v1179_v17  ;;  %v5658_v53 = vcombine.low %v5420_v35, %v78_v62  ;;  %v5670_v42 = vrot.slane %v503_v15, 1  ;;  %v1268_v35 = vsel %vm1209_vm4, %v1265_v44, %v1267_v16 }
 0x15e   :  { %v1324_v30 = vpop.permute.xlu0 %1323  ;;  %v2213_v38 = vsel %vm2190_vm12, %v2139_v14, %v1667_v37  ;;  %v1613_v37 = vrot.slane %v1611_v8, 3  ;;  %v1471_v1 = vsel %vm1346_vm5, %v5513_v43, %v5652_v58  ;;  %v6825_v39 = vrot.slane %v5534_v19, 1  ;;  %v7001_v8 = vld [vmem:[#allocation23_spill] sm:$0xff] }
 0x15f   :  { %1057 = vrot.lane.b32.xlu1 %v942_v10, %s3550_s18  ;;  %2557 = vmatmul.mubr.bf16.gmra.mrb[28].mxu0 %v2213_v38  ;;  %v1608_v10 = vshrl.u32 %v5615_v32, 16  ;;  %v2171_v2 = vsel %vm2123_vm11, %v2104_v54, %v1324_v30  ;;  %v7000_v30 = vshrl.u32 %v5357_v49, 16  ;;  %v6827_v43 = vshll.u32 %v5658_v53, 16 }
 0x160   :  { %869 = vrot.lane.b32.xlu0 %v804_v25, %s3551_s19  ;;  %3261 = vmatprep.mubr.msk.bf16.mxu0 %vm1788_vm6, %v1739_v5  ;;  %v6826_v54 = vrot.slane %v6992_v63, 1 }
 0x161   :  { %v685_v48 = vpop.permute.xlu1 %684  ;;  %v1610_v11 = vrot.slane %v1608_v10, 2  ;;  %v501_v38 = vor.u32 %v7000_v30, %v5530_v36  ;;  %v6824_v36 = vshrl.u32 %v5658_v53, 16  ;;  %v5719_v30 = vld [vmem:[%s6692_s0 + $0x108] sm:$0xf] }
 0x162   :  { %v1699_v25 = vpop.permute.xlu0 %1698 }
 0x163   :  { %1156 = vrot.lane.b32.xlu1 %v5272_v13, %s3553_s21  ;;  %v2261_v17 = vsel %vm2190_vm12, %v2171_v2, %v1699_v25  ;;  %v5677_v62 = vor.u32 %v1613_v37, %v1610_v11  ;;  %v506_v15 = vsel %vm262_vm0, %v501_v38, %v5670_v42  ;;  %v1806_v2 = vsel %vm1788_vm6, %v6926_v60, %v7001_v8  ;;  %v7003_v11 = vld [vmem:[#allocation11_spill] sm:$0xff] }
 0x164   :  { %1089 = vrot.lane.b32.xlu0 %v1006_v34, %s3550_s18  ;;  %2685 = vmatmul.mubr.bf16.gmra.mrb[24].mxu1 %v2261_v17  ;;  %v1007_v25 = vrot.slane %v6824_v36, 3  ;;  %v7002_v60 = vrot.slane %v6981_v55, 1  ;;  %v773_v37 = vrot.slane %v7003_v11, 3 }
 0x165   :  { %v830_v14 = vpop.permute.xlu1 %829  ;;  %3277 = vmatprep.mubr.msk.bf16.mxu1 %vm1788_vm6, %v1771_v51  ;;  %v1615_v44 = vsel %vm1346_vm5, %v5506_v29, %v5677_v62  ;;  %v1008_v51 = vrot.slane %v6827_v43, 4  ;;  %v661_v29 = vsel %vm600_vm1, %v658_v9, %v6825_v39  ;;  %v1873_v9 = vsel %vm1855_vm7, %v1806_v2, %v685_v48  ;;  %v7006_v2 = vld [vmem:[#allocation33_spill] sm:$0xff] }
 0x166   :  { %v717_v5 = vpop.permute.xlu0 %716  ;;  %v629_v17 = vsel %vm600_vm1, %v7002_v60, %v6826_v54  ;;  %v1740_v60 = vrot.slane %v5141_v22, 3  ;;  %v1940_v36 = vsel %vm1922_vm8, %v1873_v9, %v830_v14  ;;  %v7007_v14 = vrot.slane %v5534_v19, 3 }
 0x167   :  { %1301 = vrot.lane.b32.xlu1 %v1236_v7, %s3552_s20  ;;  %v805_v7 = vrot.slane %v5658_v53, 3  ;;  %v5730_v43 = vor.u32 %v1008_v51, %v1007_v25  ;;  %v3544_v25 = vld [vmem:[%s6692_s0 + $0x88] sm:$0xf] }
 0x168   :  { %1188 = vrot.lane.b32.xlu0 %v5307_v31, %s3553_s21  ;;  %v1741_v9 = vsel %vm745_vm3, %v1738_v4, %v1740_v60 }
 0x169   :  { %v1050_v41 = vpop.permute.xlu1 %1049 }
 0x16a   :  { %v862_v23 = vpop.permute.xlu0 %861  ;;  %v2007_v54 = vsel %vm1989_vm9, %v1940_v36, %v1050_v41  ;;  %v806_v41 = vsel %vm745_vm3, %v7007_v14, %v805_v7  ;;  %v3543_v36 = vld [vmem:[%s6692_s0 + $0x84] sm:$0xf] }
 0x16b   :  { %1676 = vrot.lane.b32.xlu1 %v1471_v1, %s3554_s22  ;;  %v5714_v1 = vld [vmem:[%s6692_s0 + $0x104] sm:$0xf]  ;;  %v5752_v51 = vcombine.low %v3543_v36, %v3544_v25 }
 0x16c   :  { %1333 = vrot.lane.b32.xlu0 %v1268_v35, %s3552_s20  ;;  %v7004_v35 = vshrl.u32 %v7003_v11, 16  ;;  %v5734_v48 = vcombine.low %v5714_v1, %v5719_v30 }
 0x16d   :  { %v1149_v34 = vpop.permute.xlu1 %1148 }
 0x16e   :  { %v1082_v10 = vpop.permute.xlu0 %1081  ;;  %v1617_v26 = vshrl.u32 %v5734_v48, 16 }
 0x16f   :  { %589 = vrot.lane.b32.xlu1 %v506_v15, %s3548_s25  ;;  %v943_v15 = vrot.slane %v7004_v35, 3  ;;  %v1838_v35 = vsel %vm1788_vm6, %v4006_v18, %v7006_v2 }
 0x170   :  { %1708 = vrot.lane.b32.xlu0 %v1615_v44, %s3554_s22  ;;  %v7005_v44 = vshll.u32 %v7003_v11, 16  ;;  %v1905_v2 = vsel %vm1855_vm7, %v1838_v35, %v717_v5  ;;  %v1620_v5 = vshll.u32 %v5734_v48, 16  ;;  %v1476_v35 = vshll.u32 %v5752_v51, 16 }
 0x171   :  { %v1294_v38 = vpop.permute.xlu1 %1293  ;;  %v1972_v36 = vsel %vm1922_vm8, %v1905_v2, %v862_v23 }
 0x172   :  { %v944_v8 = vrot.slane %v7005_v44, 4  ;;  %v1181_v39 = vpop.permute.xlu0 %1180  ;;  %v2074_v44 = vsel %vm2056_vm10, %v2007_v54, %v1149_v34  ;;  %v7008_v34 = vrot.slane %v6992_v63, 3  ;;  %v2039_v4 = vsel %vm1989_vm9, %v1972_v36, %v1082_v10 }
 0x173   :  { %726 = vrot.lane.b32.xlu1 %v661_v29, %s3549_s17  ;;  %v2141_v18 = vsel %vm2123_vm11, %v2074_v44, %v1294_v38  ;;  %v6835_v44 = vrot.slane %v5133_v52, 3  ;;  %v2106_v23 = vsel %vm2056_vm10, %v2039_v4, %v1181_v39  ;;  %v6832_v39 = vrot.slane %v5734_v48, 2 }
 0x174   :  { %694 = vrot.lane.b32.xlu0 %v629_v17, %s3549_s17  ;;  %v774_v29 = vsel %vm745_vm3, %v7008_v34, %v773_v37  ;;  %v5760_v17 = vor.u32 %v944_v8, %v943_v15  ;;  %v1010_v15 = vsel %vm882_vm2, %v5612_v20, %v5730_v43  ;;  %v1473_v8 = vshrl.u32 %v5752_v51, 16 }
 0x175   :  { %v1669_v54 = vpop.permute.xlu1 %1668  ;;  %v1619_v34 = vrot.slane %v1617_v26, 2 }
 0x176   :  { %v1326_v14 = vpop.permute.xlu0 %1325  ;;  %v2216_v38 = vsel %vm2190_vm12, %v2141_v18, %v1669_v54  ;;  %v946_v20 = vsel %vm882_vm2, %v5557_v61, %v5760_v17  ;;  %v1773_v18 = vsel %vm745_vm3, %v1770_v57, %v6835_v44  ;;  %v1622_v61 = vrot.slane %v1620_v5, 3 }
 0x177   :  { %871 = vrot.lane.b32.xlu1 %v806_v41, %s3551_s19  ;;  %2565 = vmatmul.mubr.bf16.gmra.mrb[32].mxu0 %v2216_v38  ;;  %v2173_v25 = vsel %vm2123_vm11, %v2106_v23, %v1326_v14  ;;  %v6834_v14 = vrot.slane %v5752_v51, 2  ;;  %v1270_v57 = vsel %vm1209_vm4, %v1267_v16, %v6832_v39  ;;  %v5818_v5 = vcombine.low %v5592_v6, %v5714_v1 }
 0x178   :  { %839 = vrot.lane.b32.xlu0 %v774_v29, %s3551_s19  ;;  %3262 = vmatprep.mubr.msk.bf16.mxu0 %vm1788_vm6, %v1741_v9  ;;  %v1475_v29 = vrot.slane %v1473_v8, 2  ;;  %v1478_v9 = vrot.slane %v1476_v35, 3  ;;  %v5807_v38 = vor.u32 %v1622_v61, %v1619_v34  ;;  %v6829_v35 = vrot.slane %v7003_v11, 1 }
 0x179   :  { %v582_v41 = vpop.permute.xlu1 %581  ;;  %v1238_v26 = vsel %vm1209_vm4, %v1235_v46, %v6834_v14  ;;  %v7009_v23 = vshrl.u32 %v5534_v19, 16  ;;  %v7010_v1 = vshll.u32 %v5658_v53, 16  ;;  %v6828_v61 = vshrl.u32 %v5818_v5, 16 }
 0x17a   :  { %v1701_v10 = vpop.permute.xlu0 %1700  ;;  %v5809_v36 = vor.u32 %v1478_v9, %v1475_v29  ;;  %v1624_v16 = vsel %vm1346_vm5, %v5677_v62, %v5807_v38 }
 0x17b   :  { %1091 = vrot.lane.b32.xlu1 %v1010_v15, %s3550_s18  ;;  %v2264_v54 = vsel %vm2190_vm12, %v2173_v25, %v1701_v10  ;;  %v509_v6 = vor.u32 %v7009_v23, %v5670_v42  ;;  %v7011_v25 = vld [vmem:[#allocation12_spill] sm:$0xff]  ;;  %v7014_v42 = vrot.slane %v6992_v63, 1 }
 0x17c   :  { %1059 = vrot.lane.b32.xlu0 %v946_v20, %s3550_s18  ;;  %2693 = vmatmul.mubr.bf16.gmra.mrb[28].mxu1 %v2264_v54  ;;  %v1480_v8 = vsel %vm1346_vm5, %v5652_v58, %v5809_v36  ;;  %v5834_v20 = vrot.slane %v7010_v1, 1  ;;  %v7012_v10 = vshrl.u32 %v7011_v25, 16  ;;  %v7013_v62 = vshll.u32 %v7011_v25, 16 }
 0x17d   :  { %v719_v2 = vpop.permute.xlu1 %718  ;;  %3278 = vmatprep.mubr.msk.bf16.mxu1 %vm1788_vm6, %v1773_v18  ;;  %v6833_v58 = vshll.u32 %v5818_v5, 16  ;;  %v631_v29 = vsel %vm600_vm1, %v7014_v42, %v6829_v35  ;;  %v6830_v9 = vrot.slane %v7011_v25, 3  ;;  %v5897_v35 = vld [vmem:[%s6692_s0 + $0x10c] sm:$0xf] }
 0x17e   :  { %v687_v27 = vpop.permute.xlu0 %686  ;;  %v947_v18 = vrot.slane %v7012_v10, 3  ;;  %v948_v54 = vrot.slane %v7013_v62, 4  ;;  %v514_v23 = vsel %vm262_vm0, %v509_v6, %v5834_v20  ;;  %v807_v10 = vrot.slane %v5818_v5, 3  ;;  %v3545_v6 = vld [vmem:[%s6692_s0 + $0x8c] sm:$0xf] }
 0x17f   :  { %1190 = vrot.lane.b32.xlu1 %v5438_v28, %s3553_s21  ;;  %v1011_v62 = vrot.slane %v6828_v61, 3  ;;  %v1012_v42 = vrot.slane %v6833_v58, 4  ;;  %v776_v61 = vsel %vm745_vm3, %v773_v37, %v6830_v9  ;;  %v5902_v37 = vld [vmem:[%s6692_s0 + $0x110] sm:$0xf]  ;;  %v6838_v9 = vrot.slane %v5272_v13, 3 }
 0x180   :  { %1158 = vrot.lane.b32.xlu0 %v5452_v0, %s3553_s21  ;;  %v5853_v1 = vor.u32 %v948_v54, %v947_v18  ;;  %v3546_v18 = vld [vmem:[%s6692_s0 + $0x90] sm:$0xf] }
 0x181   :  { %v864_v15 = vpop.permute.xlu1 %863  ;;  %v5913_v39 = vor.u32 %v1012_v42, %v1011_v62 }
 0x182   :  { %v832_v4 = vpop.permute.xlu0 %831 }
 0x183   :  { %1335 = vrot.lane.b32.xlu1 %v1270_v57, %s3552_s20  ;;  %v6831_v57 = vrot.slane %v5658_v53, 1 }
 0x184   :  { %1303 = vrot.lane.b32.xlu0 %v1238_v26, %s3552_s20 }
 0x185   :  { %v1084_v46 = vpop.permute.xlu1 %1083 }
 0x186   :  { %v1052_v34 = vpop.permute.xlu0 %1051 }
 0x187   :  { %1710 = vrot.lane.b32.xlu1 %v1624_v16, %s3554_s22  ;;  %v1840_v16 = vsel %vm1788_vm6, %v4049_v33, %v582_v41  ;;  %v5869_v33 = vcombine.low %v3545_v6, %v3546_v18  ;;  %v7015_v41 = vld [vmem:[#allocation22_spill] sm:$0xff]  ;;  %v7016_v6 = vrot.slane %v5534_v19, 1 }
 0x188   :  { %1678 = vrot.lane.b32.xlu0 %v1480_v8, %s3554_s22  ;;  %v1808_v54 = vsel %vm1788_vm6, %v6939_v40, %v7015_v41  ;;  %v1907_v40 = vsel %vm1855_vm7, %v1840_v16, %v719_v2  ;;  %v950_v41 = vsel %vm882_vm2, %v5760_v17, %v5853_v1  ;;  %v808_v17 = vsel %vm745_vm3, %v805_v7, %v807_v10 }
 0x189   :  { %v1183_v26 = vpop.permute.xlu1 %1182  ;;  %v663_v18 = vsel %vm600_vm1, %v7016_v6, %v6831_v57  ;;  %v1875_v2 = vsel %vm1855_vm7, %v1808_v54, %v687_v27  ;;  %v1974_v16 = vsel %vm1922_vm8, %v1907_v40, %v864_v15  ;;  %v1482_v27 = vshrl.u32 %v5869_v33, 16 }
 0x18a   :  { %v1151_v8 = vpop.permute.xlu0 %1150  ;;  %v1942_v58 = vsel %vm1922_vm8, %v1875_v2, %v832_v4  ;;  %v2041_v14 = vsel %vm1989_vm9, %v1974_v16, %v1084_v46  ;;  %v1485_v15 = vshll.u32 %v5869_v33, 16  ;;  %v5926_v4 = vcombine.low %v5897_v35, %v5902_v37 }
 0x18b   :  { %696 = vrot.lane.b32.xlu1 %v631_v29, %s3549_s17  ;;  %v5878_v29 = vld [vmem:[%s6694_s2] ss:$0 sm:$0xff]  ;;  %v2009_v54 = vsel %vm1989_vm9, %v1942_v58, %v1052_v34  ;;  %v2108_v40 = vsel %vm2056_vm10, %v2041_v14, %v1183_v26  ;;  %v1743_v14 = vsel %vm745_vm3, %v1740_v60, %v6838_v9  ;;  %v7018_v34 = vrot.slane %v5133_v52, 3 }
 0x18c   :  { %591 = vrot.lane.b32.xlu0 %v514_v23, %s3548_s25  ;;  %v2076_v46 = vsel %vm2056_vm10, %v2009_v54, %v1151_v8  ;;  %v6836_v60 = vrot.slane %v5869_v33, 2 }
 0x18d   :  { %v1328_v23 = vpop.permute.xlu1 %1327 }
 0x18e   :  { %v1296_v57 = vpop.permute.xlu0 %1295 }
 0x18f   :  { %v2502_v44 = vpop.f32.mrb[0].mxu0  ;;  %841 = vrot.lane.b32.xlu1 %v776_v61, %s3551_s19  ;;  %v2175_v61 = vsel %vm2123_vm11, %v2108_v40, %v1328_v23  ;;  %v2143_v26 = vsel %vm2123_vm11, %v2076_v46, %v1296_v57  ;;  %v1484_v57 = vrot.slane %v1482_v27, 2  ;;  %v1626_v46 = vshrl.u32 %v5926_v4, 16 }
 0x190   :  { %v2503_v6 = vadd.f32 %v5878_v29, %v2502_v44  ;;  %v2504_v7 = vpop.f32.mrb[1].mxu0  ;;  %728 = vrot.lane.b32.xlu0 %v663_v18, %s3549_s17  ;;  %v7017_v44 = vrot.slane %v5307_v31, 3 }
 0x191   :  { %v2505_v62 = vpop.f32.mrb[2].mxu0  ;;  %v1703_v42 = vpop.permute.xlu1 %1702  ;;  %v1014_v7 = vsel %vm882_vm2, %v5730_v43, %v5913_v39  ;;  %v7019_v43 = vrot.slane %v5752_v51, 2 }
 0x192   :  { %v1775_v58 = vsel %vm745_vm3, %v7018_v34, %v7017_v44  ;;  %v2765_v18 = vmax.f32 %v2503_v6, 0.0  ;;  %v2506_v8 = vadd.f32 %v5878_v29, %v2505_v62  ;;  %v2507_v23 = vpop.f32.mrb[3].mxu0  ;;  %v1671_v2 = vpop.permute.xlu0 %1670  ;;  %v2267_v16 = vsel %vm2190_vm12, %v2175_v61, %v1703_v42 }
 0x193   :  { %1061 = vrot.lane.b32.xlu1 %v950_v41, %s3550_s18  ;;  %v2219_v22 = vsel %vm2190_vm12, %v2143_v26, %v1671_v2  ;;  %2701 = vmatmul.mubr.bf16.gmra.mrb[32].mxu1 %v2267_v16  ;;  %v1487_v6 = vrot.slane %v1485_v15, 3  ;;  %v1629_v41 = vshll.u32 %v5926_v4, 16  ;;  %v1240_v15 = vsel %vm1209_vm4, %v7019_v43, %v6836_v60 }
 0x194   :  { %v3352_v52 = vpack.c.bf16 %v2765_v18, %v2765_v18  ;;  %v2766_v54 = vmax.f32 %v2506_v8, 0.0  ;;  %873 = vrot.lane.b32.xlu0 %v808_v17, %s3551_s19  ;;  %2573 = vmatmul.mubr.bf16.gmra.mrb[36].mxu0 %v2219_v22  ;;  %v6837_v42 = vrot.slane %v5926_v4, 2  ;;  %v7020_v18 = vshrl.u32 %v5658_v53, 16 }
 0x195   :  { %v689_v40 = vpop.permute.xlu1 %688  ;;  %3263 = vmatprep.mubr.msk.bf16.mxu0 %vm1788_vm6, %v1743_v14  ;;  %3279 = vmatprep.mubr.msk.bf16.mxu1 %vm1788_vm6, %v1775_v58  ;;  %v5972_v61 = vor.u32 %v1487_v6, %v1484_v57  ;;  %v1628_v14 = vrot.slane %v1626_v46, 2  ;;  %v1631_v44 = vrot.slane %v1629_v41, 3  ;;  %v5980_v58 = vcombine.low %v5719_v30, %v5897_v35 }
 0x196   :  { %3096 = vst.msk [vmem:[%s6695_s3] sm:$0xf] %vm3095_vm13, %v3352_v52  ;;  %v3353_v17 = vpack.c.bf16 %v2766_v54, %v2766_v54  ;;  %v5958_v27 = vpop.permute.xlu0 %583  ;;  %v517_v8 = vor.u32 %v7020_v18, %v5834_v20  ;;  %v7021_v23 = vshll.u32 %v5818_v5, 16  ;;  %v7022_v30 = vrot.slane %v5734_v48, 2 }
 0x197   :  { %1160 = vrot.lane.b32.xlu1 %v5577_v3, %s3553_s21  ;;  %v1489_v26 = vsel %vm1346_vm5, %v5809_v36, %v5972_v61  ;;  %v5999_v22 = vor.u32 %v1631_v44, %v1628_v14  ;;  %v1016_v36 = vshrl.u32 %v5980_v58, 16  ;;  %v1019_v20 = vshll.u32 %v5980_v58, 16  ;;  %v7023_v14 = vld [vmem:[#allocation25_spill] sm:$0xff] }
 0x198   :  { %3097 = vst.msk [vmem:[%s6695_s3 + $0x4] sm:$0xf] %vm3095_vm13, %v3353_v17  ;;  %1093 = vrot.lane.b32.xlu0 %v1014_v7, %s3550_s18  ;;  %v5992_v2 = vrot.slane %v7021_v23, 1  ;;  %v1272_v35 = vsel %vm1209_vm4, %v7022_v30, %v6837_v42  ;;  %v6839_v57 = vrot.slane %v5818_v5, 1  ;;  %v6841_v6 = vrot.slane %v7011_v25, 1 }
 0x199   :  { %v834_v62 = vpop.permute.xlu1 %833  ;;  %v1633_v46 = vsel %vm1346_vm5, %v5807_v38, %v5999_v22  ;;  %v6840_v43 = vrot.slane %v5980_v58, 3  ;;  %v1810_v44 = vsel %vm1788_vm6, %v6951_v47, %v7023_v14  ;;  %v1021_v23 = vrot.slane %v1019_v20, 4 }
 0x19a   :  { %v5975_v34 = vpop.permute.xlu0 %720  ;;  %v522_v54 = vsel %vm262_vm0, %v517_v8, %v5992_v2  ;;  %v1018_v8 = vrot.slane %v1016_v36, 3  ;;  %v7024_v30 = vrot.slane %v5658_v53, 1  ;;  %v7025_v47 = vrot.slane %v7003_v11, 1 }
 0x19b   :  { %1305 = vrot.lane.b32.xlu1 %v1240_v15, %s3552_s20  ;;  %v7027_v36 = vshll.u32 %v3861_v59, 16 }
 0x19c   :  { %1192 = vrot.lane.b32.xlu0 %v5615_v32, %s3553_s21 }
 0x19d   :  { %v1054_v16 = vpop.permute.xlu1 %1053  ;;  %v952_v20 = vrot.slane %v7027_v36, 4 }
 0x19e   :  { %v6001_v52 = vpop.permute.xlu0 %865 }
 0x19f   :  { %1680 = vrot.lane.b32.xlu1 %v1489_v26, %s3554_s22 }
 0x1a0   :  { %1337 = vrot.lane.b32.xlu0 %v1272_v35, %s3552_s20  ;;  %v665_v35 = vsel %vm600_vm1, %v7024_v30, %v6839_v57  ;;  %v1744_v30 = vrot.slane %v5452_v0, 3 }
 0x1a1   :  { %v1153_v7 = vpop.permute.xlu1 %1152 }
 0x1a2   :  { %v1086_v41 = vpop.permute.xlu0 %1085  ;;  %v2510_v17 = vpop.f32.mrb[4].mxu0 }
 0x1a3   :  { %v2511_v26 = vadd.f32 %v5878_v29, %v2510_v17  ;;  %593 = vrot.lane.b32.xlu1 %v522_v54, %s3548_s25  ;;  %v2512_v18 = vpop.f32.mrb[5].mxu0  ;;  %v633_v17 = vsel %vm600_vm1, %v7025_v47, %v6841_v6  ;;  %v7026_v54 = vshrl.u32 %v3861_v59, 16  ;;  %v810_v47 = vsel %vm745_vm3, %v807_v10, %v6840_v43 }
 0x1a4   :  { %1712 = vrot.lane.b32.xlu0 %v1633_v46, %s3554_s22  ;;  %v2513_v38 = vpop.f32.mrb[6].mxu0  ;;  %v1877_v46 = vsel %vm1855_vm7, %v1810_v44, %v689_v40  ;;  %v7029_v40 = vrot.slane %v7011_v25, 3 }
 0x1a5   :  { %v951_v14 = vrot.slane %v7026_v54, 3  ;;  %v2767_v18 = vmax.f32 %v2511_v26, 0.0  ;;  %v2514_v60 = vadd.f32 %v5878_v29, %v2513_v38  ;;  %v1298_v42 = vpop.permute.xlu1 %1297  ;;  %v2515_v9 = vpop.f32.mrb[7].mxu0  ;;  %v1944_v57 = vsel %vm1922_vm8, %v1877_v46, %v834_v62  ;;  %v6057_v46 = vld [vmem:[%s6692_s0 + $0x114] sm:$0xff]  }
 0x1a6   :  { %v1185_v15 = vpop.permute.xlu0 %1184  ;;  %v7028_v54 = vrot.slane %v3861_v59, 3  ;;  %v2011_v26 = vsel %vm1989_vm9, %v1944_v57, %v1054_v16  ;;  %v6052_v62 = vor.u32 %v1021_v23, %v1018_v8  ;;  %v1842_v57 = vsel %vm1788_vm6, %v4925_v21, %v5958_v27 }
 0x1a7   :  { %v3354_v9 = vpack.c.bf16 %v2767_v18, %v2767_v18  ;;  %v2768_v38 = vmax.f32 %v2514_v60, 0.0  ;;  %v2638_v36 = vpop.f32.mrb[0].mxu1  ;;  %730 = vrot.lane.b32.xlu1 %v665_v35, %s3549_s17  ;;  %v2078_v10 = vsel %vm2056_vm10, %v2011_v26, %v1153_v7  ;;  %v6062_v16 = vor.u32 %v952_v20, %v951_v14 }
 0x1a8   :  { %v778_v44 = vsel %vm745_vm3, %v7029_v40, %v7028_v54  ;;  %v2639_v43 = vadd.f32 %v5878_v29, %v2638_v36  ;;  %v2640_v6 = vpop.f32.mrb[1].mxu1  ;;  %698 = vrot.lane.b32.xlu0 %v633_v17, %s3549_s17  ;;  %v1776_v60 = vrot.slane %v5438_v28, 3  ;;  %v2145_v7 = vsel %vm2123_vm11, %v2078_v10, %v1298_v42  ;;  %v3524_v28 = vld [vmem:[%s6692_s0 + $0x11c] ss:$0 sps:$4 sm:$0x33]  }
 0x1a9   :  { %3098 = vst.msk [vmem:[%s6695_s3 + $0x8] sm:$0xf] %vm3095_vm13, %v3354_v9  ;;  %v3355_v8 = vpack.c.bf16 %v2768_v38, %v2768_v38  ;;  %v2641_v23 = vpop.f32.mrb[2].mxu1  ;;  %v1673_v6 = vpop.permute.xlu1 %1672  ;;  %v7030_v35 = vrot.slane %v5272_v13, 3  ;;  %v1909_v14 = vsel %vm1855_vm7, %v1842_v57, %v5975_v34  ;;  %v1023_v13 = vsel %vm882_vm2, %v5913_v39, %v6052_v62  ;;  %v7031_v39 = vld [vmem:[#allocation18_spill] sm:$0xff] }
 0x1aa   :  { %v2799_v21 = vmax.f32 %v2639_v43, 0.0  ;;  %v2642_v27 = vadd.f32 %v5878_v29, %v2641_v23  ;;  %v2643_v20 = vpop.f32.mrb[3].mxu1  ;;  %v1330_v18 = vpop.permute.xlu0 %1329  ;;  %v2222_v54 = vsel %vm2190_vm12, %v2145_v7, %v1673_v6  ;;  %v1976_v42 = vsel %vm1922_vm8, %v1909_v14, %v6001_v52 }
 0x1ab   :  { %v1745_v17 = vsel %vm745_vm3, %v7030_v35, %v1744_v30  ;;  %3099 = vst.msk [vmem:[%s6695_s3 + $0xc] sm:$0xf] %vm3095_vm13, %v3355_v8  ;;  %875 = vrot.lane.b32.xlu1 %v810_v47, %s3551_s19  ;;  %2581 = vmatmul.mubr.bf16.gmra.mrb[40].mxu0 %v2222_v54  ;;  %v1635_v34 = vshrl.u32 %v6057_v46, 16  ;;  %v2043_v43 = vsel %vm1989_vm9, %v1976_v42, %v1086_v41  ;;  %v1638_v52 = vshll.u32 %v6057_v46, 16 }
 0x1ac   :  { %v3386_v40 = vpack.c.bf16 %v2799_v21, %v2799_v21  ;;  %v2800_v26 = vmax.f32 %v2642_v27, 0.0  ;;  %843 = vrot.lane.b32.xlu0 %v778_v44, %s3551_s19  ;;  %3264 = vmatprep.mubr.msk.bf16.mxu0 %vm1788_vm6, %v1745_v17  ;;  %v2110_v9 = vsel %vm2056_vm10, %v2043_v43, %v1185_v15  ;;  %v954_v38 = vsel %vm882_vm2, %v5853_v1, %v6062_v16  ;;  %v3522_v21 = vld [vmem:[%s6692_s0 + $0x108] ss:$0 sps:$4 sm:$0x11]  }
 0x1ad   :  { %v586_v47 = vpop.permute.xlu1 %585  ;;  %v1491_v36 = vshrl.u32 %v7031_v39, 16  ;;  %v1494_v10 = vshll.u32 %v7031_v39, 16  ;;  %v2177_v44 = vsel %vm2123_vm11, %v2110_v9, %v1330_v18  ;;  %v7032_v15 = vrot.slane %v5307_v31, 3 }
 0x1ae   :  { %3130 = vst.msk [vmem:[%s6695_s3 + $0x88] sm:$0xf] %vm3095_vm13, %v3386_v40  ;;  %v3387_v41 = vpack.c.bf16 %v2800_v26, %v2800_v26  ;;  %v1705_v57 = vpop.permute.xlu0 %1704  ;;  %v1273_v7 = vrot.slane %v6057_v46, 2  ;;  %v1637_v23 = vrot.slane %v1635_v34, 2  ;;  %v1640_v6 = vrot.slane %v1638_v52, 3 }
 0x1af   :  { %v1777_v8 = vsel %vm745_vm3, %v7032_v15, %v1776_v60  ;;  %1095 = vrot.lane.b32.xlu1 %v1023_v13, %s3550_s18  ;;  %v2270_v1 = vsel %vm2190_vm12, %v2177_v44, %v1705_v57  ;;  %v1241_v31 = vrot.slane %v7031_v39, 2  ;;  %v1493_v17 = vrot.slane %v1491_v36, 2 }
 0x1b0   :  { %3131 = vst.msk [vmem:[%s6695_s3 + $0x8c] sm:$0xf] %vm3095_vm13, %v3387_v41  ;;  %1063 = vrot.lane.b32.xlu0 %v954_v38, %s3550_s18  ;;  %2709 = vmatmul.mubr.bf16.gmra.mrb[36].mxu1 %v2270_v1  ;;  %v1496_v14 = vrot.slane %v1494_v10, 3  ;;  %v7033_v20 = vrot.slane %v5926_v4, 2  ;;  %v6135_v54 = vor.u32 %v1640_v6, %v1637_v23  ;;  %v7034_v13 = vrot.slane %v5869_v33, 2 }
 0x1b1   :  { %v723_v35 = vpop.permute.xlu1 %722  ;;  %3280 = vmatprep.mubr.msk.bf16.mxu1 %vm1788_vm6, %v1777_v8  ;;  %v527_v40 = vshll.u32 %v3522_v21, 16  ;;  %v3204_v9 = vcombine.low %v5902_v37, %v5902_v37  ;;  %v7035_v10 = vshrl.u32 %v5818_v5, 16  ;;  %v3523_v37 = vld [vmem:[%s6692_s0 + $0x110] ss:$0 sps:$4 sm:$0x77]   ;;  %v7037_v23 = vrot.slane %v7011_v25, 1 }
 0x1b2   :  { %v691_v27 = vpop.permute.xlu0 %690  ;;  %v1274_v18 = vsel %vm1209_vm4, %v7033_v20, %v1273_v7  ;;  %v1242_v34 = vsel %vm1209_vm4, %v7034_v13, %v1241_v31  ;;  %v6142_v43 = vor.u32 %v1496_v14, %v1493_v17  ;;  %v1642_v52 = vsel %vm1346_vm5, %v5999_v22, %v6135_v54 }
 0x1b3   :  { %1194 = vrot.lane.b32.xlu1 %v5734_v48, %s3553_s21  ;;  %v525_v41 = vor.u32 %v7035_v10, %v5992_v2  ;;  %v529_v44 = vrot.slane %v527_v40, 1  ;;  %v666_v6 = vrot.slane %v3522_v21, 1  ;;  %v1025_v17 = vshrl.u32 %v3204_v9, 16 }
 0x1b4   :  { %1162 = vrot.lane.b32.xlu0 %v5752_v51, %s3553_s21  ;;  %v1498_v36 = vsel %vm1346_vm5, %v5972_v61, %v6142_v43  ;;  %v7036_v61 = vrot.slane %v3861_v59, 1  ;;  %v1028_v14 = vshll.u32 %v3204_v9, 16  ;;  %v1844_v10 = vsel %vm1788_vm6, %v5060_v50, %v586_v47 }
 0x1b5   :  { %v868_v42 = vpop.permute.xlu1 %867  ;;  %v530_v40 = vsel %vm262_vm0, %v525_v41, %v529_v44  ;;  %v7039_v9 = vrot.slane %v3884_v45, 3  ;;  %v811_v41 = vrot.slane %v3523_v37, 3  ;;  %v7041_v50 = vrot.slane %v5818_v5, 1 }
 0x1b6   :  { %v836_v26 = vpop.permute.xlu0 %835  ;;  %v635_v2 = vsel %vm600_vm1, %v7037_v23, %v7036_v61  ;;  %v1027_v47 = vrot.slane %v1025_v17, 3 }
 0x1b7   :  { %1339 = vrot.lane.b32.xlu1 %v1274_v18, %s3552_s20 }
 0x1b8   :  { %1307 = vrot.lane.b32.xlu0 %v1242_v34, %s3552_s20 }
 0x1b9   :  { %v1088_v38 = vpop.permute.xlu1 %1087 }
 0x1ba   :  { %v1056_v57 = vpop.permute.xlu0 %1055  ;;  %v2518_v15 = vpop.f32.mrb[8].mxu0 }
 0x1bb   :  { %v2519_v8 = vadd.f32 %v5878_v29, %v2518_v15  ;;  %1714 = vrot.lane.b32.xlu1 %v1642_v52, %s3554_s22  ;;  %v2520_v22 = vpop.f32.mrb[9].mxu0  ;;  %v7038_v52 = vld [vmem:[#allocation24_spill] sm:$0xff] }
 0x1bc   :  { %1682 = vrot.lane.b32.xlu0 %v1498_v36, %s3554_s22  ;;  %v2521_v1 = vpop.f32.mrb[10].mxu0  ;;  %v1812_v36 = vsel %vm1788_vm6, %v6963_v56, %v7038_v52  ;;  %v667_v56 = vsel %vm600_vm1, %v7041_v50, %v666_v6 }
 0x1bd   :  { %v2769_v20 = vmax.f32 %v2519_v8, 0.0  ;;  %v2522_v18 = vadd.f32 %v5878_v29, %v2521_v1  ;;  %v1187_v13 = vpop.permute.xlu1 %1186  ;;  %v2523_v34 = vpop.f32.mrb[11].mxu0  ;;  %v7040_v8 = vrot.slane %v3861_v59, 3 }
 0x1be   :  { %v1155_v15 = vpop.permute.xlu0 %1154  ;;  %v1778_v34 = vrot.slane %v5615_v32, 3 }
 0x1bf   :  { %v3356_v22 = vpack.c.bf16 %v2769_v20, %v2769_v20  ;;  %v2770_v61 = vmax.f32 %v2522_v18, 0.0  ;;  %v2646_v21 = vpop.f32.mrb[4].mxu1  ;;  %700 = vrot.lane.b32.xlu1 %v635_v2, %s3549_s17  ;;  %v780_v1 = vsel %vm745_vm3, %v7040_v8, %v7039_v9  ;;  %v1030_v20 = vrot.slane %v1028_v14, 4 }
 0x1c0   :  { %v2647_v44 = vadd.f32 %v5878_v29, %v2646_v21  ;;  %v2648_v23 = vpop.f32.mrb[5].mxu1  ;;  %595 = vrot.lane.b32.xlu0 %v530_v40, %s3548_s25  ;;  %v1911_v2 = vsel %vm1855_vm7, %v1844_v10, %v723_v35  ;;  %v1746_v18 = vrot.slane %v5577_v3, 3  ;;  %v1879_v40 = vsel %vm1855_vm7, %v1812_v36, %v691_v27 }
 0x1c1   :  { %3100 = vst.msk [vmem:[%s6695_s3 + $0x10] sm:$0xf] %vm3095_vm13, %v3356_v22  ;;  %v3357_v45 = vpack.c.bf16 %v2770_v61, %v2770_v61  ;;  %v2649_v59 = vpop.f32.mrb[6].mxu1  ;;  %v1332_v37 = vpop.permute.xlu1 %1331  ;;  %v1978_v6 = vsel %vm1922_vm8, %v1911_v2, %v868_v42  ;;  %v1946_v10 = vsel %vm1922_vm8, %v1879_v40, %v836_v26  ;;  %v7042_v61 = vld [vmem:[#allocation16_spill] sm:$0xff]  ;;  %v7043_v42 = vrot.slane %v5980_v58, 3  ;;  %v7044_v2 = vld [vmem:[#allocation17_spill] sm:$0xff] }
 0x1c2   :  { %v2801_v17 = vmax.f32 %v2647_v44, 0.0  ;;  %v2650_v14 = vadd.f32 %v5878_v29, %v2649_v59  ;;  %v2651_v35 = vpop.f32.mrb[7].mxu1  ;;  %v1300_v52 = vpop.permute.xlu0 %1299  ;;  %v2045_v22 = vsel %vm1989_vm9, %v1978_v6, %v1088_v38  ;;  %v958_v27 = vsel %vm882_vm2, %v6062_v16, %v7042_v61  ;;  %v6217_v58 = vld [vmem:[%s6692_s0 + $0x11c] ss:$0 sps:$4 sm:$0x77]  }
 0x1c3   :  { %3101 = vst.msk [vmem:[%s6695_s3 + $0x14] sm:$0xf] %vm3095_vm13, %v3357_v45  ;;  %845 = vrot.lane.b32.xlu1 %v780_v1, %s3551_s19  ;;  %v812_v36 = vsel %vm745_vm3, %v7043_v42, %v811_v41  ;;  %v2013_v21 = vsel %vm1989_vm9, %v1946_v10, %v1056_v57  ;;  %v2112_v26 = vsel %vm2056_vm10, %v2045_v22, %v1187_v13 }
 0x1c4   :  { %v3388_v38 = vpack.c.bf16 %v2801_v17, %v2801_v17  ;;  %v2802_v9 = vmax.f32 %v2650_v14, 0.0  ;;  %732 = vrot.lane.b32.xlu0 %v667_v56, %s3549_s17  ;;  %v2080_v8 = vsel %vm2056_vm10, %v2013_v21, %v1155_v15  ;;  %v2179_v1 = vsel %vm2123_vm11, %v2112_v26, %v1332_v37  ;;  %v7046_v14 = vld [vmem:[#allocation19_spill] sm:$0xff] }
 0x1c5   :  { %v1707_v44 = vpop.permute.xlu1 %1706  ;;  %v1031_v23 = vor.u32 %v1030_v20, %v1027_v47  ;;  %v1747_v16 = vsel %vm745_vm3, %v1744_v30, %v1746_v18  ;;  %v2147_v13 = vsel %vm2123_vm11, %v2080_v8, %v1300_v52  ;;  %v1779_v50 = vsel %vm745_vm3, %v1776_v60, %v1778_v34 }
 0x1c6   :  { %3132 = vst.msk [vmem:[%s6695_s3 + $0x90] sm:$0xf] %vm3095_vm13, %v3388_v38  ;;  %v3389_v57 = vpack.c.bf16 %v2802_v9, %v2802_v9  ;;  %v1675_v15 = vpop.permute.xlu0 %1674  ;;  %v2273_v41 = vsel %vm2190_vm12, %v2179_v1, %v1707_v44  ;;  %v1644_v60 = vshrl.u32 %v6217_v58, 16  ;;  %v1647_v47 = vshll.u32 %v6217_v58, 16 }
 0x1c7   :  { %1065 = vrot.lane.b32.xlu1 %v958_v27, %s3550_s18  ;;  %v2225_v0 = vsel %vm2190_vm12, %v2147_v13, %v1675_v15  ;;  %2717 = vmatmul.mubr.bf16.gmra.mrb[40].mxu1 %v2273_v41  ;;  %v1032_v56 = vsel %vm882_vm2, %v6052_v62, %v1031_v23  ;;  %v7045_v62 = vrot.slane %v7044_v2, 2  ;;  %v1275_v37 = vrot.slane %v3524_v28, 2  ;;  %v7047_v23 = vld [vmem:[#allocation27_spill] sm:$0xff] }
 0x1c8   :  { %3133 = vst.msk [vmem:[%s6695_s3 + $0x94] sm:$0xf] %vm3095_vm13, %v3389_v57  ;;  %877 = vrot.lane.b32.xlu0 %v812_v36, %s3551_s19  ;;  %2589 = vmatmul.mubr.bf16.gmra.mrb[44].mxu0 %v2225_v0  ;;  %v1646_v40 = vrot.slane %v1644_v60, 2  ;;  %v1649_v6 = vrot.slane %v1647_v47, 3  ;;  %v1507_v35 = vsel %vm1346_vm5, %v6142_v43, %v7046_v14  ;;  %v1748_v0 = vrot.slane %v5752_v51, 3 }
 0x1c9   :  { %v693_v30 = vpop.permute.xlu1 %692  ;;  %3265 = vmatprep.mubr.msk.bf16.mxu0 %vm1788_vm6, %v1747_v16  ;;  %3281 = vmatprep.mubr.msk.bf16.mxu1 %vm1788_vm6, %v1779_v50  ;;  %v1244_v45 = vsel %vm1209_vm4, %v1241_v31, %v7045_v62  ;;  %v1276_v10 = vsel %vm1209_vm4, %v1273_v7, %v1275_v37  ;;  %v1814_v16 = vsel %vm1788_vm6, %v6972_v24, %v7047_v23 }
 0x1ca   :  { %v588_v20 = vpop.permute.xlu0 %587  ;;  %v1650_v31 = vor.u32 %v1649_v6, %v1646_v40  ;;  %v1881_v15 = vsel %vm1855_vm7, %v1814_v16, %v693_v30  ;;  %v1749_v14 = vsel %vm745_vm3, %v1746_v18, %v1748_v0 }
 0x1cb   :  { %1164 = vrot.lane.b32.xlu1 %v5869_v33, %s3553_s21  ;;  %v1846_v40 = vsel %vm1788_vm6, %v5218_v12, %v588_v20  ;;  %v1780_v20 = vrot.slane %v5734_v48, 3 }
 0x1cc   :  { %1097 = vrot.lane.b32.xlu0 %v1032_v56, %s3550_s18  ;;  %v1651_v9 = vsel %vm1346_vm5, %v6135_v54, %v1650_v31 }
 0x1cd   :  { %v838_v59 = vpop.permute.xlu1 %837 }
 0x1ce   :  { %v725_v17 = vpop.permute.xlu0 %724  ;;  %v1948_v56 = vsel %vm1922_vm8, %v1881_v15, %v838_v59 }
 0x1cf   :  { %1309 = vrot.lane.b32.xlu1 %v1244_v45, %s3552_s20 }
 0x1d0   :  { %1196 = vrot.lane.b32.xlu0 %v5926_v4, %s3553_s21 }
 0x1d1   :  { %v1058_v52 = vpop.permute.xlu1 %1057 }
 0x1d2   :  { %v870_v22 = vpop.permute.xlu0 %869  ;;  %v2526_v61 = vpop.f32.mrb[12].mxu0  ;;  %v2015_v62 = vsel %vm1989_vm9, %v1948_v56, %v1058_v52 }
 0x1d3   :  { %v2527_v27 = vadd.f32 %v5878_v29, %v2526_v61  ;;  %1684 = vrot.lane.b32.xlu1 %v1507_v35, %s3554_s22  ;;  %v2528_v42 = vpop.f32.mrb[13].mxu0  ;;  %v1913_v35 = vsel %vm1855_vm7, %v1846_v40, %v725_v17 }
 0x1d4   :  { %1341 = vrot.lane.b32.xlu0 %v1276_v10, %s3552_s20  ;;  %v2529_v36 = vpop.f32.mrb[14].mxu0  ;;  %v1980_v31 = vsel %vm1922_vm8, %v1913_v35, %v870_v22  ;;  %v1781_v22 = vsel %vm745_vm3, %v1778_v34, %v1780_v20 }
 0x1d5   :  { %v2771_v21 = vmax.f32 %v2527_v27, 0.0  ;;  %v2530_v26 = vadd.f32 %v5878_v29, %v2529_v36  ;;  %v1157_v43 = vpop.permute.xlu1 %1156  ;;  %v2531_v38 = vpop.f32.mrb[15].mxu0 }
 0x1d6   :  { %v1090_v7 = vpop.permute.xlu0 %1089  ;;  %v2082_v30 = vsel %vm2056_vm10, %v2015_v62, %v1157_v43 }
 0x1d7   :  { %v3358_v8 = vpack.c.bf16 %v2771_v21, %v2771_v21  ;;  %v2772_v1 = vmax.f32 %v2530_v26, 0.0  ;;  %v2654_v44 = vpop.f32.mrb[8].mxu1  ;;  %v2047_v3 = vsel %vm1989_vm9, %v1980_v31, %v1090_v7 }
 0x1d8   :  { %v2655_v57 = vadd.f32 %v5878_v29, %v2654_v44  ;;  %v2656_v13 = vpop.f32.mrb[9].mxu1  ;;  %1716 = vrot.lane.b32.xlu0 %v1651_v9, %s3554_s22 }
 0x1d9   :  { %3102 = vst.msk [vmem:[%s6695_s3 + $0x18] sm:$0xf] %vm3095_vm13, %v3358_v8  ;;  %v3359_v54 = vpack.c.bf16 %v2772_v1, %v2772_v1  ;;  %v2657_v41 = vpop.f32.mrb[10].mxu1  ;;  %v1302_v50 = vpop.permute.xlu1 %1301 }
 0x1da   :  { %v2803_v24 = vmax.f32 %v2655_v57, 0.0  ;;  %v2658_v28 = vadd.f32 %v5878_v29, %v2657_v41  ;;  %v2659_v60 = vpop.f32.mrb[11].mxu1  ;;  %v1189_v47 = vpop.permute.xlu0 %1188  ;;  %v2149_v59 = vsel %vm2123_vm11, %v2082_v30, %v1302_v50 }
 0x1db   :  { %3103 = vst.msk [vmem:[%s6695_s3 + $0x1c] sm:$0xf] %vm3095_vm13, %v3359_v54  ;;  %v2114_v18 = vsel %vm2056_vm10, %v2047_v3, %v1189_v47 }
 0x1dc   :  { %v3390_v45 = vpack.c.bf16 %v2803_v24, %v2803_v24  ;;  %v2804_v37 = vmax.f32 %v2658_v28, 0.0 }
 0x1dd   :  { %v1677_v6 = vpop.permute.xlu1 %1676 }
 0x1de   :  { %3134 = vst.msk [vmem:[%s6695_s3 + $0x98] sm:$0xf] %vm3095_vm13, %v3390_v45  ;;  %v3391_v52 = vpack.c.bf16 %v2804_v37, %v2804_v37  ;;  %v1334_v10 = vpop.permute.xlu0 %1333  ;;  %v2228_v12 = vsel %vm2190_vm12, %v2149_v59, %v1677_v6  ;;  %v7048_v37 = vld [vmem:[#allocation26_spill] sm:$0xff] }
 0x1df   :  { %2597 = vmatmul.mubr.bf16.gmra.mrb[48].mxu0 %v2228_v12  ;;  %v2181_v61 = vsel %vm2123_vm11, %v2114_v18, %v1334_v10  ;;  %v1816_v40 = vsel %vm1788_vm6, %v6981_v55, %v7048_v37  ;;  %v1750_v12 = vrot.slane %v5869_v33, 3 }
 0x1e0   :  { %3135 = vst.msk [vmem:[%s6695_s3 + $0x9c] sm:$0xf] %vm3095_vm13, %v3391_v52  ;;  %3266 = vmatprep.mubr.msk.bf16.mxu0 %vm1788_vm6, %v1749_v14 }
 0x1e1   :  { %v590_v17 = vpop.permute.xlu1 %589 }
 0x1e2   :  { %v1709_v27 = vpop.permute.xlu0 %1708  ;;  %v1848_v24 = vsel %vm1788_vm6, %v5357_v49, %v590_v17  ;;  %v1782_v49 = vrot.slane %v5926_v4, 3 }
 0x1e3   :  { %v2276_v42 = vsel %vm2190_vm12, %v2181_v61, %v1709_v27 }
 0x1e4   :  { %2725 = vmatmul.mubr.bf16.gmra.mrb[44].mxu1 %v2276_v42 }
 0x1e5   :  { %v727_v36 = vpop.permute.xlu1 %726  ;;  %3282 = vmatprep.mubr.msk.bf16.mxu1 %vm1788_vm6, %v1781_v22  ;;  %v1783_v22 = vsel %vm745_vm3, %v1780_v20, %v1782_v49 }
 0x1e6   :  { %v695_v21 = vpop.permute.xlu0 %694  ;;  %v1915_v59 = vsel %vm1855_vm7, %v1848_v24, %v727_v36 }
 0x1e7   :  { %v1883_v14 = vsel %vm1855_vm7, %v1816_v40, %v695_v21 }
 0x1e9   :  { %v872_v26 = vpop.permute.xlu1 %871 }
 0x1ea   :  { %v840_v43 = vpop.permute.xlu0 %839  ;;  %v2534_v38 = vpop.f32.mrb[16].mxu0  ;;  %v1982_v35 = vsel %vm1922_vm8, %v1915_v59, %v872_v26  ;;  %v1751_v26 = vsel %vm745_vm3, %v1748_v0, %v1750_v12 }
 0x1eb   :  { %v2535_v9 = vadd.f32 %v5878_v29, %v2534_v38  ;;  %v2536_v7 = vpop.f32.mrb[17].mxu0  ;;  %v1950_v55 = vsel %vm1922_vm8, %v1883_v14, %v840_v43 }
 0x1ec   :  { %v2537_v8 = vpop.f32.mrb[18].mxu0 }
 0x1ed   :  { %v2773_v1 = vmax.f32 %v2535_v9, 0.0  ;;  %v2538_v44 = vadd.f32 %v5878_v29, %v2537_v8  ;;  %v1092_v32 = vpop.permute.xlu1 %1091  ;;  %v2539_v23 = vpop.f32.mrb[19].mxu0 }
 0x1ee   :  { %v1060_v34 = vpop.permute.xlu0 %1059  ;;  %v2049_v31 = vsel %vm1989_vm9, %v1982_v35, %v1092_v32 }
 0x1ef   :  { %v3360_v16 = vpack.c.bf16 %v2773_v1, %v2773_v1  ;;  %v2774_v57 = vmax.f32 %v2538_v44, 0.0  ;;  %v2662_v13 = vpop.f32.mrb[12].mxu1  ;;  %v2017_v3 = vsel %vm1989_vm9, %v1950_v55, %v1060_v34 }
 0x1f0   :  { %v2663_v15 = vadd.f32 %v5878_v29, %v2662_v13  ;;  %v2664_v54 = vpop.f32.mrb[13].mxu1 }
 0x1f1   :  { %3104 = vst.msk [vmem:[%s6695_s3 + $0x20] sm:$0xf] %vm3095_vm13, %v3360_v16  ;;  %v3361_v41 = vpack.c.bf16 %v2774_v57, %v2774_v57  ;;  %v2665_v50 = vpop.f32.mrb[14].mxu1  ;;  %v1191_v56 = vpop.permute.xlu1 %1190 }
 0x1f2   :  { %v2805_v28 = vmax.f32 %v2663_v15, 0.0  ;;  %v2666_v60 = vadd.f32 %v5878_v29, %v2665_v50  ;;  %v2667_v47 = vpop.f32.mrb[15].mxu1  ;;  %v1159_v62 = vpop.permute.xlu0 %1158  ;;  %v2116_v18 = vsel %vm2056_vm10, %v2049_v31, %v1191_v56 }
 0x1f3   :  { %3105 = vst.msk [vmem:[%s6695_s3 + $0x24] sm:$0xf] %vm3095_vm13, %v3361_v41  ;;  %v2084_v17 = vsel %vm2056_vm10, %v2017_v3, %v1159_v62  ;;  %v7049_v62 = vld [vmem:[#allocation29_spill] sm:$0xff] }
 0x1f4   :  { %v3392_v30 = vpack.c.bf16 %v2805_v28, %v2805_v28  ;;  %v2806_v45 = vmax.f32 %v2666_v60, 0.0 }
 0x1f5   :  { %v1336_v6 = vpop.permute.xlu1 %1335 }
 0x1f6   :  { %3136 = vst.msk [vmem:[%s6695_s3 + $0xa0] sm:$0xf] %vm3095_vm13, %v3392_v30  ;;  %v3393_v52 = vpack.c.bf16 %v2806_v45, %v2806_v45  ;;  %v1304_v10 = vpop.permute.xlu0 %1303  ;;  %v2183_v61 = vsel %vm2123_vm11, %v2116_v18, %v1336_v6  ;;  %v1818_v30 = vsel %vm1788_vm6, %v6992_v63, %v7049_v62  ;;  %v1752_v6 = vrot.slane %v7031_v39, 3  ;;  %v7050_v62 = vld [vmem:[#allocation28_spill] sm:$0xff] }
 0x1f7   :  { %v2151_v42 = vsel %vm2123_vm11, %v2084_v17, %v1304_v10 }
 0x1f8   :  { %3137 = vst.msk [vmem:[%s6695_s3 + $0xa4] sm:$0xf] %vm3095_vm13, %v3393_v52  ;;  %v1753_v18 = vsel %vm745_vm3, %v1750_v12, %v1752_v6 }
 0x1f9   :  { %v1711_v27 = vpop.permute.xlu1 %1710 }
 0x1fa   :  { %v1679_v36 = vpop.permute.xlu0 %1678  ;;  %v2279_v21 = vsel %vm2190_vm12, %v2183_v61, %v1711_v27 }
 0x1fb   :  { %v2231_v43 = vsel %vm2190_vm12, %v2151_v42, %v1679_v36  ;;  %2733 = vmatmul.mubr.bf16.gmra.mrb[48].mxu1 %v2279_v21 }
 0x1fc   :  { %2605 = vmatmul.mubr.bf16.gmra.mrb[52].mxu0 %v2231_v43  ;;  %3283 = vmatprep.mubr.msk.bf16.mxu1 %vm1788_vm6, %v1783_v22  ;;  %v1784_v22 = vrot.slane %v6057_v46, 3 }
 0x1fd   :  { %v697_v48 = vpop.permute.xlu1 %696  ;;  %3267 = vmatprep.mubr.msk.bf16.mxu0 %vm1788_vm6, %v1751_v26 }
 0x1fe   :  { %v592_v20 = vpop.permute.xlu0 %591  ;;  %v1885_v40 = vsel %vm1855_vm7, %v1818_v30, %v697_v48  ;;  %v1785_v26 = vsel %vm745_vm3, %v1782_v49, %v1784_v22  ;;  %v1820_v30 = vsel %vm1788_vm6, %v7003_v11, %v7050_v62 }
 0x1ff   :  { %v1850_v55 = vsel %vm1788_vm6, %v5534_v19, %v592_v20 }
 0x201   :  { %v842_v38 = vpop.permute.xlu1 %841 }
 0x202   :  { %v729_v9 = vpop.permute.xlu0 %728  ;;  %v2542_v7 = vpop.f32.mrb[20].mxu0  ;;  %v1952_v14 = vsel %vm1922_vm8, %v1885_v40, %v842_v38 }
 0x203   :  { %v2543_v8 = vadd.f32 %v5878_v29, %v2542_v7  ;;  %v2544_v1 = vpop.f32.mrb[21].mxu0  ;;  %v1917_v17 = vsel %vm1855_vm7, %v1850_v55, %v729_v9 }
 0x204   :  { %v2545_v44 = vpop.f32.mrb[22].mxu0 }
 0x205   :  { %v2775_v51 = vmax.f32 %v2543_v8, 0.0  ;;  %v2546_v0 = vadd.f32 %v5878_v29, %v2545_v44  ;;  %v1062_v32 = vpop.permute.xlu1 %1061  ;;  %v2547_v23 = vpop.f32.mrb[23].mxu0 }
 0x206   :  { %v874_v34 = vpop.permute.xlu0 %873  ;;  %v2019_v10 = vsel %vm1989_vm9, %v1952_v14, %v1062_v32 }
 0x207   :  { %v3362_v16 = vpack.c.bf16 %v2775_v51, %v2775_v51  ;;  %v2776_v57 = vmax.f32 %v2546_v0, 0.0  ;;  %v2670_v13 = vpop.f32.mrb[16].mxu1  ;;  %v1984_v42 = vsel %vm1922_vm8, %v1917_v17, %v874_v34 }
 0x208   :  { %v2671_v15 = vadd.f32 %v5878_v29, %v2670_v13  ;;  %v2672_v54 = vpop.f32.mrb[17].mxu1 }
 0x209   :  { %3106 = vst.msk [vmem:[%s6695_s3 + $0x28] sm:$0xf] %vm3095_vm13, %v3362_v16  ;;  %v3363_v41 = vpack.c.bf16 %v2776_v57, %v2776_v57  ;;  %v2673_v50 = vpop.f32.mrb[18].mxu1  ;;  %v1161_v56 = vpop.permute.xlu1 %1160 }
 0x20a   :  { %v2807_v24 = vmax.f32 %v2671_v15, 0.0  ;;  %v2674_v28 = vadd.f32 %v5878_v29, %v2673_v50  ;;  %v2675_v60 = vpop.f32.mrb[19].mxu1  ;;  %v1094_v47 = vpop.permute.xlu0 %1093  ;;  %v2086_v63 = vsel %vm2056_vm10, %v2019_v10, %v1161_v56 }
 0x20b   :  { %3107 = vst.msk [vmem:[%s6695_s3 + $0x2c] sm:$0xf] %vm3095_vm13, %v3363_v41  ;;  %v2051_v19 = vsel %vm1989_vm9, %v1984_v42, %v1094_v47 }
 0x20c   :  { %v3394_v45 = vpack.c.bf16 %v2807_v24, %v2807_v24  ;;  %v2808_v37 = vmax.f32 %v2674_v28, 0.0 }
 0x20d   :  { %v1306_v59 = vpop.permute.xlu1 %1305 }
 0x20e   :  { %3138 = vst.msk [vmem:[%s6695_s3 + $0xa8] sm:$0xf] %vm3095_vm13, %v3394_v45  ;;  %v3395_v35 = vpack.c.bf16 %v2808_v37, %v2808_v37  ;;  %v1193_v52 = vpop.permute.xlu0 %1192  ;;  %v2153_v31 = vsel %vm2123_vm11, %v2086_v63, %v1306_v59 }
 0x20f   :  { %v2118_v36 = vsel %vm2056_vm10, %v2051_v19, %v1193_v52 }
 0x210   :  { %3139 = vst.msk [vmem:[%s6695_s3 + $0xac] sm:$0xf] %vm3095_vm13, %v3395_v35 }
 0x211   :  { %v1681_v3 = vpop.permute.xlu1 %1680 }
 0x212   :  { %v1338_v61 = vpop.permute.xlu0 %1337  ;;  %v2234_v27 = vsel %vm2190_vm12, %v2153_v31, %v1681_v3 }
 0x213   :  { %2613 = vmatmul.mubr.bf16.gmra.mrb[56].mxu0 %v2234_v27  ;;  %v2185_v33 = vsel %vm2123_vm11, %v2118_v36, %v1338_v61  ;;  %v7051_v61 = vrot.slane %v7044_v2, 3 }
 0x214   :  { %3268 = vmatprep.mubr.msk.bf16.mxu0 %vm1788_vm6, %v1753_v18 }
 0x215   :  { %v594_v21 = vpop.permute.xlu1 %593  ;;  %v1755_v27 = vsel %vm745_vm3, %v1752_v6, %v7051_v61 }
 0x216   :  { %v1713_v12 = vpop.permute.xlu0 %1712  ;;  %v1852_v60 = vsel %vm1788_vm6, %v5658_v53, %v594_v21  ;;  %v1786_v53 = vrot.slane %v6217_v58, 3  ;;  %v6473_v21 = vld [vmem:[%s6694_s2] ss:$0 sm:$0xff] }
 0x217   :  { %v2282_v43 = vsel %vm2190_vm12, %v2185_v33, %v1713_v12 }
 0x218   :  { %2741 = vmatmul.mubr.bf16.gmra.mrb[52].mxu1 %v2282_v43  ;;  %v1787_v58 = vsel %vm745_vm3, %v1784_v22, %v1786_v53 }
 0x219   :  { %v731_v46 = vpop.permute.xlu1 %730  ;;  %3284 = vmatprep.mubr.msk.bf16.mxu1 %vm1788_vm6, %v1785_v26 }
 0x21a   :  { %v699_v48 = vpop.permute.xlu0 %698  ;;  %v2550_v20 = vpop.f32.mrb[24].mxu0  ;;  %v1919_v45 = vsel %vm1855_vm7, %v1852_v60, %v731_v46 }
 0x21b   :  { %v2551_v38 = vadd.f32 %v5878_v29, %v2550_v20  ;;  %v2552_v9 = vpop.f32.mrb[25].mxu0  ;;  %v1887_v40 = vsel %vm1855_vm7, %v1820_v30, %v699_v48 }
 0x21c   :  { %v2553_v7 = vpop.f32.mrb[26].mxu0 }
 0x21d   :  { %v2777_v8 = vmax.f32 %v2551_v38, 0.0  ;;  %v2554_v1 = vadd.f32 %v5878_v29, %v2553_v7  ;;  %v876_v44 = vpop.permute.xlu1 %875  ;;  %v2555_v51 = vpop.f32.mrb[27].mxu0 }
 0x21e   :  { %v844_v4 = vpop.permute.xlu0 %843  ;;  %v1986_v59 = vsel %vm1922_vm8, %v1919_v45, %v876_v44 }
 0x21f   :  { %v3364_v0 = vpack.c.bf16 %v2777_v8, %v2777_v8  ;;  %v2778_v49 = vmax.f32 %v2554_v1, 0.0  ;;  %v2678_v32 = vpop.f32.mrb[20].mxu1  ;;  %v1954_v35 = vsel %vm1922_vm8, %v1887_v40, %v844_v4 }
 0x220   :  { %v2679_v23 = vadd.f32 %v5878_v29, %v2678_v32  ;;  %v2680_v34 = vpop.f32.mrb[21].mxu1 }
 0x221   :  { %3108 = vst.msk [vmem:[%s6695_s3 + $0x30] sm:$0xf] %vm3095_vm13, %v3364_v0  ;;  %v3365_v16 = vpack.c.bf16 %v2778_v49, %v2778_v49  ;;  %v2681_v57 = vpop.f32.mrb[22].mxu1  ;;  %v1096_v13 = vpop.permute.xlu1 %1095 }
 0x222   :  { %v2809_v15 = vmax.f32 %v2679_v23, 0.0  ;;  %v2682_v54 = vadd.f32 %v5878_v29, %v2681_v57  ;;  %v2683_v41 = vpop.f32.mrb[23].mxu1  ;;  %v1064_v50 = vpop.permute.xlu0 %1063  ;;  %v2053_v52 = vsel %vm1989_vm9, %v1986_v59, %v1096_v13  ;;  %v7052_v13 = vld [vmem:[#allocation30_spill] sm:$0xff] }
 0x223   :  { %3109 = vst.msk [vmem:[%s6695_s3 + $0x34] sm:$0xf] %vm3095_vm13, %v3365_v16  ;;  %v2021_v10 = vsel %vm1989_vm9, %v1954_v35, %v1064_v50 }
 0x224   :  { %v3396_v56 = vpack.c.bf16 %v2809_v15, %v2809_v15  ;;  %v2810_v24 = vmax.f32 %v2682_v54, 0.0  ;;  %v1822_v15 = vsel %vm1788_vm6, %v7011_v25, %v7052_v13 }
 0x225   :  { %v1195_v28 = vpop.permute.xlu1 %1194 }
 0x226   :  { %3140 = vst.msk [vmem:[%s6695_s3 + $0xb0] sm:$0xf] %vm3095_vm13, %v3396_v56  ;;  %v3397_v47 = vpack.c.bf16 %v2810_v24, %v2810_v24  ;;  %v1163_v29 = vpop.permute.xlu0 %1162  ;;  %v2120_v63 = vsel %vm2056_vm10, %v2053_v52, %v1195_v28 }
 0x227   :  { %v2088_v11 = vsel %vm2056_vm10, %v2021_v10, %v1163_v29 }
 0x228   :  { %3141 = vst.msk [vmem:[%s6695_s3 + $0xb4] sm:$0xf] %vm3095_vm13, %v3397_v47 }
 0x229   :  { %v1340_v37 = vpop.permute.xlu1 %1339 }
 0x22a   :  { %v1308_v14 = vpop.permute.xlu0 %1307  ;;  %v2187_v55 = vsel %vm2123_vm11, %v2120_v63, %v1340_v37 }
 0x22b   :  { %v2155_v3 = vsel %vm2123_vm11, %v2088_v11, %v1308_v14 }
 0x22d   :  { %v1715_v31 = vpop.permute.xlu1 %1714 }
 0x22e   :  { %v1683_v18 = vpop.permute.xlu0 %1682  ;;  %v2285_v17 = vsel %vm2190_vm12, %v2187_v55, %v1715_v31 }
 0x22f   :  { %v2237_v42 = vsel %vm2190_vm12, %v2155_v3, %v1683_v18  ;;  %2749 = vmatmul.mubr.bf16.gmra.mrb[56].mxu1 %v2285_v17 }
 0x230   :  { %2621 = vmatmul.mubr.bf16.gmra.mrb[60].mxu0 %v2237_v42  ;;  %3285 = vmatprep.mubr.msk.bf16.mxu1 %vm1788_vm6, %v1787_v58 }
 0x231   :  { %v701_v19 = vpop.permute.xlu1 %700  ;;  %3269 = vmatprep.mubr.msk.bf16.mxu0 %vm1788_vm6, %v1755_v27 }
 0x232   :  { %v596_v22 = vpop.permute.xlu0 %595  ;;  %v2558_v36 = vpop.f32.mrb[28].mxu0  ;;  %v1889_v54 = vsel %vm1855_vm7, %v1822_v15, %v701_v19 }
 0x233   :  { %v2559_v39 = vadd.f32 %v6473_v21, %v2558_v36  ;;  %v2560_v2 = vpop.f32.mrb[29].mxu0  ;;  %v1854_v60 = vsel %vm1788_vm6, %v5818_v5, %v596_v22 }
 0x234   :  { %v2561_v6 = vpop.f32.mrb[30].mxu0 }
 0x235   :  { %v2779_v33 = vmax.f32 %v2559_v39, 0.0  ;;  %v2562_v12 = vadd.f32 %v6473_v21, %v2561_v6  ;;  %v846_v26 = vpop.permute.xlu1 %845  ;;  %v2563_v43 = vpop.f32.mrb[31].mxu0 }
 0x236   :  { %v733_v46 = vpop.permute.xlu0 %732  ;;  %v1956_v50 = vsel %vm1922_vm8, %v1889_v54, %v846_v26 }
 0x237   :  { %v3366_v48 = vpack.c.bf16 %v2779_v33, %v2779_v33  ;;  %v2780_v20 = vmax.f32 %v2562_v12, 0.0  ;;  %v2686_v38 = vpop.f32.mrb[24].mxu1  ;;  %v1921_v29 = vsel %vm1855_vm7, %v1854_v60, %v733_v46 }
 0x238   :  { %v2687_v9 = vadd.f32 %v6473_v21, %v2686_v38  ;;  %v2688_v7 = vpop.f32.mrb[25].mxu1 }
 0x239   :  { %3110 = vst.msk [vmem:[%s6695_s3 + $0x38] sm:$0xf] %vm3095_vm13, %v3366_v48  ;;  %v3367_v8 = vpack.c.bf16 %v2780_v20, %v2780_v20  ;;  %v2689_v1 = vpop.f32.mrb[26].mxu1  ;;  %v1066_v44 = vpop.permute.xlu1 %1065 }
 0x23a   :  { %v2811_v51 = vmax.f32 %v2687_v9, 0.0  ;;  %v2690_v4 = vadd.f32 %v6473_v21, %v2689_v1  ;;  %v2691_v0 = vpop.f32.mrb[27].mxu1  ;;  %v878_v49 = vpop.permute.xlu0 %877  ;;  %v2023_v24 = vsel %vm1989_vm9, %v1956_v50, %v1066_v44 }
 0x23b   :  { %3111 = vst.msk [vmem:[%s6695_s3 + $0x3c] sm:$0xf] %vm3095_vm13, %v3367_v8  ;;  %v1988_v45 = vsel %vm1922_vm8, %v1921_v29, %v878_v49 }
 0x23c   :  { %v3398_v32 = vpack.c.bf16 %v2811_v51, %v2811_v51  ;;  %v2812_v23 = vmax.f32 %v2690_v4, 0.0 }
 0x23d   :  { %v1165_v34 = vpop.permute.xlu1 %1164 }
 0x23e   :  { %3142 = vst.msk [vmem:[%s6695_s3 + $0xb8] sm:$0xf] %vm3095_vm13, %v3398_v32  ;;  %v3399_v16 = vpack.c.bf16 %v2812_v23, %v2812_v23  ;;  %v1098_v57 = vpop.permute.xlu0 %1097  ;;  %v2090_v28 = vsel %vm2056_vm10, %v2023_v24, %v1165_v34 }
 0x23f   :  { %v2055_v37 = vsel %vm1989_vm9, %v1988_v45, %v1098_v57 }
 0x240   :  { %3143 = vst.msk [vmem:[%s6695_s3 + $0xbc] sm:$0xf] %vm3095_vm13, %v3399_v16 }
 0x241   :  { %v1310_v41 = vpop.permute.xlu1 %1309 }
 0x242   :  { %v1197_v56 = vpop.permute.xlu0 %1196  ;;  %v2157_v25 = vsel %vm2123_vm11, %v2090_v28, %v1310_v41 }
 0x243   :  { %v2122_v53 = vsel %vm2056_vm10, %v2055_v37, %v1197_v56 }
 0x245   :  { %v1685_v47 = vpop.permute.xlu1 %1684 }
 0x246   :  { %v1342_v62 = vpop.permute.xlu0 %1341  ;;  %v2240_v30 = vsel %vm2190_vm12, %v2157_v25, %v1685_v47 }
 0x247   :  { %2629 = vmatmul.mubr.bf16.gmra.mrb[64].mxu0 %v2240_v30  ;;  %v2189_v40 = vsel %vm2123_vm11, %v2122_v53, %v1342_v62 }
 0x24a   :  { %v1717_v59 = vpop.permute.xlu0 %1716  ;;  %v2566_v14 = vpop.f32.mrb[32].mxu0 }
 0x24b   :  { %v2567_v5 = vadd.f32 %v6473_v21, %v2566_v14  ;;  %v2568_v35 = vpop.f32.mrb[33].mxu0  ;;  %v2288_v52 = vsel %vm2190_vm12, %v2189_v40, %v1717_v59 }
 0x24c   :  { %2757 = vmatmul.mubr.bf16.gmra.mrb[60].mxu1 %v2288_v52  ;;  %v2569_v10 = vpop.f32.mrb[34].mxu0 }
 0x24d   :  { %v2781_v63 = vmax.f32 %v2567_v5, 0.0  ;;  %v2570_v11 = vadd.f32 %v6473_v21, %v2569_v10  ;;  %v2571_v55 = vpop.f32.mrb[35].mxu0 }
 0x24f   :  { %v3368_v31 = vpack.c.bf16 %v2781_v63, %v2781_v63  ;;  %v2782_v58 = vmax.f32 %v2570_v11, 0.0  ;;  %v2694_v3 = vpop.f32.mrb[28].mxu1 }
 0x250   :  { %v2695_v18 = vadd.f32 %v6473_v21, %v2694_v3  ;;  %v2696_v17 = vpop.f32.mrb[29].mxu1 }
 0x251   :  { %3112 = vst.msk [vmem:[%s6695_s3 + $0x40] sm:$0xf] %vm3095_vm13, %v3368_v31  ;;  %v3369_v61 = vpack.c.bf16 %v2782_v58, %v2782_v58  ;;  %v2697_v27 = vpop.f32.mrb[30].mxu1 }
 0x252   :  { %v2813_v42 = vmax.f32 %v2695_v18, 0.0  ;;  %v2698_v19 = vadd.f32 %v6473_v21, %v2697_v27  ;;  %v2699_v22 = vpop.f32.mrb[31].mxu1 }
 0x253   :  { %3113 = vst.msk [vmem:[%s6695_s3 + $0x44] sm:$0xf] %vm3095_vm13, %v3369_v61 }
 0x254   :  { %v3400_v36 = vpack.c.bf16 %v2813_v42, %v2813_v42  ;;  %v2814_v39 = vmax.f32 %v2698_v19, 0.0 }
 0x256   :  { %3144 = vst.msk [vmem:[%s6695_s3 + $0xc0] sm:$0xf] %vm3095_vm13, %v3400_v36  ;;  %v3401_v2 = vpack.c.bf16 %v2814_v39, %v2814_v39 }
 0x258   :  { %3145 = vst.msk [vmem:[%s6695_s3 + $0xc4] sm:$0xf] %vm3095_vm13, %v3401_v2 }
 0x266   :  { %v2702_v6 = vpop.f32.mrb[32].mxu1 }
 0x267   :  { %v2574_v33 = vpop.f32.mrb[36].mxu0  ;;  %v2703_v12 = vadd.f32 %v6473_v21, %v2702_v6  ;;  %v2704_v26 = vpop.f32.mrb[33].mxu1 }
 0x268   :  { %v2575_v43 = vadd.f32 %v6473_v21, %v2574_v33  ;;  %v2576_v46 = vpop.f32.mrb[37].mxu0  ;;  %v2705_v48 = vpop.f32.mrb[34].mxu1 }
 0x269   :  { %v2815_v20 = vmax.f32 %v2703_v12, 0.0  ;;  %v2577_v38 = vpop.f32.mrb[38].mxu0  ;;  %v2706_v9 = vadd.f32 %v6473_v21, %v2705_v48  ;;  %v2707_v7 = vpop.f32.mrb[35].mxu1 }
 0x26a   :  { %v2783_v8 = vmax.f32 %v2575_v43, 0.0  ;;  %v2578_v1 = vadd.f32 %v6473_v21, %v2577_v38  ;;  %v2579_v44 = vpop.f32.mrb[39].mxu0 }
 0x26b   :  { %v3402_v51 = vpack.c.bf16 %v2815_v20, %v2815_v20  ;;  %v2816_v4 = vmax.f32 %v2706_v9, 0.0 }
 0x26c   :  { %v3370_v0 = vpack.c.bf16 %v2783_v8, %v2783_v8  ;;  %v2784_v49 = vmax.f32 %v2578_v1, 0.0 }
 0x26d   :  { %3146 = vst.msk [vmem:[%s6695_s3 + $0xc8] sm:$0xf] %vm3095_vm13, %v3402_v51  ;;  %v3403_v32 = vpack.c.bf16 %v2816_v4, %v2816_v4 }
 0x26e   :  { %3114 = vst.msk [vmem:[%s6695_s3 + $0x48] sm:$0xf] %vm3095_vm13, %v3370_v0  ;;  %v3371_v23 = vpack.c.bf16 %v2784_v49, %v2784_v49 }
 0x26f   :  { %3147 = vst.msk [vmem:[%s6695_s3 + $0xcc] sm:$0xf] %vm3095_vm13, %v3403_v32 }
 0x270   :  { %3115 = vst.msk [vmem:[%s6695_s3 + $0x4c] sm:$0xf] %vm3095_vm13, %v3371_v23 }
 0x27e   :  { %v2582_v34 = vpop.f32.mrb[40].mxu0 }
 0x27f   :  { %v2583_v16 = vadd.f32 %v6473_v21, %v2582_v34  ;;  %v2584_v57 = vpop.f32.mrb[41].mxu0 }
 0x280   :  { %v2585_v13 = vpop.f32.mrb[42].mxu0 }
 0x281   :  { %v2785_v15 = vmax.f32 %v2583_v16, 0.0  ;;  %v2586_v54 = vadd.f32 %v6473_v21, %v2585_v13  ;;  %v2587_v41 = vpop.f32.mrb[43].mxu0 }
 0x283   :  { %v3372_v50 = vpack.c.bf16 %v2785_v15, %v2785_v15  ;;  %v2786_v56 = vmax.f32 %v2586_v54, 0.0  ;;  %v2710_v24 = vpop.f32.mrb[36].mxu1 }
 0x284   :  { %v2711_v28 = vadd.f32 %v6473_v21, %v2710_v24  ;;  %v2712_v60 = vpop.f32.mrb[37].mxu1 }
 0x285   :  { %3116 = vst.msk [vmem:[%s6695_s3 + $0x50] sm:$0xf] %vm3095_vm13, %v3372_v50  ;;  %v3373_v25 = vpack.c.bf16 %v2786_v56, %v2786_v56  ;;  %v2713_v47 = vpop.f32.mrb[38].mxu1 }
 0x286   :  { %v2817_v29 = vmax.f32 %v2711_v28, 0.0  ;;  %v2714_v62 = vadd.f32 %v6473_v21, %v2713_v47  ;;  %v2715_v30 = vpop.f32.mrb[39].mxu1 }
 0x287   :  { %3117 = vst.msk [vmem:[%s6695_s3 + $0x54] sm:$0xf] %vm3095_vm13, %v3373_v25 }
 0x288   :  { %v3404_v45 = vpack.c.bf16 %v2817_v29, %v2817_v29  ;;  %v2818_v37 = vmax.f32 %v2714_v62, 0.0 }
 0x28a   :  { %3148 = vst.msk [vmem:[%s6695_s3 + $0xd0] sm:$0xf] %vm3095_vm13, %v3404_v45  ;;  %v3405_v53 = vpack.c.bf16 %v2818_v37, %v2818_v37 }
 0x28c   :  { %3149 = vst.msk [vmem:[%s6695_s3 + $0xd4] sm:$0xf] %vm3095_vm13, %v3405_v53 }
 0x29a   :  { %v2718_v40 = vpop.f32.mrb[40].mxu1 }
 0x29b   :  { %v2590_v59 = vpop.f32.mrb[44].mxu0  ;;  %v2719_v14 = vadd.f32 %v6473_v21, %v2718_v40  ;;  %v2720_v5 = vpop.f32.mrb[41].mxu1 }
 0x29c   :  { %v2591_v35 = vadd.f32 %v6473_v21, %v2590_v59  ;;  %v2592_v52 = vpop.f32.mrb[45].mxu0  ;;  %v2721_v10 = vpop.f32.mrb[42].mxu1 }
 0x29d   :  { %v2819_v63 = vmax.f32 %v2719_v14, 0.0  ;;  %v2593_v11 = vpop.f32.mrb[46].mxu0  ;;  %v2722_v55 = vadd.f32 %v6473_v21, %v2721_v10  ;;  %v2723_v31 = vpop.f32.mrb[43].mxu1 }
 0x29e   :  { %v2787_v58 = vmax.f32 %v2591_v35, 0.0  ;;  %v2594_v3 = vadd.f32 %v6473_v21, %v2593_v11  ;;  %v2595_v18 = vpop.f32.mrb[47].mxu0 }
 0x29f   :  { %v3406_v17 = vpack.c.bf16 %v2819_v63, %v2819_v63  ;;  %v2820_v61 = vmax.f32 %v2722_v55, 0.0 }
 0x2a0   :  { %v3374_v27 = vpack.c.bf16 %v2787_v58, %v2787_v58  ;;  %v2788_v42 = vmax.f32 %v2594_v3, 0.0 }
 0x2a1   :  { %3150 = vst.msk [vmem:[%s6695_s3 + $0xd8] sm:$0xf] %vm3095_vm13, %v3406_v17  ;;  %v3407_v19 = vpack.c.bf16 %v2820_v61, %v2820_v61 }
 0x2a2   :  { %3118 = vst.msk [vmem:[%s6695_s3 + $0x58] sm:$0xf] %vm3095_vm13, %v3374_v27  ;;  %v3375_v22 = vpack.c.bf16 %v2788_v42, %v2788_v42 }
 0x2a3   :  { %3151 = vst.msk [vmem:[%s6695_s3 + $0xdc] sm:$0xf] %vm3095_vm13, %v3407_v19 }
 0x2a4   :  { %3119 = vst.msk [vmem:[%s6695_s3 + $0x5c] sm:$0xf] %vm3095_vm13, %v3375_v22 }
 0x2b2   :  { %v2598_v36 = vpop.f32.mrb[48].mxu0 }
 0x2b3   :  { %v2599_v39 = vadd.f32 %v6473_v21, %v2598_v36  ;;  %v2600_v2 = vpop.f32.mrb[49].mxu0 }
 0x2b4   :  { %v2601_v6 = vpop.f32.mrb[50].mxu0 }
 0x2b5   :  { %v2789_v33 = vmax.f32 %v2599_v39, 0.0  ;;  %v2602_v12 = vadd.f32 %v6473_v21, %v2601_v6  ;;  %v2603_v26 = vpop.f32.mrb[51].mxu0 }
 0x2b7   :  { %v3376_v43 = vpack.c.bf16 %v2789_v33, %v2789_v33  ;;  %v2790_v46 = vmax.f32 %v2602_v12, 0.0  ;;  %v2726_v48 = vpop.f32.mrb[44].mxu1 }
 0x2b8   :  { %v2727_v20 = vadd.f32 %v6473_v21, %v2726_v48  ;;  %v2728_v38 = vpop.f32.mrb[45].mxu1 }
 0x2b9   :  { %3120 = vst.msk [vmem:[%s6695_s3 + $0x60] sm:$0xf] %vm3095_vm13, %v3376_v43  ;;  %v3377_v9 = vpack.c.bf16 %v2790_v46, %v2790_v46  ;;  %v2729_v7 = vpop.f32.mrb[46].mxu1 }
 0x2ba   :  { %v2821_v8 = vmax.f32 %v2727_v20, 0.0  ;;  %v2730_v1 = vadd.f32 %v6473_v21, %v2729_v7  ;;  %v2731_v44 = vpop.f32.mrb[47].mxu1 }
 0x2bb   :  { %3121 = vst.msk [vmem:[%s6695_s3 + $0x64] sm:$0xf] %vm3095_vm13, %v3377_v9 }
 0x2bc   :  { %v3408_v51 = vpack.c.bf16 %v2821_v8, %v2821_v8  ;;  %v2822_v4 = vmax.f32 %v2730_v1, 0.0 }
 0x2be   :  { %3152 = vst.msk [vmem:[%s6695_s3 + $0xe0] sm:$0xf] %vm3095_vm13, %v3408_v51  ;;  %v3409_v0 = vpack.c.bf16 %v2822_v4, %v2822_v4 }
 0x2c0   :  { %3153 = vst.msk [vmem:[%s6695_s3 + $0xe4] sm:$0xf] %vm3095_vm13, %v3409_v0 }
 0x2ce   :  { %v2734_v49 = vpop.f32.mrb[48].mxu1 }
 0x2cf   :  { %v2606_v32 = vpop.f32.mrb[52].mxu0  ;;  %v2735_v23 = vadd.f32 %v6473_v21, %v2734_v49  ;;  %v2736_v34 = vpop.f32.mrb[49].mxu1 }
 0x2d0   :  { %v2607_v16 = vadd.f32 %v6473_v21, %v2606_v32  ;;  %v2608_v57 = vpop.f32.mrb[53].mxu0  ;;  %v2737_v13 = vpop.f32.mrb[50].mxu1 }
 0x2d1   :  { %v2823_v15 = vmax.f32 %v2735_v23, 0.0  ;;  %v2609_v54 = vpop.f32.mrb[54].mxu0  ;;  %v2738_v41 = vadd.f32 %v6473_v21, %v2737_v13  ;;  %v2739_v50 = vpop.f32.mrb[51].mxu1 }
 0x2d2   :  { %v2791_v56 = vmax.f32 %v2607_v16, 0.0  ;;  %v2610_v24 = vadd.f32 %v6473_v21, %v2609_v54  ;;  %v2611_v28 = vpop.f32.mrb[55].mxu0 }
 0x2d3   :  { %v3410_v60 = vpack.c.bf16 %v2823_v15, %v2823_v15  ;;  %v2824_v25 = vmax.f32 %v2738_v41, 0.0 }
 0x2d4   :  { %v3378_v47 = vpack.c.bf16 %v2791_v56, %v2791_v56  ;;  %v2792_v29 = vmax.f32 %v2610_v24, 0.0 }
 0x2d5   :  { %3154 = vst.msk [vmem:[%s6695_s3 + $0xe8] sm:$0xf] %vm3095_vm13, %v3410_v60  ;;  %v3411_v62 = vpack.c.bf16 %v2824_v25, %v2824_v25 }
 0x2d6   :  { %3122 = vst.msk [vmem:[%s6695_s3 + $0x68] sm:$0xf] %vm3095_vm13, %v3378_v47  ;;  %v3379_v30 = vpack.c.bf16 %v2792_v29, %v2792_v29 }
 0x2d7   :  { %3155 = vst.msk [vmem:[%s6695_s3 + $0xec] sm:$0xf] %vm3095_vm13, %v3411_v62 }
 0x2d8   :  { %3123 = vst.msk [vmem:[%s6695_s3 + $0x6c] sm:$0xf] %vm3095_vm13, %v3379_v30 }
 0x2e6   :  { %v2614_v45 = vpop.f32.mrb[56].mxu0 }
 0x2e7   :  { %v2615_v37 = vadd.f32 %v6473_v21, %v2614_v45  ;;  %v2616_v53 = vpop.f32.mrb[57].mxu0 }
 0x2e8   :  { %v2617_v40 = vpop.f32.mrb[58].mxu0 }
 0x2e9   :  { %v2793_v59 = vmax.f32 %v2615_v37, 0.0  ;;  %v2618_v14 = vadd.f32 %v6473_v21, %v2617_v40  ;;  %v2619_v5 = vpop.f32.mrb[59].mxu0 }
 0x2eb   :  { %v3380_v35 = vpack.c.bf16 %v2793_v59, %v2793_v59  ;;  %v2794_v52 = vmax.f32 %v2618_v14, 0.0  ;;  %v2742_v10 = vpop.f32.mrb[52].mxu1 }
 0x2ec   :  { %v2743_v63 = vadd.f32 %v6473_v21, %v2742_v10  ;;  %v2744_v11 = vpop.f32.mrb[53].mxu1 }
 0x2ed   :  { %3124 = vst.msk [vmem:[%s6695_s3 + $0x70] sm:$0xf] %vm3095_vm13, %v3380_v35  ;;  %v3381_v55 = vpack.c.bf16 %v2794_v52, %v2794_v52  ;;  %v2745_v31 = vpop.f32.mrb[54].mxu1 }
 0x2ee   :  { %v2825_v58 = vmax.f32 %v2743_v63, 0.0  ;;  %v2746_v3 = vadd.f32 %v6473_v21, %v2745_v31  ;;  %v2747_v18 = vpop.f32.mrb[55].mxu1 }
 0x2ef   :  { %3125 = vst.msk [vmem:[%s6695_s3 + $0x74] sm:$0xf] %vm3095_vm13, %v3381_v55 }
 0x2f0   :  { %v3412_v17 = vpack.c.bf16 %v2825_v58, %v2825_v58  ;;  %v2826_v61 = vmax.f32 %v2746_v3, 0.0 }
 0x2f2   :  { %3156 = vst.msk [vmem:[%s6695_s3 + $0xf0] sm:$0xf] %vm3095_vm13, %v3412_v17  ;;  %v3413_v27 = vpack.c.bf16 %v2826_v61, %v2826_v61 }
 0x2f4   :  { %3157 = vst.msk [vmem:[%s6695_s3 + $0xf4] sm:$0xf] %vm3095_vm13, %v3413_v27 }
 0x302   :  { %v2750_v42 = vpop.f32.mrb[56].mxu1 }
 0x303   :  { %v2622_v19 = vpop.f32.mrb[60].mxu0  ;;  %v2751_v22 = vadd.f32 %v6473_v21, %v2750_v42  ;;  %v2752_v36 = vpop.f32.mrb[57].mxu1 }
 0x304   :  { %v2623_v39 = vadd.f32 %v6473_v21, %v2622_v19  ;;  %v2624_v2 = vpop.f32.mrb[61].mxu0  ;;  %v2753_v6 = vpop.f32.mrb[58].mxu1 }
 0x305   :  { %v2827_v33 = vmax.f32 %v2751_v22, 0.0  ;;  %v2625_v12 = vpop.f32.mrb[62].mxu0  ;;  %v2754_v26 = vadd.f32 %v6473_v21, %v2753_v6  ;;  %v2755_v43 = vpop.f32.mrb[59].mxu1 }
 0x306   :  { %v2795_v46 = vmax.f32 %v2623_v39, 0.0  ;;  %v2626_v48 = vadd.f32 %v6473_v21, %v2625_v12  ;;  %v2627_v20 = vpop.f32.mrb[63].mxu0 }
 0x307   :  { %v3414_v38 = vpack.c.bf16 %v2827_v33, %v2827_v33  ;;  %v2828_v9 = vmax.f32 %v2754_v26, 0.0 }
 0x308   :  { %v3382_v7 = vpack.c.bf16 %v2795_v46, %v2795_v46  ;;  %v2796_v8 = vmax.f32 %v2626_v48, 0.0 }
 0x309   :  { %3158 = vst.msk [vmem:[%s6695_s3 + $0xf8] sm:$0xf] %vm3095_vm13, %v3414_v38  ;;  %v3415_v1 = vpack.c.bf16 %v2828_v9, %v2828_v9 }
 0x30a   :  { %3126 = vst.msk [vmem:[%s6695_s3 + $0x78] sm:$0xf] %vm3095_vm13, %v3382_v7  ;;  %v3383_v44 = vpack.c.bf16 %v2796_v8, %v2796_v8 }
 0x30b   :  { %3159 = vst.msk [vmem:[%s6695_s3 + $0xfc] sm:$0xf] %vm3095_vm13, %v3415_v1 }
 0x30c   :  { %3127 = vst.msk [vmem:[%s6695_s3 + $0x7c] sm:$0xf] %vm3095_vm13, %v3383_v44 }
 0x31a   :  { %v2630_v51 = vpop.f32.mrb[64].mxu0 }
 0x31b   :  { %v2631_v4 = vadd.f32 %v6473_v21, %v2630_v51  ;;  %v2632_v0 = vpop.f32.mrb[65].mxu0 }
 0x31c   :  { %v2633_v49 = vpop.f32.mrb[66].mxu0 }
 0x31d   :  { %v2797_v32 = vmax.f32 %v2631_v4, 0.0  ;;  %v2634_v23 = vadd.f32 %v6473_v21, %v2633_v49  ;;  %v2635_v34 = vpop.f32.mrb[67].mxu0 }
 0x31f   :  { %v3384_v16 = vpack.c.bf16 %v2797_v32, %v2797_v32  ;;  %v2798_v57 = vmax.f32 %v2634_v23, 0.0  ;;  %v2758_v13 = vpop.f32.mrb[60].mxu1 }
 0x320   :  { %v2759_v15 = vadd.f32 %v6473_v21, %v2758_v13  ;;  %v2760_v54 = vpop.f32.mrb[61].mxu1 }
 0x321   :  { %3128 = vst.msk [vmem:[%s6695_s3 + $0x80] sm:$0xf] %vm3095_vm13, %v3384_v16  ;;  %v3385_v41 = vpack.c.bf16 %v2798_v57, %v2798_v57  ;;  %v2761_v50 = vpop.f32.mrb[62].mxu1 }
 0x322   :  { %v2829_v56 = vmax.f32 %v2759_v15, 0.0  ;;  %v2762_v24 = vadd.f32 %v6473_v21, %v2761_v50  ;;  %v2763_v28 = vpop.f32.mrb[63].mxu1 }
 0x323   :  { %3129 = vst.msk [vmem:[%s6695_s3 + $0x84] sm:$0xf] %vm3095_vm13, %v3385_v41 }
 0x324   :  { %v3416_v60 = vpack.c.bf16 %v2829_v56, %v2829_v56  ;;  %v2830_v25 = vmax.f32 %v2762_v24, 0.0 }
 0x326   :  { %3160 = vst.msk [vmem:[%s6695_s3 + $0x100] sm:$0xf] %vm3095_vm13, %v3416_v60  ;;  %v3417_v47 = vpack.c.bf16 %v2830_v25, %v2830_v25 }
 0x328   :  { %3161 = vst.msk [vmem:[%s6695_s3 + $0x104] sm:$0xf] %vm3095_vm13, %v3417_v47 }

</bundles_post_ra>
